<compile_context>
chip_gen: v6e
topology: v6e:2x2x1
jax: 0.10.0
libtpu: 0.0.40
codegen_flags: <defaults>
</compile_context>

<pallas_src>
import jax
import jax.numpy as jnp
from jax import lax
from jax.experimental import pallas as pl
from jax.experimental.pallas import tpu as pltpu


def _round_up(x, m):
    return (x + m - 1) // m * m


def basic_block_3d(x_ncdhw, w1, w2, scale1, shift1, scale2, shift2,
                   *, compute_dtype=jnp.bfloat16):
    """Fused BasicBlock3D forward.

    x_ncdhw : (N, C, D, H, W) float32
    w1, w2  : (3, 3, 3, Cin, Cout) conv weights (DHWIO), Cin == Cout == C
    scale*, shift* : (C,) folded eval-mode BatchNorm affine
    """
    N, C, D, H, W = x_ncdhw.shape
    Dp, Hp, Wp = D + 2, H + 2, W + 2
    HpWp = Hp * Wp
    L = Dp * HpWp                      # flattened padded frame (lane axis)
    L_pad = _round_up(L, 128)          # 128-multiple working lane extent
    halo_bw = HpWp + Wp                # max |flat shift| of a (kd, kh) band
    PAD_L = _round_up(halo_bw, 128)    # left guard band (lane aligned)
    LP = _round_up(PAD_L + L_pad + halo_bw, 128)   # total padded lane extent
    nine_c = 9 * C

    # ---- host-side layout prep (kept f32; no separate cast pass) ----------
    xp = jnp.pad(x_ncdhw, ((0, 0), (0, 0), (1, 1), (1, 1), (1, 1)))
    xf = jnp.pad(xp.reshape(N, C, L),
                 ((0, 0), (0, 0), (PAD_L, LP - PAD_L - L)))  # (N, C, LP) f32

    def prep_w(w, scale):
        # (3,3,3,Ci,Co) -> (kd, Co, 9*Ci), (kh,kw)-major / Ci-minor columns.
        # BN scale folded into the output-channel rows (removes one lane-wide
        # f32 multiply per element per conv in the kernel).
        ws = jnp.transpose(w.reshape(3, 9, C, C), (0, 3, 1, 2))
        ws = ws.reshape(3, C, nine_c) * scale[None, :, None]
        return ws.astype(compute_dtype)

    w1s = prep_w(w1, scale1)
    w2s = prep_w(w2, scale2)
    b1 = shift1.reshape(C, 1).astype(jnp.float32)
    b2 = shift2.reshape(C, 1).astype(jnp.float32)

    # interior mask of the padded frame: 1 inside, 0 on the 1-voxel halo and
    # on the [L, L_pad) tail lanes.
    dd = (jnp.arange(Dp) >= 1) & (jnp.arange(Dp) <= D)
    hh = (jnp.arange(Hp) >= 1) & (jnp.arange(Hp) <= H)
    ww = (jnp.arange(Wp) >= 1) & (jnp.arange(Wp) <= W)
    mask = (dd[:, None, None] & hh[None, :, None] & ww[None, None, :])
    mask = jnp.pad(mask.reshape(1, L), ((0, 0), (0, L_pad - L)))
    mask = mask.astype(jnp.float32)

    def kernel(xf_ref, w1_ref, w2_ref, b1_ref, b2_ref, mask_ref,
               out_ref, col_ref, mid_ref):
        # xf_ref : (C, LP)   f32 padded + flattened input
        # w*_ref : (3, C, 9C) compute_dtype weights (BN scale folded in)
        # b*_ref : (C, 1)    f32 folded BatchNorm shift
        # mask   : (1, L_pad) interior mask
        # out_ref: (C, L_pad) f32 block output (padded-frame layout)
        # col_ref: (2, 9C, L_pad) im2col scratch (double-buffered over kd)
        # mid_ref: (C, LP)   f32 padded intermediate activation

        def conv(src_ref, w_ref):
            acc = jnp.zeros((C, L_pad), jnp.float32)
            for kd in range(3):                       # kd-chunked contraction
                slot = kd & 1
                for kh in range(3):
                    base = PAD_L + (kd - 1) * HpWp + (kh - 1) * Wp
                    band = src_ref[:, base:base + L_pad]        # one load
                    r0 = kh * 3 * C
                    # kw = -1 / 0 / +1 taps from the single band via XLU
                    # rotates (roll ≡ jnp.roll; wrapped lanes only feed
                    # discarded halo outputs).
                    col_ref[slot, r0:r0 + C, :] = (
                        pltpu.roll(band, 1, axis=1).astype(compute_dtype))
                    col_ref[slot, r0 + C:r0 + 2 * C, :] = (
                        band.astype(compute_dtype))
                    col_ref[slot, r0 + 2 * C:r0 + 3 * C, :] = (
                        pltpu.roll(band, L_pad - 1, axis=1)
                        .astype(compute_dtype))
                acc = acc + jnp.dot(w_ref[kd], col_ref[slot],
                                    preferred_element_type=jnp.float32)
            return acc

        # ---- conv1 -> folded norm1 (shift only) -> ReLU -> halo re-zero ----
        y1 = jnp.maximum(conv(xf_ref, w1_ref) + b1_ref[...], 0.0)
        y1 = y1 * mask_ref[...]

        # Padded intermediate for conv2's "same" zero padding.  Only the two
        # 128-lane guard bands need explicit zeroing (unmasked stores); the
        # frame halo inside [0, L_pad) is already zeroed by the mask.
        mid_ref[:, :PAD_L] = jnp.zeros((C, PAD_L), mid_ref.dtype)
        if LP > PAD_L + L_pad:
            mid_ref[:, PAD_L + L_pad:] = jnp.zeros(
                (C, LP - PAD_L - L_pad), mid_ref.dtype)
        mid_ref[:, PAD_L:PAD_L + L_pad] = y1

        # ---- conv2 -> folded norm2 (shift), residual (exact f32 x), ReLU ---
        y2 = conv(mid_ref, w2_ref) + b2_ref[...]
        x_res = xf_ref[:, PAD_L:PAD_L + L_pad]          # f32, exact residual
        out_ref[...] = jnp.maximum(x_res + y2, 0.0).astype(out_ref.dtype)

    # VMEM budget from actual buffer sizes (double-buffered pipeline inputs /
    # outputs + scratch), capped well below v7x's 64 MiB physical VMEM.
    csz = jnp.dtype(compute_dtype).itemsize
    buf_bytes = (2 * C * LP * 4                 # xf blocks
                 + 2 * C * L_pad * 4            # out blocks
                 + 2 * 2 * 3 * C * nine_c * csz  # w1s, w2s
                 + 2 * (2 * C * 4 + L_pad * 4)  # shifts + mask
                 + 2 * nine_c * L_pad * csz     # im2col scratch (2 slots)
                 + C * LP * 4)                  # mid scratch
    vmem_limit = int(min(48 * 1024 * 1024,
                         max(8 * 1024 * 1024, 2 * buf_bytes)))

    out_flat = pl.pallas_call(
        kernel,
        out_shape=jax.ShapeDtypeStruct((N, C, L_pad), jnp.float32),
        grid_spec=pltpu.PrefetchScalarGridSpec(
            num_scalar_prefetch=0,
            grid=(N,),
            in_specs=[
                pl.BlockSpec((None, C, LP), lambda n: (n, 0, 0)),
                pl.BlockSpec((3, C, nine_c), lambda n: (0, 0, 0)),
                pl.BlockSpec((3, C, nine_c), lambda n: (0, 0, 0)),
                pl.BlockSpec((C, 1), lambda n: (0, 0)),
                pl.BlockSpec((C, 1), lambda n: (0, 0)),
                pl.BlockSpec((1, L_pad), lambda n: (0, 0)),
            ],
            out_specs=pl.BlockSpec((None, C, L_pad), lambda n: (n, 0, 0)),
            scratch_shapes=[
                pltpu.VMEM((2, nine_c, L_pad), compute_dtype),  # im2col
                pltpu.VMEM((C, LP), jnp.float32),               # intermediate
            ],
        ),
        compiler_params=pltpu.CompilerParams(
            dimension_semantics=("parallel",),
            vmem_limit_bytes=vmem_limit,
        ),
    )(xf, w1s, w2s, b1, b2, mask)

    # Back to NCDHW: drop the [L, L_pad) tail and the padded-frame halo.
    out = out_flat[:, :, :L].reshape(N, C, Dp, Hp, Wp)
    return out[:, :, 1:1 + D, 1:1 + H, 1:1 + W]


def _reference(x_ncdhw, w1, w2, scale1, shift1, scale2, shift2):
    """Pure-JAX f32 reference of BasicBlock3D.forward (eval-mode BatchNorm)."""
    x = jnp.transpose(x_ncdhw, (0, 2, 3, 4, 1))                  # NDHWC
    dn = ("NDHWC", "DHWIO", "NDHWC")
    hp = lax.Precision.HIGHEST
    y = lax.conv_general_dilated(x, w1, (1, 1, 1), "SAME",
                                 dimension_numbers=dn, precision=hp)
    y = y * scale1 + shift1
    y = jnp.maximum(y, 0.0)
    y = lax.conv_general_dilated(y, w2, (1, 1, 1), "SAME",
                                 dimension_numbers=dn, precision=hp)
    y = y * scale2 + shift2
    y = jnp.maximum(x + y, 0.0)
    return jnp.transpose(y, (0, 4, 1, 2, 3))


if __name__ == "__main__":
    N, C, D, H, W = 2, 8, 8, 8, 8
    eps = 1e-5
    keys = jax.random.split(jax.random.PRNGKey(0), 11)

    x = jax.random.normal(keys[0], (N, C, D, H, W), jnp.float32)

    # Conv3d weights (no bias), stored as DHWIO = (3,3,3,Cin,Cout)
    w1 = 0.1 * jax.random.normal(keys[1], (3, 3, 3, C, C), jnp.float32)
    w2 = 0.1 * jax.random.normal(keys[2], (3, 3, 3, C, C), jnp.float32)

    # Eval-mode BatchNorm3d params, folded to per-channel scale/shift
    g1 = 1.0 + 0.1 * jax.random.normal(keys[3], (C,), jnp.float32)
    be1 = 0.1 * jax.random.normal(keys[4], (C,), jnp.float32)
    rm1 = 0.1 * jax.random.normal(keys[5], (C,), jnp.float32)
    rv1 = 1.0 + jnp.abs(0.1 * jax.random.normal(keys[6], (C,), jnp.float32))
    g2 = 1.0 + 0.1 * jax.random.normal(keys[7], (C,), jnp.float32)
    be2 = 0.1 * jax.random.normal(keys[8], (C,), jnp.float32)
    rm2 = 0.1 * jax.random.normal(keys[9], (C,), jnp.float32)
    rv2 = 1.0 + jnp.abs(0.1 * jax.random.normal(keys[10], (C,), jnp.float32))

    scale1 = g1 / jnp.sqrt(rv1 + eps)
    shift1 = be1 - rm1 * scale1
    scale2 = g2 / jnp.sqrt(rv2 + eps)
    shift2 = be2 - rm2 * scale2

    ref = _reference(x, w1, w2, scale1, shift1, scale2, shift2)

    # Exact path: f32 MXU operands vs f32 reference (catches any tap/weight
    # mapping or roll-direction bug, which would give O(1) errors).
    out_f32 = jax.block_until_ready(
        basic_block_3d(x, w1, w2, scale1, shift1, scale2, shift2,
                       compute_dtype=jnp.float32))
    assert out_f32.shape == (N, C, D, H, W)
    assert bool(jnp.allclose(out_f32, ref, atol=2e-2, rtol=2e-2)), (
        float(jnp.max(jnp.abs(out_f32 - ref))))

    # Fast path: bf16 MXU operands, f32 accumulation, exact f32 residual.
    out_bf16 = jax.block_until_ready(
        basic_block_3d(x, w1, w2, scale1, shift1, scale2, shift2,
                       compute_dtype=jnp.bfloat16))
    assert out_bf16.shape == (N, C, D, H, W)
    assert bool(jnp.allclose(out_bf16, ref, atol=2e-1, rtol=2e-1)), (
        float(jnp.max(jnp.abs(out_bf16 - ref))))

    print("KERNEL_OK")
</pallas_src>

<mosaic_0001>
module attributes {stable_mosaic.version = 11 : i64} {
  func.func @kernel(%arg0: i32, %arg1: memref<1x8x1280xf32, #tpu.memory_space<vmem>>, %arg2: memref<3x8x72xf32, #tpu.memory_space<vmem>>, %arg3: memref<3x8x72xf32, #tpu.memory_space<vmem>>, %arg4: memref<8x1xf32, #tpu.memory_space<vmem>>, %arg5: memref<8x1xf32, #tpu.memory_space<vmem>>, %arg6: memref<1x1024xf32, #tpu.memory_space<vmem>>, %arg7: memref<1x8x1024xf32, #tpu.memory_space<vmem>>, %arg8: memref<2x72x1024xf32, #tpu.memory_space<vmem>>, %arg9: memref<8x1280xf32, #tpu.memory_space<vmem>>) attributes {dimension_semantics = [#tpu.dimension_semantics<parallel>], iteration_bounds = array<i64: 2>, scalar_prefetch = 0 : i64, scratch_operands = 2 : i64, tpu.core_type = #tpu.core_type<tc>, window_params = [{transform_indices = @transform_0, window_bounds = array<i64: 1, 8, 1280>}, {pipeline_mode = #tpu.pipeline_mode<synchronous>, transform_indices = @transform_1, window_bounds = array<i64: 3, 8, 72>}, {pipeline_mode = #tpu.pipeline_mode<synchronous>, transform_indices = @transform_2, window_bounds = array<i64: 3, 8, 72>}, {pipeline_mode = #tpu.pipeline_mode<synchronous>, transform_indices = @transform_3, window_bounds = array<i64: 8, 1>}, {pipeline_mode = #tpu.pipeline_mode<synchronous>, transform_indices = @transform_4, window_bounds = array<i64: 8, 1>}, {pipeline_mode = #tpu.pipeline_mode<synchronous>, transform_indices = @transform_5, window_bounds = array<i64: 1, 1024>}, {transform_indices = @transform_6, window_bounds = array<i64: 1, 8, 1024>}]} {
    %cst = arith.constant 0.000000e+00 : f32
    %0 = vector.broadcast %cst : f32 to vector<8x1024xf32>
    %c0 = arith.constant 0 : index
    %c0_0 = arith.constant 0 : index
    %c18 = arith.constant 18 : index
    %1 = vector.load %arg1[%c0, %c0_0, %c18] : memref<1x8x1280xf32, #tpu.memory_space<vmem>>, vector<1x8x1024xf32>
    %2 = vector.shape_cast %1 : vector<1x8x1024xf32> to vector<8x1024xf32>
    %c1_i32 = arith.constant 1 : i32
    %3 = tpu.dynamic_rotate %2 by %c1_i32 dim 1 : vector<8x1024xf32>, i32 -> vector<8x1024xf32>
    %c0_1 = arith.constant 0 : index
    %c0_2 = arith.constant 0 : index
    %c0_3 = arith.constant 0 : index
    %4 = vector.load %arg8[%c0_1, %c0_2, %c0_3] : memref<2x72x1024xf32, #tpu.memory_space<vmem>>, vector<1x8x1024xf32>
    %5 = vector.shape_cast %4 : vector<1x8x1024xf32> to vector<8x1024xf32>
    %6 = vector.shape_cast %3 : vector<8x1024xf32> to vector<1x8x1024xf32>
    tpu.vector_store %arg8[%c0_1, %c0_2, %c0_3], %6 {strides = array<i32>} : memref<2x72x1024xf32, #tpu.memory_space<vmem>>, vector<1x8x1024xf32>,
    %c0_4 = arith.constant 0 : index
    %c8 = arith.constant 8 : index
    %c0_5 = arith.constant 0 : index
    %7 = vector.load %arg8[%c0_4, %c8, %c0_5] : memref<2x72x1024xf32, #tpu.memory_space<vmem>>, vector<1x8x1024xf32>
    %8 = vector.shape_cast %7 : vector<1x8x1024xf32> to vector<8x1024xf32>
    %9 = vector.shape_cast %2 : vector<8x1024xf32> to vector<1x8x1024xf32>
    tpu.vector_store %arg8[%c0_4, %c8, %c0_5], %9 {strides = array<i32>} : memref<2x72x1024xf32, #tpu.memory_space<vmem>>, vector<1x8x1024xf32>,
    %c1023_i32 = arith.constant 1023 : i32
    %10 = tpu.dynamic_rotate %2 by %c1023_i32 dim 1 : vector<8x1024xf32>, i32 -> vector<8x1024xf32>
    %c0_6 = arith.constant 0 : index
    %c16 = arith.constant 16 : index
    %c0_7 = arith.constant 0 : index
    %11 = vector.load %arg8[%c0_6, %c16, %c0_7] : memref<2x72x1024xf32, #tpu.memory_space<vmem>>, vector<1x8x1024xf32>
    %12 = vector.shape_cast %11 : vector<1x8x1024xf32> to vector<8x1024xf32>
    %13 = vector.shape_cast %10 : vector<8x1024xf32> to vector<1x8x1024xf32>
    tpu.vector_store %arg8[%c0_6, %c16, %c0_7], %13 {strides = array<i32>} : memref<2x72x1024xf32, #tpu.memory_space<vmem>>, vector<1x8x1024xf32>,
    %c0_8 = arith.constant 0 : index
    %c0_9 = arith.constant 0 : index
    %c28 = arith.constant 28 : index
    %14 = vector.load %arg1[%c0_8, %c0_9, %c28] : memref<1x8x1280xf32, #tpu.memory_space<vmem>>, vector<1x8x1024xf32>
    %15 = vector.shape_cast %14 : vector<1x8x1024xf32> to vector<8x1024xf32>
    %c1_i32_10 = arith.constant 1 : i32
    %16 = tpu.dynamic_rotate %15 by %c1_i32_10 dim 1 : vector<8x1024xf32>, i32 -> vector<8x1024xf32>
    %c0_11 = arith.constant 0 : index
    %c24 = arith.constant 24 : index
    %c0_12 = arith.constant 0 : index
    %17 = vector.load %arg8[%c0_11, %c24, %c0_12] : memref<2x72x1024xf32, #tpu.memory_space<vmem>>, vector<1x8x1024xf32>
    %18 = vector.shape_cast %17 : vector<1x8x1024xf32> to vector<8x1024xf32>
    %19 = vector.shape_cast %16 : vector<8x1024xf32> to vector<1x8x1024xf32>
    tpu.vector_store %arg8[%c0_11, %c24, %c0_12], %19 {strides = array<i32>} : memref<2x72x1024xf32, #tpu.memory_space<vmem>>, vector<1x8x1024xf32>,
    %c0_13 = arith.constant 0 : index
    %c32 = arith.constant 32 : index
    %c0_14 = arith.constant 0 : index
    %20 = vector.load %arg8[%c0_13, %c32, %c0_14] : memref<2x72x1024xf32, #tpu.memory_space<vmem>>, vector<1x8x1024xf32>
    %21 = vector.shape_cast %20 : vector<1x8x1024xf32> to vector<8x1024xf32>
    %22 = vector.shape_cast %15 : vector<8x1024xf32> to vector<1x8x1024xf32>
    tpu.vector_store %arg8[%c0_13, %c32, %c0_14], %22 {strides = array<i32>} : memref<2x72x1024xf32, #tpu.memory_space<vmem>>, vector<1x8x1024xf32>,
    %c1023_i32_15 = arith.constant 1023 : i32
    %23 = tpu.dynamic_rotate %15 by %c1023_i32_15 dim 1 : vector<8x1024xf32>, i32 -> vector<8x1024xf32>
    %c0_16 = arith.constant 0 : index
    %c40 = arith.constant 40 : index
    %c0_17 = arith.constant 0 : index
    %24 = vector.load %arg8[%c0_16, %c40, %c0_17] : memref<2x72x1024xf32, #tpu.memory_space<vmem>>, vector<1x8x1024xf32>
    %25 = vector.shape_cast %24 : vector<1x8x1024xf32> to vector<8x1024xf32>
    %26 = vector.shape_cast %23 : vector<8x1024xf32> to vector<1x8x1024xf32>
    tpu.vector_store %arg8[%c0_16, %c40, %c0_17], %26 {strides = array<i32>} : memref<2x72x1024xf32, #tpu.memory_space<vmem>>, vector<1x8x1024xf32>,
    %c0_18 = arith.constant 0 : index
    %c0_19 = arith.constant 0 : index
    %c38 = arith.constant 38 : index
    %27 = vector.load %arg1[%c0_18, %c0_19, %c38] : memref<1x8x1280xf32, #tpu.memory_space<vmem>>, vector<1x8x1024xf32>
    %28 = vector.shape_cast %27 : vector<1x8x1024xf32> to vector<8x1024xf32>
    %c1_i32_20 = arith.constant 1 : i32
    %29 = tpu.dynamic_rotate %28 by %c1_i32_20 dim 1 : vector<8x1024xf32>, i32 -> vector<8x1024xf32>
    %c0_21 = arith.constant 0 : index
    %c48 = arith.constant 48 : index
    %c0_22 = arith.constant 0 : index
    %30 = vector.load %arg8[%c0_21, %c48, %c0_22] : memref<2x72x1024xf32, #tpu.memory_space<vmem>>, vector<1x8x1024xf32>
    %31 = vector.shape_cast %30 : vector<1x8x1024xf32> to vector<8x1024xf32>
    %32 = vector.shape_cast %29 : vector<8x1024xf32> to vector<1x8x1024xf32>
    tpu.vector_store %arg8[%c0_21, %c48, %c0_22], %32 {strides = array<i32>} : memref<2x72x1024xf32, #tpu.memory_space<vmem>>, vector<1x8x1024xf32>,
    %c0_23 = arith.constant 0 : index
    %c56 = arith.constant 56 : index
    %c0_24 = arith.constant 0 : index
    %33 = vector.load %arg8[%c0_23, %c56, %c0_24] : memref<2x72x1024xf32, #tpu.memory_space<vmem>>, vector<1x8x1024xf32>
    %34 = vector.shape_cast %33 : vector<1x8x1024xf32> to vector<8x1024xf32>
    %35 = vector.shape_cast %28 : vector<8x1024xf32> to vector<1x8x1024xf32>
    tpu.vector_store %arg8[%c0_23, %c56, %c0_24], %35 {strides = array<i32>} : memref<2x72x1024xf32, #tpu.memory_space<vmem>>, vector<1x8x1024xf32>,
    %c1023_i32_25 = arith.constant 1023 : i32
    %36 = tpu.dynamic_rotate %28 by %c1023_i32_25 dim 1 : vector<8x1024xf32>, i32 -> vector<8x1024xf32>
    %c0_26 = arith.constant 0 : index
    %c64 = arith.constant 64 : index
    %c0_27 = arith.constant 0 : index
    %37 = vector.load %arg8[%c0_26, %c64, %c0_27] : memref<2x72x1024xf32, #tpu.memory_space<vmem>>, vector<1x8x1024xf32>
    %38 = vector.shape_cast %37 : vector<1x8x1024xf32> to vector<8x1024xf32>
    %39 = vector.shape_cast %36 : vector<8x1024xf32> to vector<1x8x1024xf32>
    tpu.vector_store %arg8[%c0_26, %c64, %c0_27], %39 {strides = array<i32>} : memref<2x72x1024xf32, #tpu.memory_space<vmem>>, vector<1x8x1024xf32>,
    %c0_28 = arith.constant 0 : index
    %c0_29 = arith.constant 0 : index
    %c0_30 = arith.constant 0 : index
    %40 = vector.load %arg2[%c0_28, %c0_29, %c0_30] : memref<3x8x72xf32, #tpu.memory_space<vmem>>, vector<1x8x72xf32>
    %41 = vector.shape_cast %40 : vector<1x8x72xf32> to vector<8x72xf32>
    %c0_31 = arith.constant 0 : index
    %c0_32 = arith.constant 0 : index
    %c0_33 = arith.constant 0 : index
    %42 = vector.load %arg8[%c0_31, %c0_32, %c0_33] : memref<2x72x1024xf32, #tpu.memory_space<vmem>>, vector<1x72x1024xf32>
    %43 = vector.shape_cast %42 : vector<1x72x1024xf32> to vector<72x1024xf32>
    %cst_34 = arith.constant dense<0.000000e+00> : vector<8x1024xf32>
    %44 = tpu.matmul %41, %43, %cst_34 {dimension_numbers = #tpu.dot_dimension_numbers<[1], [0], [0], [1], [0, 0, 1, 1], [], []>} : vector<8x72xf32>, vector<72x1024xf32>, vector<8x1024xf32> -> vector<8x1024xf32>
    %45 = arith.addf %0, %44 : vector<8x1024xf32>
    %c0_35 = arith.constant 0 : index
    %c0_36 = arith.constant 0 : index
    %c118 = arith.constant 118 : index
    %46 = vector.load %arg1[%c0_35, %c0_36, %c118] : memref<1x8x1280xf32, #tpu.memory_space<vmem>>, vector<1x8x1024xf32>
    %47 = vector.shape_cast %46 : vector<1x8x1024xf32> to vector<8x1024xf32>
    %c1_i32_37 = arith.constant 1 : i32
    %48 = tpu.dynamic_rotate %47 by %c1_i32_37 dim 1 : vector<8x1024xf32>, i32 -> vector<8x1024xf32>
    %c1 = arith.constant 1 : index
    %c0_38 = arith.constant 0 : index
    %c0_39 = arith.constant 0 : index
    %49 = vector.load %arg8[%c1, %c0_38, %c0_39] : memref<2x72x1024xf32, #tpu.memory_space<vmem>>, vector<1x8x1024xf32>
    %50 = vector.shape_cast %49 : vector<1x8x1024xf32> to vector<8x1024xf32>
    %51 = vector.shape_cast %48 : vector<8x1024xf32> to vector<1x8x1024xf32>
    tpu.vector_store %arg8[%c1, %c0_38, %c0_39], %51 {strides = array<i32>} : memref<2x72x1024xf32, #tpu.memory_space<vmem>>, vector<1x8x1024xf32>,
    %c1_40 = arith.constant 1 : index
    %c8_41 = arith.constant 8 : index
    %c0_42 = arith.constant 0 : index
    %52 = vector.load %arg8[%c1_40, %c8_41, %c0_42] : memref<2x72x1024xf32, #tpu.memory_space<vmem>>, vector<1x8x1024xf32>
    %53 = vector.shape_cast %52 : vector<1x8x1024xf32> to vector<8x1024xf32>
    %54 = vector.shape_cast %47 : vector<8x1024xf32> to vector<1x8x1024xf32>
    tpu.vector_store %arg8[%c1_40, %c8_41, %c0_42], %54 {strides = array<i32>} : memref<2x72x1024xf32, #tpu.memory_space<vmem>>, vector<1x8x1024xf32>,
    %c1023_i32_43 = arith.constant 1023 : i32
    %55 = tpu.dynamic_rotate %47 by %c1023_i32_43 dim 1 : vector<8x1024xf32>, i32 -> vector<8x1024xf32>
    %c1_44 = arith.constant 1 : index
    %c16_45 = arith.constant 16 : index
    %c0_46 = arith.constant 0 : index
    %56 = vector.load %arg8[%c1_44, %c16_45, %c0_46] : memref<2x72x1024xf32, #tpu.memory_space<vmem>>, vector<1x8x1024xf32>
    %57 = vector.shape_cast %56 : vector<1x8x1024xf32> to vector<8x1024xf32>
    %58 = vector.shape_cast %55 : vector<8x1024xf32> to vector<1x8x1024xf32>
    tpu.vector_store %arg8[%c1_44, %c16_45, %c0_46], %58 {strides = array<i32>} : memref<2x72x1024xf32, #tpu.memory_space<vmem>>, vector<1x8x1024xf32>,
    %c0_47 = arith.constant 0 : index
    %c0_48 = arith.constant 0 : index
    %c128 = arith.constant 128 : index
    %59 = vector.load %arg1[%c0_47, %c0_48, %c128] : memref<1x8x1280xf32, #tpu.memory_space<vmem>>, vector<1x8x1024xf32>
    %60 = vector.shape_cast %59 : vector<1x8x1024xf32> to vector<8x1024xf32>
    %c1_i32_49 = arith.constant 1 : i32
    %61 = tpu.dynamic_rotate %60 by %c1_i32_49 dim 1 : vector<8x1024xf32>, i32 -> vector<8x1024xf32>
    %c1_50 = arith.constant 1 : index
    %c24_51 = arith.constant 24 : index
    %c0_52 = arith.constant 0 : index
    %62 = vector.load %arg8[%c1_50, %c24_51, %c0_52] : memref<2x72x1024xf32, #tpu.memory_space<vmem>>, vector<1x8x1024xf32>
    %63 = vector.shape_cast %62 : vector<1x8x1024xf32> to vector<8x1024xf32>
    %64 = vector.shape_cast %61 : vector<8x1024xf32> to vector<1x8x1024xf32>
    tpu.vector_store %arg8[%c1_50, %c24_51, %c0_52], %64 {strides = array<i32>} : memref<2x72x1024xf32, #tpu.memory_space<vmem>>, vector<1x8x1024xf32>,
    %c1_53 = arith.constant 1 : index
    %c32_54 = arith.constant 32 : index
    %c0_55 = arith.constant 0 : index
    %65 = vector.load %arg8[%c1_53, %c32_54, %c0_55] : memref<2x72x1024xf32, #tpu.memory_space<vmem>>, vector<1x8x1024xf32>
    %66 = vector.shape_cast %65 : vector<1x8x1024xf32> to vector<8x1024xf32>
    %67 = vector.shape_cast %60 : vector<8x1024xf32> to vector<1x8x1024xf32>
    tpu.vector_store %arg8[%c1_53, %c32_54, %c0_55], %67 {strides = array<i32>} : memref<2x72x1024xf32, #tpu.memory_space<vmem>>, vector<1x8x1024xf32>,
    %c1023_i32_56 = arith.constant 1023 : i32
    %68 = tpu.dynamic_rotate %60 by %c1023_i32_56 dim 1 : vector<8x1024xf32>, i32 -> vector<8x1024xf32>
    %c1_57 = arith.constant 1 : index
    %c40_58 = arith.constant 40 : index
    %c0_59 = arith.constant 0 : index
    %69 = vector.load %arg8[%c1_57, %c40_58, %c0_59] : memref<2x72x1024xf32, #tpu.memory_space<vmem>>, vector<1x8x1024xf32>
    %70 = vector.shape_cast %69 : vector<1x8x1024xf32> to vector<8x1024xf32>
    %71 = vector.shape_cast %68 : vector<8x1024xf32> to vector<1x8x1024xf32>
    tpu.vector_store %arg8[%c1_57, %c40_58, %c0_59], %71 {strides = array<i32>} : memref<2x72x1024xf32, #tpu.memory_space<vmem>>, vector<1x8x1024xf32>,
    %c0_60 = arith.constant 0 : index
    %c0_61 = arith.constant 0 : index
    %c138 = arith.constant 138 : index
    %72 = vector.load %arg1[%c0_60, %c0_61, %c138] : memref<1x8x1280xf32, #tpu.memory_space<vmem>>, vector<1x8x1024xf32>
    %73 = vector.shape_cast %72 : vector<1x8x1024xf32> to vector<8x1024xf32>
    %c1_i32_62 = arith.constant 1 : i32
    %74 = tpu.dynamic_rotate %73 by %c1_i32_62 dim 1 : vector<8x1024xf32>, i32 -> vector<8x1024xf32>
    %c1_63 = arith.constant 1 : index
    %c48_64 = arith.constant 48 : index
    %c0_65 = arith.constant 0 : index
    %75 = vector.load %arg8[%c1_63, %c48_64, %c0_65] : memref<2x72x1024xf32, #tpu.memory_space<vmem>>, vector<1x8x1024xf32>
    %76 = vector.shape_cast %75 : vector<1x8x1024xf32> to vector<8x1024xf32>
    %77 = vector.shape_cast %74 : vector<8x1024xf32> to vector<1x8x1024xf32>
    tpu.vector_store %arg8[%c1_63, %c48_64, %c0_65], %77 {strides = array<i32>} : memref<2x72x1024xf32, #tpu.memory_space<vmem>>, vector<1x8x1024xf32>,
    %c1_66 = arith.constant 1 : index
    %c56_67 = arith.constant 56 : index
    %c0_68 = arith.constant 0 : index
    %78 = vector.load %arg8[%c1_66, %c56_67, %c0_68] : memref<2x72x1024xf32, #tpu.memory_space<vmem>>, vector<1x8x1024xf32>
    %79 = vector.shape_cast %78 : vector<1x8x1024xf32> to vector<8x1024xf32>
    %80 = vector.shape_cast %73 : vector<8x1024xf32> to vector<1x8x1024xf32>
    tpu.vector_store %arg8[%c1_66, %c56_67, %c0_68], %80 {strides = array<i32>} : memref<2x72x1024xf32, #tpu.memory_space<vmem>>, vector<1x8x1024xf32>,
    %c1023_i32_69 = arith.constant 1023 : i32
    %81 = tpu.dynamic_rotate %73 by %c1023_i32_69 dim 1 : vector<8x1024xf32>, i32 -> vector<8x1024xf32>
    %c1_70 = arith.constant 1 : index
    %c64_71 = arith.constant 64 : index
    %c0_72 = arith.constant 0 : index
    %82 = vector.load %arg8[%c1_70, %c64_71, %c0_72] : memref<2x72x1024xf32, #tpu.memory_space<vmem>>, vector<1x8x1024xf32>
    %83 = vector.shape_cast %82 : vector<1x8x1024xf32> to vector<8x1024xf32>
    %84 = vector.shape_cast %81 : vector<8x1024xf32> to vector<1x8x1024xf32>
    tpu.vector_store %arg8[%c1_70, %c64_71, %c0_72], %84 {strides = array<i32>} : memref<2x72x1024xf32, #tpu.memory_space<vmem>>, vector<1x8x1024xf32>,
    %c1_73 = arith.constant 1 : index
    %c0_74 = arith.constant 0 : index
    %c0_75 = arith.constant 0 : index
    %85 = vector.load %arg2[%c1_73, %c0_74, %c0_75] : memref<3x8x72xf32, #tpu.memory_space<vmem>>, vector<1x8x72xf32>
    %86 = vector.shape_cast %85 : vector<1x8x72xf32> to vector<8x72xf32>
    %c1_76 = arith.constant 1 : index
    %c0_77 = arith.constant 0 : index
    %c0_78 = arith.constant 0 : index
    %87 = vector.load %arg8[%c1_76, %c0_77, %c0_78] : memref<2x72x1024xf32, #tpu.memory_space<vmem>>, vector<1x72x1024xf32>
    %88 = vector.shape_cast %87 : vector<1x72x1024xf32> to vector<72x1024xf32>
    %cst_79 = arith.constant dense<0.000000e+00> : vector<8x1024xf32>
    %89 = tpu.matmul %86, %88, %cst_79 {dimension_numbers = #tpu.dot_dimension_numbers<[1], [0], [0], [1], [0, 0, 1, 1], [], []>} : vector<8x72xf32>, vector<72x1024xf32>, vector<8x1024xf32> -> vector<8x1024xf32>
    %90 = arith.addf %45, %89 : vector<8x1024xf32>
    %c0_80 = arith.constant 0 : index
    %c0_81 = arith.constant 0 : index
    %c218 = arith.constant 218 : index
    %91 = vector.load %arg1[%c0_80, %c0_81, %c218] : memref<1x8x1280xf32, #tpu.memory_space<vmem>>, vector<1x8x1024xf32>
    %92 = vector.shape_cast %91 : vector<1x8x1024xf32> to vector<8x1024xf32>
    %c1_i32_82 = arith.constant 1 : i32
    %93 = tpu.dynamic_rotate %92 by %c1_i32_82 dim 1 : vector<8x1024xf32>, i32 -> vector<8x1024xf32>
    %c0_83 = arith.constant 0 : index
    %c0_84 = arith.constant 0 : index
    %c0_85 = arith.constant 0 : index
    %94 = vector.load %arg8[%c0_83, %c0_84, %c0_85] : memref<2x72x1024xf32, #tpu.memory_space<vmem>>, vector<1x8x1024xf32>
    %95 = vector.shape_cast %94 : vector<1x8x1024xf32> to vector<8x1024xf32>
    %96 = vector.shape_cast %93 : vector<8x1024xf32> to vector<1x8x1024xf32>
    tpu.vector_store %arg8[%c0_83, %c0_84, %c0_85], %96 {strides = array<i32>} : memref<2x72x1024xf32, #tpu.memory_space<vmem>>, vector<1x8x1024xf32>,
    %c0_86 = arith.constant 0 : index
    %c8_87 = arith.constant 8 : index
    %c0_88 = arith.constant 0 : index
    %97 = vector.load %arg8[%c0_86, %c8_87, %c0_88] : memref<2x72x1024xf32, #tpu.memory_space<vmem>>, vector<1x8x1024xf32>
    %98 = vector.shape_cast %97 : vector<1x8x1024xf32> to vector<8x1024xf32>
    %99 = vector.shape_cast %92 : vector<8x1024xf32> to vector<1x8x1024xf32>
    tpu.vector_store %arg8[%c0_86, %c8_87, %c0_88], %99 {strides = array<i32>} : memref<2x72x1024xf32, #tpu.memory_space<vmem>>, vector<1x8x1024xf32>,
    %c1023_i32_89 = arith.constant 1023 : i32
    %100 = tpu.dynamic_rotate %92 by %c1023_i32_89 dim 1 : vector<8x1024xf32>, i32 -> vector<8x1024xf32>
    %c0_90 = arith.constant 0 : index
    %c16_91 = arith.constant 16 : index
    %c0_92 = arith.constant 0 : index
    %101 = vector.load %arg8[%c0_90, %c16_91, %c0_92] : memref<2x72x1024xf32, #tpu.memory_space<vmem>>, vector<1x8x1024xf32>
    %102 = vector.shape_cast %101 : vector<1x8x1024xf32> to vector<8x1024xf32>
    %103 = vector.shape_cast %100 : vector<8x1024xf32> to vector<1x8x1024xf32>
    tpu.vector_store %arg8[%c0_90, %c16_91, %c0_92], %103 {strides = array<i32>} : memref<2x72x1024xf32, #tpu.memory_space<vmem>>, vector<1x8x1024xf32>,
    %c0_93 = arith.constant 0 : index
    %c0_94 = arith.constant 0 : index
    %c228 = arith.constant 228 : index
    %104 = vector.load %arg1[%c0_93, %c0_94, %c228] : memref<1x8x1280xf32, #tpu.memory_space<vmem>>, vector<1x8x1024xf32>
    %105 = vector.shape_cast %104 : vector<1x8x1024xf32> to vector<8x1024xf32>
    %c1_i32_95 = arith.constant 1 : i32
    %106 = tpu.dynamic_rotate %105 by %c1_i32_95 dim 1 : vector<8x1024xf32>, i32 -> vector<8x1024xf32>
    %c0_96 = arith.constant 0 : index
    %c24_97 = arith.constant 24 : index
    %c0_98 = arith.constant 0 : index
    %107 = vector.load %arg8[%c0_96, %c24_97, %c0_98] : memref<2x72x1024xf32, #tpu.memory_space<vmem>>, vector<1x8x1024xf32>
    %108 = vector.shape_cast %107 : vector<1x8x1024xf32> to vector<8x1024xf32>
    %109 = vector.shape_cast %106 : vector<8x1024xf32> to vector<1x8x1024xf32>
    tpu.vector_store %arg8[%c0_96, %c24_97, %c0_98], %109 {strides = array<i32>} : memref<2x72x1024xf32, #tpu.memory_space<vmem>>, vector<1x8x1024xf32>,
    %c0_99 = arith.constant 0 : index
    %c32_100 = arith.constant 32 : index
    %c0_101 = arith.constant 0 : index
    %110 = vector.load %arg8[%c0_99, %c32_100, %c0_101] : memref<2x72x1024xf32, #tpu.memory_space<vmem>>, vector<1x8x1024xf32>
    %111 = vector.shape_cast %110 : vector<1x8x1024xf32> to vector<8x1024xf32>
    %112 = vector.shape_cast %105 : vector<8x1024xf32> to vector<1x8x1024xf32>
    tpu.vector_store %arg8[%c0_99, %c32_100, %c0_101], %112 {strides = array<i32>} : memref<2x72x1024xf32, #tpu.memory_space<vmem>>, vector<1x8x1024xf32>,
    %c1023_i32_102 = arith.constant 1023 : i32
    %113 = tpu.dynamic_rotate %105 by %c1023_i32_102 dim 1 : vector<8x1024xf32>, i32 -> vector<8x1024xf32>
    %c0_103 = arith.constant 0 : index
    %c40_104 = arith.constant 40 : index
    %c0_105 = arith.constant 0 : index
    %114 = vector.load %arg8[%c0_103, %c40_104, %c0_105] : memref<2x72x1024xf32, #tpu.memory_space<vmem>>, vector<1x8x1024xf32>
    %115 = vector.shape_cast %114 : vector<1x8x1024xf32> to vector<8x1024xf32>
    %116 = vector.shape_cast %113 : vector<8x1024xf32> to vector<1x8x1024xf32>
    tpu.vector_store %arg8[%c0_103, %c40_104, %c0_105], %116 {strides = array<i32>} : memref<2x72x1024xf32, #tpu.memory_space<vmem>>, vector<1x8x1024xf32>,
    %c0_106 = arith.constant 0 : index
    %c0_107 = arith.constant 0 : index
    %c238 = arith.constant 238 : index
    %117 = vector.load %arg1[%c0_106, %c0_107, %c238] : memref<1x8x1280xf32, #tpu.memory_space<vmem>>, vector<1x8x1024xf32>
    %118 = vector.shape_cast %117 : vector<1x8x1024xf32> to vector<8x1024xf32>
    %c1_i32_108 = arith.constant 1 : i32
    %119 = tpu.dynamic_rotate %118 by %c1_i32_108 dim 1 : vector<8x1024xf32>, i32 -> vector<8x1024xf32>
    %c0_109 = arith.constant 0 : index
    %c48_110 = arith.constant 48 : index
    %c0_111 = arith.constant 0 : index
    %120 = vector.load %arg8[%c0_109, %c48_110, %c0_111] : memref<2x72x1024xf32, #tpu.memory_space<vmem>>, vector<1x8x1024xf32>
    %121 = vector.shape_cast %120 : vector<1x8x1024xf32> to vector<8x1024xf32>
    %122 = vector.shape_cast %119 : vector<8x1024xf32> to vector<1x8x1024xf32>
    tpu.vector_store %arg8[%c0_109, %c48_110, %c0_111], %122 {strides = array<i32>} : memref<2x72x1024xf32, #tpu.memory_space<vmem>>, vector<1x8x1024xf32>,
    %c0_112 = arith.constant 0 : index
    %c56_113 = arith.constant 56 : index
    %c0_114 = arith.constant 0 : index
    %123 = vector.load %arg8[%c0_112, %c56_113, %c0_114] : memref<2x72x1024xf32, #tpu.memory_space<vmem>>, vector<1x8x1024xf32>
    %124 = vector.shape_cast %123 : vector<1x8x1024xf32> to vector<8x1024xf32>
    %125 = vector.shape_cast %118 : vector<8x1024xf32> to vector<1x8x1024xf32>
    tpu.vector_store %arg8[%c0_112, %c56_113, %c0_114], %125 {strides = array<i32>} : memref<2x72x1024xf32, #tpu.memory_space<vmem>>, vector<1x8x1024xf32>,
    %c1023_i32_115 = arith.constant 1023 : i32
    %126 = tpu.dynamic_rotate %118 by %c1023_i32_115 dim 1 : vector<8x1024xf32>, i32 -> vector<8x1024xf32>
    %c0_116 = arith.constant 0 : index
    %c64_117 = arith.constant 64 : index
    %c0_118 = arith.constant 0 : index
    %127 = vector.load %arg8[%c0_116, %c64_117, %c0_118] : memref<2x72x1024xf32, #tpu.memory_space<vmem>>, vector<1x8x1024xf32>
    %128 = vector.shape_cast %127 : vector<1x8x1024xf32> to vector<8x1024xf32>
    %129 = vector.shape_cast %126 : vector<8x1024xf32> to vector<1x8x1024xf32>
    tpu.vector_store %arg8[%c0_116, %c64_117, %c0_118], %129 {strides = array<i32>} : memref<2x72x1024xf32, #tpu.memory_space<vmem>>, vector<1x8x1024xf32>,
    %c2 = arith.constant 2 : index
    %c0_119 = arith.constant 0 : index
    %c0_120 = arith.constant 0 : index
    %130 = vector.load %arg2[%c2, %c0_119, %c0_120] : memref<3x8x72xf32, #tpu.memory_space<vmem>>, vector<1x8x72xf32>
    %131 = vector.shape_cast %130 : vector<1x8x72xf32> to vector<8x72xf32>
    %c0_121 = arith.constant 0 : index
    %c0_122 = arith.constant 0 : index
    %c0_123 = arith.constant 0 : index
    %132 = vector.load %arg8[%c0_121, %c0_122, %c0_123] : memref<2x72x1024xf32, #tpu.memory_space<vmem>>, vector<1x72x1024xf32>
    %133 = vector.shape_cast %132 : vector<1x72x1024xf32> to vector<72x1024xf32>
    %cst_124 = arith.constant dense<0.000000e+00> : vector<8x1024xf32>
    %134 = tpu.matmul %131, %133, %cst_124 {dimension_numbers = #tpu.dot_dimension_numbers<[1], [0], [0], [1], [0, 0, 1, 1], [], []>} : vector<8x72xf32>, vector<72x1024xf32>, vector<8x1024xf32> -> vector<8x1024xf32>
    %135 = arith.addf %90, %134 : vector<8x1024xf32>
    %c0_125 = arith.constant 0 : index
    %c0_126 = arith.constant 0 : index
    %136 = vector.load %arg4[%c0_125, %c0_126] : memref<8x1xf32, #tpu.memory_space<vmem>>, vector<8x1xf32>
    %137 = vector.broadcast %136 : vector<8x1xf32> to vector<8x1024xf32>
    %138 = arith.addf %135, %137 : vector<8x1024xf32>
    %cst_127 = arith.constant 0.000000e+00 : f32
    %139 = vector.broadcast %cst_127 : f32 to vector<8x1024xf32>
    %140 = arith.maximumf %138, %139 : vector<8x1024xf32>
    %c0_128 = arith.constant 0 : index
    %c0_129 = arith.constant 0 : index
    %141 = vector.load %arg6[%c0_128, %c0_129] : memref<1x1024xf32, #tpu.memory_space<vmem>>, vector<1x1024xf32>
    %142 = vector.broadcast %141 : vector<1x1024xf32> to vector<8x1024xf32>
    %143 = arith.mulf %140, %142 : vector<8x1024xf32>
    %cst_130 = arith.constant 0.000000e+00 : f32
    %144 = vector.broadcast %cst_130 : f32 to vector<8x128xf32>
    %c0_131 = arith.constant 0 : index
    %c0_132 = arith.constant 0 : index
    %145 = vector.load %arg9[%c0_131, %c0_132] : memref<8x1280xf32, #tpu.memory_space<vmem>>, vector<8x128xf32>
    tpu.vector_store %arg9[%c0_131, %c0_132], %144 {strides = array<i32>} : memref<8x1280xf32, #tpu.memory_space<vmem>>, vector<8x128xf32>,
    %cst_133 = arith.constant 0.000000e+00 : f32
    %146 = vector.broadcast %cst_133 : f32 to vector<8x128xf32>
    %c0_134 = arith.constant 0 : index
    %c1152 = arith.constant 1152 : index
    %147 = vector.load %arg9[%c0_134, %c1152] : memref<8x1280xf32, #tpu.memory_space<vmem>>, vector<8x128xf32>
    tpu.vector_store %arg9[%c0_134, %c1152], %146 {strides = array<i32>} : memref<8x1280xf32, #tpu.memory_space<vmem>>, vector<8x128xf32>,
    %c0_135 = arith.constant 0 : index
    %c128_136 = arith.constant 128 : index
    %148 = vector.load %arg9[%c0_135, %c128_136] : memref<8x1280xf32, #tpu.memory_space<vmem>>, vector<8x1024xf32>
    tpu.vector_store %arg9[%c0_135, %c128_136], %143 {strides = array<i32>} : memref<8x1280xf32, #tpu.memory_space<vmem>>, vector<8x1024xf32>,
    %cst_137 = arith.constant 0.000000e+00 : f32
    %149 = vector.broadcast %cst_137 : f32 to vector<8x1024xf32>
    %c0_138 = arith.constant 0 : index
    %c18_139 = arith.constant 18 : index
    %150 = vector.load %arg9[%c0_138, %c18_139] : memref<8x1280xf32, #tpu.memory_space<vmem>>, vector<8x1024xf32>
    %c1_i32_140 = arith.constant 1 : i32
    %151 = tpu.dynamic_rotate %150 by %c1_i32_140 dim 1 : vector<8x1024xf32>, i32 -> vector<8x1024xf32>
    %c0_141 = arith.constant 0 : index
    %c0_142 = arith.constant 0 : index
    %c0_143 = arith.constant 0 : index
    %152 = vector.load %arg8[%c0_141, %c0_142, %c0_143] : memref<2x72x1024xf32, #tpu.memory_space<vmem>>, vector<1x8x1024xf32>
    %153 = vector.shape_cast %152 : vector<1x8x1024xf32> to vector<8x1024xf32>
    %154 = vector.shape_cast %151 : vector<8x1024xf32> to vector<1x8x1024xf32>
    tpu.vector_store %arg8[%c0_141, %c0_142, %c0_143], %154 {strides = array<i32>} : memref<2x72x1024xf32, #tpu.memory_space<vmem>>, vector<1x8x1024xf32>,
    %c0_144 = arith.constant 0 : index
    %c8_145 = arith.constant 8 : index
    %c0_146 = arith.constant 0 : index
    %155 = vector.load %arg8[%c0_144, %c8_145, %c0_146] : memref<2x72x1024xf32, #tpu.memory_space<vmem>>, vector<1x8x1024xf32>
    %156 = vector.shape_cast %155 : vector<1x8x1024xf32> to vector<8x1024xf32>
    %157 = vector.shape_cast %150 : vector<8x1024xf32> to vector<1x8x1024xf32>
    tpu.vector_store %arg8[%c0_144, %c8_145, %c0_146], %157 {strides = array<i32>} : memref<2x72x1024xf32, #tpu.memory_space<vmem>>, vector<1x8x1024xf32>,
    %c1023_i32_147 = arith.constant 1023 : i32
    %158 = tpu.dynamic_rotate %150 by %c1023_i32_147 dim 1 : vector<8x1024xf32>, i32 -> vector<8x1024xf32>
    %c0_148 = arith.constant 0 : index
    %c16_149 = arith.constant 16 : index
    %c0_150 = arith.constant 0 : index
    %159 = vector.load %arg8[%c0_148, %c16_149, %c0_150] : memref<2x72x1024xf32, #tpu.memory_space<vmem>>, vector<1x8x1024xf32>
    %160 = vector.shape_cast %159 : vector<1x8x1024xf32> to vector<8x1024xf32>
    %161 = vector.shape_cast %158 : vector<8x1024xf32> to vector<1x8x1024xf32>
    tpu.vector_store %arg8[%c0_148, %c16_149, %c0_150], %161 {strides = array<i32>} : memref<2x72x1024xf32, #tpu.memory_space<vmem>>, vector<1x8x1024xf32>,
    %c0_151 = arith.constant 0 : index
    %c28_152 = arith.constant 28 : index
    %162 = vector.load %arg9[%c0_151, %c28_152] : memref<8x1280xf32, #tpu.memory_space<vmem>>, vector<8x1024xf32>
    %c1_i32_153 = arith.constant 1 : i32
    %163 = tpu.dynamic_rotate %162 by %c1_i32_153 dim 1 : vector<8x1024xf32>, i32 -> vector<8x1024xf32>
    %c0_154 = arith.constant 0 : index
    %c24_155 = arith.constant 24 : index
    %c0_156 = arith.constant 0 : index
    %164 = vector.load %arg8[%c0_154, %c24_155, %c0_156] : memref<2x72x1024xf32, #tpu.memory_space<vmem>>, vector<1x8x1024xf32>
    %165 = vector.shape_cast %164 : vector<1x8x1024xf32> to vector<8x1024xf32>
    %166 = vector.shape_cast %163 : vector<8x1024xf32> to vector<1x8x1024xf32>
    tpu.vector_store %arg8[%c0_154, %c24_155, %c0_156], %166 {strides = array<i32>} : memref<2x72x1024xf32, #tpu.memory_space<vmem>>, vector<1x8x1024xf32>,
    %c0_157 = arith.constant 0 : index
    %c32_158 = arith.constant 32 : index
    %c0_159 = arith.constant 0 : index
    %167 = vector.load %arg8[%c0_157, %c32_158, %c0_159] : memref<2x72x1024xf32, #tpu.memory_space<vmem>>, vector<1x8x1024xf32>
    %168 = vector.shape_cast %167 : vector<1x8x1024xf32> to vector<8x1024xf32>
    %169 = vector.shape_cast %162 : vector<8x1024xf32> to vector<1x8x1024xf32>
    tpu.vector_store %arg8[%c0_157, %c32_158, %c0_159], %169 {strides = array<i32>} : memref<2x72x1024xf32, #tpu.memory_space<vmem>>, vector<1x8x1024xf32>,
    %c1023_i32_160 = arith.constant 1023 : i32
    %170 = tpu.dynamic_rotate %162 by %c1023_i32_160 dim 1 : vector<8x1024xf32>, i32 -> vector<8x1024xf32>
    %c0_161 = arith.constant 0 : index
    %c40_162 = arith.constant 40 : index
    %c0_163 = arith.constant 0 : index
    %171 = vector.load %arg8[%c0_161, %c40_162, %c0_163] : memref<2x72x1024xf32, #tpu.memory_space<vmem>>, vector<1x8x1024xf32>
    %172 = vector.shape_cast %171 : vector<1x8x1024xf32> to vector<8x1024xf32>
    %173 = vector.shape_cast %170 : vector<8x1024xf32> to vector<1x8x1024xf32>
    tpu.vector_store %arg8[%c0_161, %c40_162, %c0_163], %173 {strides = array<i32>} : memref<2x72x1024xf32, #tpu.memory_space<vmem>>, vector<1x8x1024xf32>,
    %c0_164 = arith.constant 0 : index
    %c38_165 = arith.constant 38 : index
    %174 = vector.load %arg9[%c0_164, %c38_165] : memref<8x1280xf32, #tpu.memory_space<vmem>>, vector<8x1024xf32>
    %c1_i32_166 = arith.constant 1 : i32
    %175 = tpu.dynamic_rotate %174 by %c1_i32_166 dim 1 : vector<8x1024xf32>, i32 -> vector<8x1024xf32>
    %c0_167 = arith.constant 0 : index
    %c48_168 = arith.constant 48 : index
    %c0_169 = arith.constant 0 : index
    %176 = vector.load %arg8[%c0_167, %c48_168, %c0_169] : memref<2x72x1024xf32, #tpu.memory_space<vmem>>, vector<1x8x1024xf32>
    %177 = vector.shape_cast %176 : vector<1x8x1024xf32> to vector<8x1024xf32>
    %178 = vector.shape_cast %175 : vector<8x1024xf32> to vector<1x8x1024xf32>
    tpu.vector_store %arg8[%c0_167, %c48_168, %c0_169], %178 {strides = array<i32>} : memref<2x72x1024xf32, #tpu.memory_space<vmem>>, vector<1x8x1024xf32>,
    %c0_170 = arith.constant 0 : index
    %c56_171 = arith.constant 56 : index
    %c0_172 = arith.constant 0 : index
    %179 = vector.load %arg8[%c0_170, %c56_171, %c0_172] : memref<2x72x1024xf32, #tpu.memory_space<vmem>>, vector<1x8x1024xf32>
    %180 = vector.shape_cast %179 : vector<1x8x1024xf32> to vector<8x1024xf32>
    %181 = vector.shape_cast %174 : vector<8x1024xf32> to vector<1x8x1024xf32>
    tpu.vector_store %arg8[%c0_170, %c56_171, %c0_172], %181 {strides = array<i32>} : memref<2x72x1024xf32, #tpu.memory_space<vmem>>, vector<1x8x1024xf32>,
    %c1023_i32_173 = arith.constant 1023 : i32
    %182 = tpu.dynamic_rotate %174 by %c1023_i32_173 dim 1 : vector<8x1024xf32>, i32 -> vector<8x1024xf32>
    %c0_174 = arith.constant 0 : index
    %c64_175 = arith.constant 64 : index
    %c0_176 = arith.constant 0 : index
    %183 = vector.load %arg8[%c0_174, %c64_175, %c0_176] : memref<2x72x1024xf32, #tpu.memory_space<vmem>>, vector<1x8x1024xf32>
    %184 = vector.shape_cast %183 : vector<1x8x1024xf32> to vector<8x1024xf32>
    %185 = vector.shape_cast %182 : vector<8x1024xf32> to vector<1x8x1024xf32>
    tpu.vector_store %arg8[%c0_174, %c64_175, %c0_176], %185 {strides = array<i32>} : memref<2x72x1024xf32, #tpu.memory_space<vmem>>, vector<1x8x1024xf32>,
    %c0_177 = arith.constant 0 : index
    %c0_178 = arith.constant 0 : index
    %c0_179 = arith.constant 0 : index
    %186 = vector.load %arg3[%c0_177, %c0_178, %c0_179] : memref<3x8x72xf32, #tpu.memory_space<vmem>>, vector<1x8x72xf32>
    %187 = vector.shape_cast %186 : vector<1x8x72xf32> to vector<8x72xf32>
    %c0_180 = arith.constant 0 : index
    %c0_181 = arith.constant 0 : index
    %c0_182 = arith.constant 0 : index
    %188 = vector.load %arg8[%c0_180, %c0_181, %c0_182] : memref<2x72x1024xf32, #tpu.memory_space<vmem>>, vector<1x72x1024xf32>
    %189 = vector.shape_cast %188 : vector<1x72x1024xf32> to vector<72x1024xf32>
    %cst_183 = arith.constant dense<0.000000e+00> : vector<8x1024xf32>
    %190 = tpu.matmul %187, %189, %cst_183 {dimension_numbers = #tpu.dot_dimension_numbers<[1], [0], [0], [1], [0, 0, 1, 1], [], []>} : vector<8x72xf32>, vector<72x1024xf32>, vector<8x1024xf32> -> vector<8x1024xf32>
    %191 = arith.addf %149, %190 : vector<8x1024xf32>
    %c0_184 = arith.constant 0 : index
    %c118_185 = arith.constant 118 : index
    %192 = vector.load %arg9[%c0_184, %c118_185] : memref<8x1280xf32, #tpu.memory_space<vmem>>, vector<8x1024xf32>
    %c1_i32_186 = arith.constant 1 : i32
    %193 = tpu.dynamic_rotate %192 by %c1_i32_186 dim 1 : vector<8x1024xf32>, i32 -> vector<8x1024xf32>
    %c1_187 = arith.constant 1 : index
    %c0_188 = arith.constant 0 : index
    %c0_189 = arith.constant 0 : index
    %194 = vector.load %arg8[%c1_187, %c0_188, %c0_189] : memref<2x72x1024xf32, #tpu.memory_space<vmem>>, vector<1x8x1024xf32>
    %195 = vector.shape_cast %194 : vector<1x8x1024xf32> to vector<8x1024xf32>
    %196 = vector.shape_cast %193 : vector<8x1024xf32> to vector<1x8x1024xf32>
    tpu.vector_store %arg8[%c1_187, %c0_188, %c0_189], %196 {strides = array<i32>} : memref<2x72x1024xf32, #tpu.memory_space<vmem>>, vector<1x8x1024xf32>,
    %c1_190 = arith.constant 1 : index
    %c8_191 = arith.constant 8 : index
    %c0_192 = arith.constant 0 : index
    %197 = vector.load %arg8[%c1_190, %c8_191, %c0_192] : memref<2x72x1024xf32, #tpu.memory_space<vmem>>, vector<1x8x1024xf32>
    %198 = vector.shape_cast %197 : vector<1x8x1024xf32> to vector<8x1024xf32>
    %199 = vector.shape_cast %192 : vector<8x1024xf32> to vector<1x8x1024xf32>
    tpu.vector_store %arg8[%c1_190, %c8_191, %c0_192], %199 {strides = array<i32>} : memref<2x72x1024xf32, #tpu.memory_space<vmem>>, vector<1x8x1024xf32>,
    %c1023_i32_193 = arith.constant 1023 : i32
    %200 = tpu.dynamic_rotate %192 by %c1023_i32_193 dim 1 : vector<8x1024xf32>, i32 -> vector<8x1024xf32>
    %c1_194 = arith.constant 1 : index
    %c16_195 = arith.constant 16 : index
    %c0_196 = arith.constant 0 : index
    %201 = vector.load %arg8[%c1_194, %c16_195, %c0_196] : memref<2x72x1024xf32, #tpu.memory_space<vmem>>, vector<1x8x1024xf32>
    %202 = vector.shape_cast %201 : vector<1x8x1024xf32> to vector<8x1024xf32>
    %203 = vector.shape_cast %200 : vector<8x1024xf32> to vector<1x8x1024xf32>
    tpu.vector_store %arg8[%c1_194, %c16_195, %c0_196], %203 {strides = array<i32>} : memref<2x72x1024xf32, #tpu.memory_space<vmem>>, vector<1x8x1024xf32>,
    %c0_197 = arith.constant 0 : index
    %c128_198 = arith.constant 128 : index
    %204 = vector.load %arg9[%c0_197, %c128_198] : memref<8x1280xf32, #tpu.memory_space<vmem>>, vector<8x1024xf32>
    %c1_i32_199 = arith.constant 1 : i32
    %205 = tpu.dynamic_rotate %204 by %c1_i32_199 dim 1 : vector<8x1024xf32>, i32 -> vector<8x1024xf32>
    %c1_200 = arith.constant 1 : index
    %c24_201 = arith.constant 24 : index
    %c0_202 = arith.constant 0 : index
    %206 = vector.load %arg8[%c1_200, %c24_201, %c0_202] : memref<2x72x1024xf32, #tpu.memory_space<vmem>>, vector<1x8x1024xf32>
    %207 = vector.shape_cast %206 : vector<1x8x1024xf32> to vector<8x1024xf32>
    %208 = vector.shape_cast %205 : vector<8x1024xf32> to vector<1x8x1024xf32>
    tpu.vector_store %arg8[%c1_200, %c24_201, %c0_202], %208 {strides = array<i32>} : memref<2x72x1024xf32, #tpu.memory_space<vmem>>, vector<1x8x1024xf32>,
    %c1_203 = arith.constant 1 : index
    %c32_204 = arith.constant 32 : index
    %c0_205 = arith.constant 0 : index
    %209 = vector.load %arg8[%c1_203, %c32_204, %c0_205] : memref<2x72x1024xf32, #tpu.memory_space<vmem>>, vector<1x8x1024xf32>
    %210 = vector.shape_cast %209 : vector<1x8x1024xf32> to vector<8x1024xf32>
    %211 = vector.shape_cast %204 : vector<8x1024xf32> to vector<1x8x1024xf32>
    tpu.vector_store %arg8[%c1_203, %c32_204, %c0_205], %211 {strides = array<i32>} : memref<2x72x1024xf32, #tpu.memory_space<vmem>>, vector<1x8x1024xf32>,
    %c1023_i32_206 = arith.constant 1023 : i32
    %212 = tpu.dynamic_rotate %204 by %c1023_i32_206 dim 1 : vector<8x1024xf32>, i32 -> vector<8x1024xf32>
    %c1_207 = arith.constant 1 : index
    %c40_208 = arith.constant 40 : index
    %c0_209 = arith.constant 0 : index
    %213 = vector.load %arg8[%c1_207, %c40_208, %c0_209] : memref<2x72x1024xf32, #tpu.memory_space<vmem>>, vector<1x8x1024xf32>
    %214 = vector.shape_cast %213 : vector<1x8x1024xf32> to vector<8x1024xf32>
    %215 = vector.shape_cast %212 : vector<8x1024xf32> to vector<1x8x1024xf32>
    tpu.vector_store %arg8[%c1_207, %c40_208, %c0_209], %215 {strides = array<i32>} : memref<2x72x1024xf32, #tpu.memory_space<vmem>>, vector<1x8x1024xf32>,
    %c0_210 = arith.constant 0 : index
    %c138_211 = arith.constant 138 : index
    %216 = vector.load %arg9[%c0_210, %c138_211] : memref<8x1280xf32, #tpu.memory_space<vmem>>, vector<8x1024xf32>
    %c1_i32_212 = arith.constant 1 : i32
    %217 = tpu.dynamic_rotate %216 by %c1_i32_212 dim 1 : vector<8x1024xf32>, i32 -> vector<8x1024xf32>
    %c1_213 = arith.constant 1 : index
    %c48_214 = arith.constant 48 : index
    %c0_215 = arith.constant 0 : index
    %218 = vector.load %arg8[%c1_213, %c48_214, %c0_215] : memref<2x72x1024xf32, #tpu.memory_space<vmem>>, vector<1x8x1024xf32>
    %219 = vector.shape_cast %218 : vector<1x8x1024xf32> to vector<8x1024xf32>
    %220 = vector.shape_cast %217 : vector<8x1024xf32> to vector<1x8x1024xf32>
    tpu.vector_store %arg8[%c1_213, %c48_214, %c0_215], %220 {strides = array<i32>} : memref<2x72x1024xf32, #tpu.memory_space<vmem>>, vector<1x8x1024xf32>,
    %c1_216 = arith.constant 1 : index
    %c56_217 = arith.constant 56 : index
    %c0_218 = arith.constant 0 : index
    %221 = vector.load %arg8[%c1_216, %c56_217, %c0_218] : memref<2x72x1024xf32, #tpu.memory_space<vmem>>, vector<1x8x1024xf32>
    %222 = vector.shape_cast %221 : vector<1x8x1024xf32> to vector<8x1024xf32>
    %223 = vector.shape_cast %216 : vector<8x1024xf32> to vector<1x8x1024xf32>
    tpu.vector_store %arg8[%c1_216, %c56_217, %c0_218], %223 {strides = array<i32>} : memref<2x72x1024xf32, #tpu.memory_space<vmem>>, vector<1x8x1024xf32>,
    %c1023_i32_219 = arith.constant 1023 : i32
    %224 = tpu.dynamic_rotate %216 by %c1023_i32_219 dim 1 : vector<8x1024xf32>, i32 -> vector<8x1024xf32>
    %c1_220 = arith.constant 1 : index
    %c64_221 = arith.constant 64 : index
    %c0_222 = arith.constant 0 : index
    %225 = vector.load %arg8[%c1_220, %c64_221, %c0_222] : memref<2x72x1024xf32, #tpu.memory_space<vmem>>, vector<1x8x1024xf32>
    %226 = vector.shape_cast %225 : vector<1x8x1024xf32> to vector<8x1024xf32>
    %227 = vector.shape_cast %224 : vector<8x1024xf32> to vector<1x8x1024xf32>
    tpu.vector_store %arg8[%c1_220, %c64_221, %c0_222], %227 {strides = array<i32>} : memref<2x72x1024xf32, #tpu.memory_space<vmem>>, vector<1x8x1024xf32>,
    %c1_223 = arith.constant 1 : index
    %c0_224 = arith.constant 0 : index
    %c0_225 = arith.constant 0 : index
    %228 = vector.load %arg3[%c1_223, %c0_224, %c0_225] : memref<3x8x72xf32, #tpu.memory_space<vmem>>, vector<1x8x72xf32>
    %229 = vector.shape_cast %228 : vector<1x8x72xf32> to vector<8x72xf32>
    %c1_226 = arith.constant 1 : index
    %c0_227 = arith.constant 0 : index
    %c0_228 = arith.constant 0 : index
    %230 = vector.load %arg8[%c1_226, %c0_227, %c0_228] : memref<2x72x1024xf32, #tpu.memory_space<vmem>>, vector<1x72x1024xf32>
    %231 = vector.shape_cast %230 : vector<1x72x1024xf32> to vector<72x1024xf32>
    %cst_229 = arith.constant dense<0.000000e+00> : vector<8x1024xf32>
    %232 = tpu.matmul %229, %231, %cst_229 {dimension_numbers = #tpu.dot_dimension_numbers<[1], [0], [0], [1], [0, 0, 1, 1], [], []>} : vector<8x72xf32>, vector<72x1024xf32>, vector<8x1024xf32> -> vector<8x1024xf32>
    %233 = arith.addf %191, %232 : vector<8x1024xf32>
    %c0_230 = arith.constant 0 : index
    %c218_231 = arith.constant 218 : index
    %234 = vector.load %arg9[%c0_230, %c218_231] : memref<8x1280xf32, #tpu.memory_space<vmem>>, vector<8x1024xf32>
    %c1_i32_232 = arith.constant 1 : i32
    %235 = tpu.dynamic_rotate %234 by %c1_i32_232 dim 1 : vector<8x1024xf32>, i32 -> vector<8x1024xf32>
    %c0_233 = arith.constant 0 : index
    %c0_234 = arith.constant 0 : index
    %c0_235 = arith.constant 0 : index
    %236 = vector.load %arg8[%c0_233, %c0_234, %c0_235] : memref<2x72x1024xf32, #tpu.memory_space<vmem>>, vector<1x8x1024xf32>
    %237 = vector.shape_cast %236 : vector<1x8x1024xf32> to vector<8x1024xf32>
    %238 = vector.shape_cast %235 : vector<8x1024xf32> to vector<1x8x1024xf32>
    tpu.vector_store %arg8[%c0_233, %c0_234, %c0_235], %238 {strides = array<i32>} : memref<2x72x1024xf32, #tpu.memory_space<vmem>>, vector<1x8x1024xf32>,
    %c0_236 = arith.constant 0 : index
    %c8_237 = arith.constant 8 : index
    %c0_238 = arith.constant 0 : index
    %239 = vector.load %arg8[%c0_236, %c8_237, %c0_238] : memref<2x72x1024xf32, #tpu.memory_space<vmem>>, vector<1x8x1024xf32>
    %240 = vector.shape_cast %239 : vector<1x8x1024xf32> to vector<8x1024xf32>
    %241 = vector.shape_cast %234 : vector<8x1024xf32> to vector<1x8x1024xf32>
    tpu.vector_store %arg8[%c0_236, %c8_237, %c0_238], %241 {strides = array<i32>} : memref<2x72x1024xf32, #tpu.memory_space<vmem>>, vector<1x8x1024xf32>,
    %c1023_i32_239 = arith.constant 1023 : i32
    %242 = tpu.dynamic_rotate %234 by %c1023_i32_239 dim 1 : vector<8x1024xf32>, i32 -> vector<8x1024xf32>
    %c0_240 = arith.constant 0 : index
    %c16_241 = arith.constant 16 : index
    %c0_242 = arith.constant 0 : index
    %243 = vector.load %arg8[%c0_240, %c16_241, %c0_242] : memref<2x72x1024xf32, #tpu.memory_space<vmem>>, vector<1x8x1024xf32>
    %244 = vector.shape_cast %243 : vector<1x8x1024xf32> to vector<8x1024xf32>
    %245 = vector.shape_cast %242 : vector<8x1024xf32> to vector<1x8x1024xf32>
    tpu.vector_store %arg8[%c0_240, %c16_241, %c0_242], %245 {strides = array<i32>} : memref<2x72x1024xf32, #tpu.memory_space<vmem>>, vector<1x8x1024xf32>,
    %c0_243 = arith.constant 0 : index
    %c228_244 = arith.constant 228 : index
    %246 = vector.load %arg9[%c0_243, %c228_244] : memref<8x1280xf32, #tpu.memory_space<vmem>>, vector<8x1024xf32>
    %c1_i32_245 = arith.constant 1 : i32
    %247 = tpu.dynamic_rotate %246 by %c1_i32_245 dim 1 : vector<8x1024xf32>, i32 -> vector<8x1024xf32>
    %c0_246 = arith.constant 0 : index
    %c24_247 = arith.constant 24 : index
    %c0_248 = arith.constant 0 : index
    %248 = vector.load %arg8[%c0_246, %c24_247, %c0_248] : memref<2x72x1024xf32, #tpu.memory_space<vmem>>, vector<1x8x1024xf32>
    %249 = vector.shape_cast %248 : vector<1x8x1024xf32> to vector<8x1024xf32>
    %250 = vector.shape_cast %247 : vector<8x1024xf32> to vector<1x8x1024xf32>
    tpu.vector_store %arg8[%c0_246, %c24_247, %c0_248], %250 {strides = array<i32>} : memref<2x72x1024xf32, #tpu.memory_space<vmem>>, vector<1x8x1024xf32>,
    %c0_249 = arith.constant 0 : index
    %c32_250 = arith.constant 32 : index
    %c0_251 = arith.constant 0 : index
    %251 = vector.load %arg8[%c0_249, %c32_250, %c0_251] : memref<2x72x1024xf32, #tpu.memory_space<vmem>>, vector<1x8x1024xf32>
    %252 = vector.shape_cast %251 : vector<1x8x1024xf32> to vector<8x1024xf32>
    %253 = vector.shape_cast %246 : vector<8x1024xf32> to vector<1x8x1024xf32>
    tpu.vector_store %arg8[%c0_249, %c32_250, %c0_251], %253 {strides = array<i32>} : memref<2x72x1024xf32, #tpu.memory_space<vmem>>, vector<1x8x1024xf32>,
    %c1023_i32_252 = arith.constant 1023 : i32
    %254 = tpu.dynamic_rotate %246 by %c1023_i32_252 dim 1 : vector<8x1024xf32>, i32 -> vector<8x1024xf32>
    %c0_253 = arith.constant 0 : index
    %c40_254 = arith.constant 40 : index
    %c0_255 = arith.constant 0 : index
    %255 = vector.load %arg8[%c0_253, %c40_254, %c0_255] : memref<2x72x1024xf32, #tpu.memory_space<vmem>>, vector<1x8x1024xf32>
    %256 = vector.shape_cast %255 : vector<1x8x1024xf32> to vector<8x1024xf32>
    %257 = vector.shape_cast %254 : vector<8x1024xf32> to vector<1x8x1024xf32>
    tpu.vector_store %arg8[%c0_253, %c40_254, %c0_255], %257 {strides = array<i32>} : memref<2x72x1024xf32, #tpu.memory_space<vmem>>, vector<1x8x1024xf32>,
    %c0_256 = arith.constant 0 : index
    %c238_257 = arith.constant 238 : index
    %258 = vector.load %arg9[%c0_256, %c238_257] : memref<8x1280xf32, #tpu.memory_space<vmem>>, vector<8x1024xf32>
    %c1_i32_258 = arith.constant 1 : i32
    %259 = tpu.dynamic_rotate %258 by %c1_i32_258 dim 1 : vector<8x1024xf32>, i32 -> vector<8x1024xf32>
    %c0_259 = arith.constant 0 : index
    %c48_260 = arith.constant 48 : index
    %c0_261 = arith.constant 0 : index
    %260 = vector.load %arg8[%c0_259, %c48_260, %c0_261] : memref<2x72x1024xf32, #tpu.memory_space<vmem>>, vector<1x8x1024xf32>
    %261 = vector.shape_cast %260 : vector<1x8x1024xf32> to vector<8x1024xf32>
    %262 = vector.shape_cast %259 : vector<8x1024xf32> to vector<1x8x1024xf32>
    tpu.vector_store %arg8[%c0_259, %c48_260, %c0_261], %262 {strides = array<i32>} : memref<2x72x1024xf32, #tpu.memory_space<vmem>>, vector<1x8x1024xf32>,
    %c0_262 = arith.constant 0 : index
    %c56_263 = arith.constant 56 : index
    %c0_264 = arith.constant 0 : index
    %263 = vector.load %arg8[%c0_262, %c56_263, %c0_264] : memref<2x72x1024xf32, #tpu.memory_space<vmem>>, vector<1x8x1024xf32>
    %264 = vector.shape_cast %263 : vector<1x8x1024xf32> to vector<8x1024xf32>
    %265 = vector.shape_cast %258 : vector<8x1024xf32> to vector<1x8x1024xf32>
    tpu.vector_store %arg8[%c0_262, %c56_263, %c0_264], %265 {strides = array<i32>} : memref<2x72x1024xf32, #tpu.memory_space<vmem>>, vector<1x8x1024xf32>,
    %c1023_i32_265 = arith.constant 1023 : i32
    %266 = tpu.dynamic_rotate %258 by %c1023_i32_265 dim 1 : vector<8x1024xf32>, i32 -> vector<8x1024xf32>
    %c0_266 = arith.constant 0 : index
    %c64_267 = arith.constant 64 : index
    %c0_268 = arith.constant 0 : index
    %267 = vector.load %arg8[%c0_266, %c64_267, %c0_268] : memref<2x72x1024xf32, #tpu.memory_space<vmem>>, vector<1x8x1024xf32>
    %268 = vector.shape_cast %267 : vector<1x8x1024xf32> to vector<8x1024xf32>
    %269 = vector.shape_cast %266 : vector<8x1024xf32> to vector<1x8x1024xf32>
    tpu.vector_store %arg8[%c0_266, %c64_267, %c0_268], %269 {strides = array<i32>} : memref<2x72x1024xf32, #tpu.memory_space<vmem>>, vector<1x8x1024xf32>,
    %c2_269 = arith.constant 2 : index
    %c0_270 = arith.constant 0 : index
    %c0_271 = arith.constant 0 : index
    %270 = vector.load %arg3[%c2_269, %c0_270, %c0_271] : memref<3x8x72xf32, #tpu.memory_space<vmem>>, vector<1x8x72xf32>
    %271 = vector.shape_cast %270 : vector<1x8x72xf32> to vector<8x72xf32>
    %c0_272 = arith.constant 0 : index
    %c0_273 = arith.constant 0 : index
    %c0_274 = arith.constant 0 : index
    %272 = vector.load %arg8[%c0_272, %c0_273, %c0_274] : memref<2x72x1024xf32, #tpu.memory_space<vmem>>, vector<1x72x1024xf32>
    %273 = vector.shape_cast %272 : vector<1x72x1024xf32> to vector<72x1024xf32>
    %cst_275 = arith.constant dense<0.000000e+00> : vector<8x1024xf32>
    %274 = tpu.matmul %271, %273, %cst_275 {dimension_numbers = #tpu.dot_dimension_numbers<[1], [0], [0], [1], [0, 0, 1, 1], [], []>} : vector<8x72xf32>, vector<72x1024xf32>, vector<8x1024xf32> -> vector<8x1024xf32>
    %275 = arith.addf %233, %274 : vector<8x1024xf32>
    %c0_276 = arith.constant 0 : index
    %c0_277 = arith.constant 0 : index
    %276 = vector.load %arg5[%c0_276, %c0_277] : memref<8x1xf32, #tpu.memory_space<vmem>>, vector<8x1xf32>
    %277 = vector.broadcast %276 : vector<8x1xf32> to vector<8x1024xf32>
    %278 = arith.addf %275, %277 : vector<8x1024xf32>
    %c0_278 = arith.constant 0 : index
    %c0_279 = arith.constant 0 : index
    %c128_280 = arith.constant 128 : index
    %279 = vector.load %arg1[%c0_278, %c0_279, %c128_280] : memref<1x8x1280xf32, #tpu.memory_space<vmem>>, vector<1x8x1024xf32>
    %280 = vector.shape_cast %279 : vector<1x8x1024xf32> to vector<8x1024xf32>
    %281 = arith.addf %280, %278 : vector<8x1024xf32>
    %cst_281 = arith.constant 0.000000e+00 : f32
    %282 = vector.broadcast %cst_281 : f32 to vector<8x1024xf32>
    %283 = arith.maximumf %281, %282 : vector<8x1024xf32>
    %c0_282 = arith.constant 0 : index
    %c0_283 = arith.constant 0 : index
    %c0_284 = arith.constant 0 : index
    %284 = vector.load %arg7[%c0_282, %c0_283, %c0_284] : memref<1x8x1024xf32, #tpu.memory_space<vmem>>, vector<1x8x1024xf32>
    %285 = vector.shape_cast %284 : vector<1x8x1024xf32> to vector<8x1024xf32>
    %286 = vector.shape_cast %283 : vector<8x1024xf32> to vector<1x8x1024xf32>
    tpu.vector_store %arg7[%c0_282, %c0_283, %c0_284], %286 {strides = array<i32>} : memref<1x8x1024xf32, #tpu.memory_space<vmem>>, vector<1x8x1024xf32>,
    return
  }
  func.func @transform_0(%arg0: i32) -> (i32, i32, i32) {
    %c0_i32 = arith.constant 0 : i32
    %c0_i32_0 = arith.constant 0 : i32
    %c0_i32_1 = arith.constant 0 : i32
    return %arg0, %c0_i32, %c0_i32_0 : i32, i32, i32
  }
  func.func @transform_1(%arg0: i32) -> (i32, i32, i32) {
    %c0_i32 = arith.constant 0 : i32
    %c0_i32_0 = arith.constant 0 : i32
    %c0_i32_1 = arith.constant 0 : i32
    %c0_i32_2 = arith.constant 0 : i32
    return %c0_i32, %c0_i32_0, %c0_i32_1 : i32, i32, i32
  }
  func.func @transform_2(%arg0: i32) -> (i32, i32, i32) {
    %c0_i32 = arith.constant 0 : i32
    %c0_i32_0 = arith.constant 0 : i32
    %c0_i32_1 = arith.constant 0 : i32
    %c0_i32_2 = arith.constant 0 : i32
    return %c0_i32, %c0_i32_0, %c0_i32_1 : i32, i32, i32
  }
  func.func @transform_3(%arg0: i32) -> (i32, i32) {
    %c0_i32 = arith.constant 0 : i32
    %c0_i32_0 = arith.constant 0 : i32
    %c0_i32_1 = arith.constant 0 : i32
    return %c0_i32, %c0_i32_0 : i32, i32
  }
  func.func @transform_4(%arg0: i32) -> (i32, i32) {
    %c0_i32 = arith.constant 0 : i32
    %c0_i32_0 = arith.constant 0 : i32
    %c0_i32_1 = arith.constant 0 : i32
    return %c0_i32, %c0_i32_0 : i32, i32
  }
  func.func @transform_5(%arg0: i32) -> (i32, i32) {
    %c0_i32 = arith.constant 0 : i32
    %c0_i32_0 = arith.constant 0 : i32
    %c0_i32_1 = arith.constant 0 : i32
    return %c0_i32, %c0_i32_0 : i32, i32
  }
  func.func @transform_6(%arg0: i32) -> (i32, i32, i32) {
    %c0_i32 = arith.constant 0 : i32
    %c0_i32_0 = arith.constant 0 : i32
    %c0_i32_1 = arith.constant 0 : i32
    return %arg0, %c0_i32, %c0_i32_0 : i32, i32, i32
  }
}

</mosaic_0001>

<bundles_post_ra>
// kernel: tpu_custom_call.1
= control target key start
LH: loop header
LB: loop body
LE: loop exit
PB: predicated region body
PF: predicated region fallthrough
CT: control target
= control target key end

     0   :  { %s8399_s0 = inlined_call_operand.hbm [shape: f32[2,8,1280], index: 0, kind: input, shape index: {}]   ;;  %s8400_s1 = inlined_call_operand.hbm [shape: f32[3,8,72], index: 1, kind: input, shape index: {}]   ;;  %s8401_s2 = inlined_call_operand.hbm [shape: f32[3,8,72], index: 2, kind: input, shape index: {}]   ;;  %s8402_s3 = inlined_call_operand.vmem [shape: f32[8,1], index: 3, kind: input, shape index: {}]   ;;  %s8403_s4 = inlined_call_operand.vmem [shape: f32[8,1], index: 4, kind: input, shape index: {}]   ;;  %s8404_s5 = inlined_call_operand.vmem [shape: f32[1,1024], index: 5, kind: input, shape index: {}]   ;;  %s8405_s6 = inlined_call_operand.hbm [shape: f32[2,8,1024], index: 6, kind: output, shape index: {}]  }
   0x1   :  { %8466 = sst [smem:[#allocation61_spill]] %s8400_s1 }
   0x2   :  { %11 = vsyncpa [#allocation5], 0 }
   0x3   :  { %13 = vsyncpa [#allocation5 + $0x1], 0 }
   0x4   :  { %14 = vsyncpa [#allocation8], 0 }
   0x5   :  { %15 = vsyncpa [#allocation6], 0 }
   0x6   :  { %17 = vsyncpa [#allocation6 + $0x1], 0  ;;  %s5195_s21 = smov 0   ;;  %s5197_s22 = smov 0  }
   0x7   :  { %s5199_s23 = smov 0   ;;  %s5201_s24 = smov 0  }
   0x8 LB: > { %s5216_s25 = sadd.s32 4294967295, %s5140_s24   ;;  %s4867_s26 = sadd.s32 4294967294, %s5140_s24   ;;  %s5140_s24 = sphi %s5201_s24, %s8602_s24   ;;  %s5136_s23 = sphi %s5199_s23, %s8601_s23   ;;  %s5132_s22 = sphi %s5197_s22, %s8600_s22   ;;  %s5128_s21 = sphi %s5195_s21, %s8599_s21  }
   0x9   : > { %p43_p0 = scmp.ne.s32.totalorder %s5132_s22, %s5128_s21  ;;  %p8406_p1 = scmp.eq.s32.totalorder %s5216_s25, 0 }
   0xa   : > { %p178_p3 = scmp.eq.s32.totalorder %s4867_s26, 1  ;;  %p4868_p5 = scmp.ge.s32.totalorder %s5140_s24, 1 }
   0xb   : > { %p5225_p4 = por %p8406_p1, %p43_p0  ;;  %p185_p7 = scmp.lt.s32.totalorder %s5140_s24, 3 }
   0xc   : > { %p5230_p6 = por %p178_p3, %p43_p0  ;;  %s5142_s30 = smov [#allocation7]  }
   0xd   : > { %s8467_s27 = scalar_select %p5225_p4, 1, 0 }
   0xe   : > { %s8468_s28 = scalar_select %p5230_p6, 1, 0 }
   0xf   : > { %p5235_p8 = pnand %p4868_p5, %p185_p7  ;;  %s197_s7 = sshll.u32 %s5142_s30, 4  ;;  %s198_s7 = int_to_ptr.vmem [resolvable:$true] %s197_s7 }
  0x10   : > { %s5143_s9 = smov [#allocation9]   ;;  %s5003_s11 = scalar_lea.vmem %s198_s7, 384 }
  0x11   : > { %s8469_s29 = scalar_select %p5235_p8, 1, 0 }
  0x12   : > { %p4922_p9 = pneg %p5235_p8  ;;  %s210_s10 = sshll.u32 %s5143_s9, 4  ;;  %s211_s10 = int_to_ptr.vmem [resolvable:$true] %s210_s10 }
  0x13   : > { %p5004_p13 = scmp.ne.s32.totalorder %s198_s7, %s5003_s11  ;;  %p5011_p5 = scmp.lt.s32.totalorder %s198_s7, %s198_s7 }
  0x14   : > { %p5244_p11 = pnand %p4922_p9, %p8406_p1  ;;  %p5012_p7 = scmp.lt.s32.totalorder %s5003_s11, %s5003_s11 }
  0x16   : > { %p4994_p12 = pneg %p5244_p11  ;;  %p5013_p10 = por %p5012_p7, %p5011_p5 }
  0x18   : > { %p5006_p0 = pnand %p5004_p13, %p4994_p12 }
  0x1a   : > { %p5007_p3 = pneg %p5006_p0 }
  0x1c   : > { %p5014_p9 = pnand %p5013_p10, %p5007_p3 }
  0x1e   : > { %5017 = shalt.err (!%p5014_p9)
}
  0x1f   : > { %s5144_s12 = smov 128   ;;  %s5145_s13 = smov 8  }
  0x20   : > { %s8471_s1 = sld [smem:[#allocation61_spill]]  ;;  %s5029_s16 = scalar_lea.vmem %s211_s10, 384 }
  0x21   : > { %p5030_p1 = scmp.ne.s32.totalorder %s211_s10, %s5029_s16  ;;  %p5037_p2 = scmp.lt.s32.totalorder %s211_s10, %s211_s10 }
  0x22   : > { %p5038_p6 = scmp.lt.s32.totalorder %s5029_s16, %s5029_s16 }
  0x23   : > { %p5032_p13 = pnand %p5030_p1, %p4994_p12 }
  0x24   : > { %p5039_p5 = por %p5038_p6, %p5037_p2 }
  0x25   : > { %p5033_p0 = pneg %p5032_p13 }
  0x26   : > { %4925 = dma.hbm_to_vmem [thread:$0]  (!%p5244_p11), %s8471_s1, 384, %s198_s7, [#allocation8], %s5144_s12, %s5144_s12, %s5145_s13  }
  0x27   : > { %p5040_p10 = pnand %p5039_p5, %p5033_p0 }
  0x29   : > { %5043 = shalt.err (!%p5040_p10)
}
  0x2a   : > { %4928 = dma.hbm_to_vmem [thread:$0]  (!%p5244_p11), %s8401_s2, 384, %s211_s10, [#allocation8], %s5144_s12, %s5144_s12, %s5145_s13  }
  0x2b   : > { %s5267_s19 = sadd.s32 1, %s5140_s24   ;;  %s30_s20 = sadd.s32 1, %s5136_s23 }
  0x2c   : > { %s27_s26 = ssub.s32 %s5140_s24, %s5267_s19  ;;  %p37_p1 = scmp.ne.s32.totalorder %s5136_s23, %s5132_s22 }
  0x2d   : > { %p28_p2 = scmp.eq.s32.totalorder %s27_s26, 0  ;;  %p38_p6 = scmp.eq.s32.totalorder %s5140_s24, 0 }
  0x2e   : > { %p8472_p12 = scmp.eq.s32.totalorder %s5216_s25, 1  ;;  %p4939_p7 = scmp.lt.s32.totalorder %s5140_s24, 2 }
  0x2f   : > { %s5283_s7 = scalar_select %p28_p2, %s5136_s23, %s30_s20  }
  0x30   : > { %p5277_p3 = por %p8472_p12, %p37_p1  ;;  %p39_p9 = por %p38_p6, %p37_p1 }
  0x31   : > { %s233_s8 = sand.u32 1, %s5136_s23   ;;  %s4908_s10 = smul.u32 1280, %s5140_s24 }
  0x32   : > { %s8473_s30 = scalar_select %p5277_p3, 1, 0 }
  0x33   : > { %s4907_s9 = smul.u32 80, %s233_s8  ;;  %p5287_p11 = pnand %p4939_p7, %p39_p9 }
  0x34   : > { %s5294_s14 = scalar_lea.hbm %s8399_s0, %s4908_s10  ;;  %s234_s17 = scalar_lea.sflag [#allocation5], %s233_s8 }
  0x35   : > { %s237_s15 = scalar_lea.vmem [#allocation4], %s4907_s9  ;;  %s5044_s18 = scalar_lea.hbm %s5294_s14, 1280 }
  0x36   : > { %s245_s16 = sshll.u32 %s237_s15, 4  ;;  %p5045_p13 = scmp.ne.s32.totalorder %s5294_s14, %s5044_s18  ;;  %s246_s16 = int_to_ptr.vmem [resolvable:$true] %s245_s16 }
  0x37   : > { %p5046_p0 = pneg %p5287_p11  ;;  %s5049_s12 = scalar_lea.hbm %s8399_s0, 2560 }
  0x38   : > { %p5050_p1 = scmp.lt.s32.totalorder %s5294_s14, %s8399_s0  ;;  %p5051_p2 = scmp.lt.s32.totalorder %s5049_s12, %s5044_s18 }
  0x39   : > { %p5047_p5 = pnand %p5046_p0, %p5045_p13 }
  0x3a   : > { %p5052_p6 = por %p5051_p2, %p5050_p1 }
  0x3b   : > { %p5048_p10 = pneg %p5047_p5 }
  0x3d   : > { %p5053_p12 = pnand %p5052_p6, %p5048_p10 }
  0x3f   : > { %5056 = shalt.err (!%p5053_p12)
}
  0x40   : > { %s5057_s9 = scalar_lea.vmem %s246_s16, 1280  ;;  %s5146_s8 = smov [#allocation4]  }
  0x41   : > { %p5058_p7 = scmp.ne.s32.totalorder %s246_s16, %s5057_s9  ;;  %s5062_s15 = sshll.u32 %s5146_s8, 4  ;;  %s5063_s15 = int_to_ptr.vmem [resolvable:$false] %s5062_s15 }
  0x42   : > { %s5064_s1 = scalar_lea.vmem %s5063_s15, 2560  ;;  %p5065_p13 = scmp.lt.s32.totalorder %s246_s16, %s5063_s15 }
  0x43   : > { %p5060_p9 = pnand %p5058_p7, %p5046_p0  ;;  %p5066_p5 = scmp.lt.s32.totalorder %s5064_s1, %s5057_s9 }
  0x45   : > { %p5061_p3 = pneg %p5060_p9  ;;  %p5067_p4 = por %p5066_p5, %p5065_p13 }
  0x47   : > { %p5068_p8 = pnand %p5067_p4, %p5061_p3 }
  0x49   : > { %5071 = shalt.err (!%p5068_p8)
}
  0x4a   : > { %4932 = dma.hbm_to_vmem [thread:$0]  (!%p5287_p11), %s5294_s14, 1280, %s246_s16, %s234_s17  }
  0x4b   : > { %p8475_p10 = scmp.ne.s32.totalorder %s8469_s29, 0 }
  0x4d   : > { %254 = sbr.rel (%p8475_p10) target bundleno = 1608 (0x648), region = 44 }
  0x52   : > { %s5313_s18 = sand.u32 1, %s5132_s22   ;;  %p8476_p0 = scmp.ne.s32.totalorder %s8467_s27, 0 }
  0x53   : > { %s4909_s20 = smul.u32 80, %s5313_s18  ;;  %s257_s26 = scalar_lea.sflag [#allocation5], %s5313_s18 }
  0x55   : > { %s5317_s12 = scalar_lea.vmem [#allocation4], %s4909_s20 }
  0x56   : > { %5115 = dma.done.wait (%p8476_p0), %s257_s26, 1280  }
  0x57   : > { %5117 = vsyncadd (%p8476_p0), %s257_s26, 4294966016  ;;  %p8477_p4 = scmp.eq.s32.totalorder %s5216_s25, 0 }
  0x59   : > { %5119 = dma.done.wait (%p8477_p4), [#allocation8], 768   ;;  %p8478_p8 = pmov %p8477_p4 }
  0x5a   : > { %v5328_v0 = vld [vmem:[%s5317_s12 + $0x10] sm:$0xff]  ;;  %v297_v1 = vld [vmem:[%s5317_s12] sm:$0xff]  ;;  %s5147_s1 = smov 110   ;;  %v5335_v2 = vld [vmem:[%s5317_s12 + $0x18] sm:$0xff]  ;;  %s5148_s27 = smov 118   ;;  %vm991_vm0 = vcmask 965632  }
  0x5b   : > { %5121 = vsyncadd (%p8478_p8), [#allocation8], 4294966528  ;;  %319 = vrot.lane.b32.xlu1 %v5328_v0, %s5147_s1  ;;  %315 = vrot.lane.b32.xlu0 %v297_v1, %s5147_s1  ;;  %v5338_v3 = vld [vmem:[%s5317_s12 + $0x8] sm:$0xff]  ;;  %v5348_v5 = vld [vmem:[%s5317_s12 + $0x20] sm:$0xff]  ;;  %s5149_s29 = smov 10   ;;  %s5150_s11 = smov 90  }
  0x5c   : > { %v5345_v4 = vld [vmem:[%s5317_s12 + $0x28] sm:$0xff]  ;;  %v5355_v6 = vld [vmem:[%s5317_s12 + $0x30] sm:$0xff]  ;;  %v5370_v7 = vld [vmem:[%s5317_s12 + $0x40] sm:$0xff]  ;;  %s5151_s14 = smov 100   ;;  %s5152_s16 = smov 127   ;;  %vm785_vm1 = vcmask 80896  }
  0x5d   : > { %8479 = vst [vmem:[#allocation14_spill] sm:$0xff] %v5345_v4  ;;  %8480 = vst [vmem:[#allocation15_spill] sm:$0xff] %v5370_v7  ;;  %v5377_v8 = vld [vmem:[%s5317_s12 + $0x48] sm:$0xff]  ;;  %v5391_v9 = vld [vmem:[%s5317_s12 + $0x38] sm:$0xff]  ;;  %s5153_s17 = smov 1   ;;  %s5154_s13 = smov 18  }
  0x5e   : > { %v8410_v48 = vmov 0.0   ;;  %s5156_s10 = smov 28   ;;  %s5157_s9 = smov 38   ;;  %vm587_vm4 = vcmask 736256   ;;  %vm462_vm5 = vcmask 818176   ;;  %vm1154_vm6 = vcmask 588800  }
  0x5f   : > { %321 = vrot.lane.b32.xlu1 %v5335_v2, %s5147_s1  ;;  %317 = vrot.lane.b32.xlu0 %v5338_v3, %s5147_s1  ;;  %vm333_vm7 = vcmask 900096   ;;  %vm2015_vm8 = vcmask 146432   ;;  %vm1890_vm9 = vcmask 228352   ;;  %vm1765_vm10 = vcmask 310272   ;;  %p8596_p11 = scmp.ne.s32.totalorder %s8473_s30, 0  ;;  %s5159_s8 = smov [#allocation10]  }
  0x60   : > { %1222 = vmatprep.mubr.f32.mxu0 %v8410_v48  ;;  %1293 = vmatprep.mubr.f32.mxu1 %v8410_v48 }
  0x63   : > { %325 = vrot.lane.b32.xlu1 %v5345_v4, %s5147_s1  ;;  %323 = vrot.lane.b32.xlu0 %v5348_v5, %s5147_s1 }
  0x67   : > { %975 = vrot.lane.b32.xlu1 %v5328_v0, %s5148_s27  ;;  %327 = vrot.lane.b32.xlu0 %v5355_v6, %s5147_s1 }
  0x6b   : > { %979 = vrot.lane.b32.xlu1 %v5348_v5, %s5148_s27  ;;  %977 = vrot.lane.b32.xlu0 %v5335_v2, %s5148_s27 }
  0x6f   : > { %981 = vrot.lane.b32.xlu1 %v5345_v4, %s5148_s27  ;;  %973 = vrot.lane.b32.xlu0 %v5338_v3, %s5148_s27 }
  0x73   : > { %987 = vrot.lane.b32.xlu1 %v5370_v7, %s5148_s27  ;;  %983 = vrot.lane.b32.xlu0 %v5355_v6, %s5148_s27 }
  0x77   : > { %769 = vrot.lane.b32.xlu1 %v5338_v3, %s5149_s29  ;;  %989 = vrot.lane.b32.xlu0 %v5377_v8, %s5148_s27 }
  0x7b   : > { %773 = vrot.lane.b32.xlu1 %v5335_v2, %s5149_s29  ;;  %771 = vrot.lane.b32.xlu0 %v5328_v0, %s5149_s29 }
  0x7f   : > { %775 = vrot.lane.b32.xlu1 %v5348_v5, %s5149_s29  ;;  %767 = vrot.lane.b32.xlu0 %v297_v1, %s5149_s29 }
  0x83   : > { %781 = vrot.lane.b32.xlu1 %v5391_v9, %s5149_s29  ;;  %777 = vrot.lane.b32.xlu0 %v5345_v4, %s5149_s29 }
  0x87   : > { %985 = vrot.lane.b32.xlu1 %v5391_v9, %s5148_s27  ;;  %783 = vrot.lane.b32.xlu0 %v5370_v7, %s5149_s29 }
  0x8b   : > { %571 = vrot.lane.b32.xlu1 %v5338_v3, %s5150_s11  ;;  %779 = vrot.lane.b32.xlu0 %v5355_v6, %s5149_s29 }
  0x8f   : > { %575 = vrot.lane.b32.xlu1 %v5335_v2, %s5150_s11  ;;  %573 = vrot.lane.b32.xlu0 %v5328_v0, %s5150_s11 }
  0x93   : > { %577 = vrot.lane.b32.xlu1 %v5348_v5, %s5150_s11  ;;  %569 = vrot.lane.b32.xlu0 %v297_v1, %s5150_s11 }
  0x97   : > { %583 = vrot.lane.b32.xlu1 %v5391_v9, %s5150_s11  ;;  %579 = vrot.lane.b32.xlu0 %v5345_v4, %s5150_s11 }
  0x9b   : > { %446 = vrot.lane.b32.xlu1 %v5338_v3, %s5151_s14  ;;  %585 = vrot.lane.b32.xlu0 %v5370_v7, %s5150_s11 }
  0x9f   : > { %450 = vrot.lane.b32.xlu1 %v5335_v2, %s5151_s14  ;;  %448 = vrot.lane.b32.xlu0 %v5328_v0, %s5151_s14 }
  0xa3   : > { %452 = vrot.lane.b32.xlu1 %v5348_v5, %s5151_s14  ;;  %444 = vrot.lane.b32.xlu0 %v297_v1, %s5151_s14 }
  0xa7   : > { %458 = vrot.lane.b32.xlu1 %v5391_v9, %s5151_s14  ;;  %454 = vrot.lane.b32.xlu0 %v5345_v4, %s5151_s14 }
  0xab   : > { %329 = vrot.lane.b32.xlu1 %v5391_v9, %s5147_s1  ;;  %460 = vrot.lane.b32.xlu0 %v5370_v7, %s5151_s14 }
  0xaf   : > { %581 = vrot.lane.b32.xlu1 %v5355_v6, %s5150_s11  ;;  %331 = vrot.lane.b32.xlu0 %v5370_v7, %s5147_s1 }
  0xb3   : > { %456 = vrot.lane.b32.xlu0 %v5355_v6, %s5151_s14  ;;  %925 = vrot.lane.b32.xlu1 %v5328_v0, %s5152_s16 }
  0xb7   : > { %923 = vrot.lane.b32.xlu1 %v5338_v3, %s5152_s16  ;;  %927 = vrot.lane.b32.xlu0 %v5335_v2, %s5152_s16 }
  0xbb   : > { %885 = vrot.lane.b32.xlu1 %v5328_v0, %s5153_s17  ;;  %883 = vrot.lane.b32.xlu0 %v5338_v3, %s5153_s17 }
  0xbf   : > { %929 = vrot.lane.b32.xlu1 %v5348_v5, %s5152_s16  ;;  %897 = vrot.lane.b32.xlu0 %v5370_v7, %s5153_s17 }
  0xc3   : > { %931 = vrot.lane.b32.xlu0 %v5345_v4, %s5152_s16 }
  0xcd   : > { %v5457_v10 = vpop.permute.xlu1 %319  ;;  %v5459_v11 = vpop.permute.xlu0 %315 }
  0xd1   : > { %v5461_v12 = vpop.permute.xlu1 %321  ;;  %v5463_v13 = vpop.permute.xlu0 %317 }
  0xd5   : > { %v5465_v14 = vpop.permute.xlu1 %325  ;;  %v5467_v15 = vpop.permute.xlu0 %323 }
  0xd9   : > { %v976_v16 = vpop.permute.xlu1 %975  ;;  %v5469_v17 = vpop.permute.xlu0 %327 }
  0xda   : > { %8481 = vst [vmem:[#allocation16_spill] sm:$0xff] %v5469_v17 }
  0xdd   : > { %v980_v18 = vpop.permute.xlu1 %979  ;;  %v978_v19 = vpop.permute.xlu0 %977 }
  0xde   : > { %v5472_v20 = vsel %vm991_vm0, %v978_v19, %v980_v18  ;;  %v5475_v21 = vsel %vm991_vm0, %v976_v16, %v978_v19 }
  0xdf   : > { %1052 = vrot.lane.b32.xlu1 %v5472_v20, %s5152_s16  ;;  %1050 = vrot.lane.b32.xlu0 %v5475_v21, %s5152_s16 }
  0xe1   : > { %v982_v22 = vpop.permute.xlu1 %981  ;;  %v974_v23 = vpop.permute.xlu0 %973 }
  0xe2   : > { %v5482_v24 = vsel %vm991_vm0, %v974_v23, %v976_v16  ;;  %v5491_v29 = vsel %vm991_vm0, %v980_v18, %v982_v22 }
  0xe3   : > { %1008 = vrot.lane.b32.xlu0 %v5482_v24, %s5153_s17  ;;  %1048 = vrot.lane.b32.xlu1 %v5482_v24, %s5152_s16 }
  0xe5   : > { %v988_v25 = vpop.permute.xlu1 %987  ;;  %v984_v26 = vpop.permute.xlu0 %983 }
  0xe6   : > { %v5501_v33 = vsel %vm991_vm0, %v982_v22, %v984_v26 }
  0xe7   : > { %1010 = vrot.lane.b32.xlu1 %v5475_v21, %s5153_s17 }
  0xe9   : > { %v770_v27 = vpop.permute.xlu1 %769  ;;  %v990_v28 = vpop.permute.xlu0 %989 }
  0xea   : > { %v5494_v30 = vsel %vm991_vm0, %v988_v25, %v990_v28 }
  0xeb   : > { %1054 = vrot.lane.b32.xlu1 %v5491_v29, %s5152_s16  ;;  %1022 = vrot.lane.b32.xlu0 %v5494_v30, %s5153_s17 }
  0xed   : > { %v774_v31 = vpop.permute.xlu1 %773  ;;  %v772_v32 = vpop.permute.xlu0 %771 }
  0xee   : > { %v5508_v34 = vsel %vm785_vm1, %v770_v27, %v772_v32  ;;  %v5517_v38 = vsel %vm785_vm1, %v772_v32, %v774_v31 }
  0xef   : > { %1014 = vrot.lane.b32.xlu1 %v5491_v29, %s5153_s17  ;;  %1056 = vrot.lane.b32.xlu0 %v5501_v33, %s5152_s16 }
  0xf1   : > { %v776_v35 = vpop.permute.xlu1 %775  ;;  %v768_v36 = vpop.permute.xlu0 %767 }
  0xf2   : > { %v5520_v39 = vsel %vm785_vm1, %v768_v36, %v770_v27  ;;  %v5561_v50 = vsel %vm785_vm1, %v774_v31, %v776_v35 }
  0xf3   : > { %1012 = vrot.lane.b32.xlu0 %v5472_v20, %s5153_s17  ;;  %845 = vrot.lane.b32.xlu1 %v5508_v34, %s5152_s16 }
  0xf5   : > { %v5514_v37 = vpop.permute.xlu0 %777  ;;  %v5522_v40 = vpop.permute.xlu1 %781 }
  0xf6   : > { %v5574_v53 = vsel %vm785_vm1, %v776_v35, %v5514_v37  ;;  %v8413_v35 = vlaneseq }
  0xf7   : > { %847 = vrot.lane.b32.xlu0 %v5517_v38, %s5152_s16  ;;  %843 = vrot.lane.b32.xlu1 %v5520_v39, %s5152_s16  ;;  %8482 = vst [vmem:[#allocation17_spill] sm:$0xff] %v5574_v53 }
  0xf8   : > { %v5698_v17 = vand.u32 127, %v8413_v35 }
  0xf9   : > { %v784_v41 = vpop.permute.xlu0 %783  ;;  %v986_v42 = vpop.permute.xlu1 %985 }
  0xfa   : > { %v5554_v47 = vsel %vm785_vm1, %v5522_v40, %v784_v41  ;;  %v5570_v52 = vsel %vm991_vm0, %v984_v26, %v986_v42  ;;  %v5585_v56 = vsel %vm991_vm0, %v986_v42, %v988_v25  ;;  %vm409_vm2 = vcmp.lt.s32.totalorder %v5698_v17, 127 }
  0xfb   : > { %1999 = vrot.lane.b32.xlu0 %v5328_v0, %s5154_s13  ;;  %2001 = vrot.lane.b32.xlu1 %v5335_v2, %s5154_s13  ;;  %vm368_vm3 = vcmp.lt.s32.totalorder %v5698_v17, 1 }
  0xfd   : > { %v5532_v43 = vpop.permute.xlu0 %779  ;;  %v5540_v45 = vpop.permute.xlu1 %571 }
  0xfe   : > { %v5682_v36 = vsel %vm785_vm1, %v5532_v43, %v5522_v40  ;;  %v5687_v41 = vsel %vm785_vm1, %v5514_v37, %v5532_v43 }
  0xff   : > { %2003 = vrot.lane.b32.xlu0 %v5348_v5, %s5154_s13  ;;  %1997 = vrot.lane.b32.xlu1 %v5338_v3, %s5154_s13  ;;  %8484 = vst [vmem:[#allocation19_spill] sm:$0xff] %v5687_v41 }
 0x101   : > { %v5538_v44 = vpop.permute.xlu0 %573  ;;  %v5558_v49 = vpop.permute.xlu1 %575 }
 0x103   : > { %887 = vrot.lane.b32.xlu0 %v5335_v2, %s5153_s17  ;;  %889 = vrot.lane.b32.xlu1 %v5348_v5, %s5153_s17 }
 0x105   : > { %v5546_v46 = vpop.permute.xlu0 %569  ;;  %v5576_v54 = vpop.permute.xlu1 %577 }
 0x107   : > { %802 = vrot.lane.b32.xlu0 %v5520_v39, %s5153_s17  ;;  %804 = vrot.lane.b32.xlu1 %v5508_v34, %s5153_s17 }
 0x109   : > { %v5567_v51 = vpop.permute.xlu0 %579  ;;  %v5591_v57 = vpop.permute.xlu1 %583 }
 0x10b   : > { %849 = vrot.lane.b32.xlu1 %v5561_v50, %s5152_s16  ;;  %816 = vrot.lane.b32.xlu0 %v5554_v47, %s5153_s17 }
 0x10d   : > { %v5582_v55 = vpop.permute.xlu0 %585  ;;  %v5599_v59 = vpop.permute.xlu1 %446 }
 0x10f   : > { %1058 = vrot.lane.b32.xlu1 %v5570_v52, %s5152_s16  ;;  %851 = vrot.lane.b32.xlu0 %v5574_v53, %s5152_s16 }
 0x111   : > { %v5597_v58 = vpop.permute.xlu0 %448  ;;  %v5611_v61 = vpop.permute.xlu1 %450 }
 0x113   : > { %2005 = vrot.lane.b32.xlu1 %v5345_v4, %s5154_s13  ;;  %1060 = vrot.lane.b32.xlu0 %v5585_v56, %s5152_s16 }
 0x115   : > { %v5605_v60 = vpop.permute.xlu0 %444  ;;  %v5619_v63 = vpop.permute.xlu1 %452 }
 0x117   : > { %2011 = vrot.lane.b32.xlu1 %v5370_v7, %s5154_s13  ;;  %2007 = vrot.lane.b32.xlu0 %v5355_v6, %s5154_s13 }
 0x119   : > { %v5617_v62 = vpop.permute.xlu0 %454  ;;  %v5631_v16 = vpop.permute.xlu1 %458 }
 0x11b   : > { %1874 = vrot.lane.b32.xlu1 %v5328_v0, %s5156_s10  ;;  %2013 = vrot.lane.b32.xlu0 %v5377_v8, %s5154_s13 }
 0x11d   : > { %v5625_v1 = vpop.permute.xlu0 %460  ;;  %v5639_v19 = vpop.permute.xlu1 %329 }
 0x11f   : > { %1878 = vrot.lane.b32.xlu1 %v5348_v5, %s5156_s10  ;;  %1876 = vrot.lane.b32.xlu0 %v5335_v2, %s5156_s10 }
 0x121   : > { %v5637_v18 = vpop.permute.xlu0 %331  ;;  %v5647_v23 = vpop.permute.xlu1 %581 }
 0x123   : > { %806 = vrot.lane.b32.xlu1 %v5517_v38, %s5153_s17  ;;  %1872 = vrot.lane.b32.xlu0 %v5338_v3, %s5156_s10 }
 0x125   : > { %v5645_v22 = vpop.permute.xlu0 %456  ;;  %v926_v26 = vpop.permute.xlu1 %925 }
 0x126   : > { %8483 = vst [vmem:[#allocation18_spill] sm:$0xff] %v5645_v22 }
 0x127   : > { %1016 = vrot.lane.b32.xlu1 %v5501_v33, %s5153_s17  ;;  %808 = vrot.lane.b32.xlu0 %v5561_v50, %s5153_s17 }
 0x129   : > { %v5653_v25 = vpop.permute.xlu0 %927  ;;  %v5665_v28 = vpop.permute.xlu1 %923 }
 0x12b   : > { %1062 = vrot.lane.b32.xlu1 %v5494_v30, %s5152_s16  ;;  %1018 = vrot.lane.b32.xlu0 %v5570_v52, %s5153_s17 }
 0x12d   : > { %v5663_v27 = vpop.permute.xlu0 %883  ;;  %v5673_v32 = vpop.permute.xlu1 %885 }
 0x12f   : > { %935 = vrot.lane.b32.xlu1 %v5391_v9, %s5152_s16  ;;  %933 = vrot.lane.b32.xlu0 %v5355_v6, %s5152_s16 }
 0x131   : > { %v5671_v31 = vpop.permute.xlu0 %897  ;;  %v5695_v48 = vpop.permute.xlu1 %929 }
 0x133   : > { %1882 = vrot.lane.b32.xlu1 %v5355_v6, %s5156_s10  ;;  %1880 = vrot.lane.b32.xlu0 %v5345_v4, %s5156_s10 }
 0x135   : > { %v5693_v42 = vpop.permute.xlu0 %931 }
 0x137   : > { %1888 = vrot.lane.b32.xlu1 %v5377_v8, %s5156_s10  ;;  %1886 = vrot.lane.b32.xlu0 %v5370_v7, %s5156_s10 }
 0x13b   : > { %1751 = vrot.lane.b32.xlu1 %v5335_v2, %s5157_s9  ;;  %1749 = vrot.lane.b32.xlu0 %v5328_v0, %s5157_s9 }
 0x13f   : > { %1747 = vrot.lane.b32.xlu1 %v5338_v3, %s5157_s9  ;;  %1753 = vrot.lane.b32.xlu0 %v5348_v5, %s5157_s9 }
 0x143   : > { %891 = vrot.lane.b32.xlu1 %v5345_v4, %s5153_s17  ;;  %1020 = vrot.lane.b32.xlu0 %v5585_v56, %s5153_s17 }
 0x147   : > { %937 = vrot.lane.b32.xlu1 %v5370_v7, %s5152_s16  ;;  %893 = vrot.lane.b32.xlu0 %v5355_v6, %s5153_s17 }
 0x14b   : > { %855 = vrot.lane.b32.xlu1 %v5682_v36, %s5152_s16  ;;  %853 = vrot.lane.b32.xlu0 %v5687_v41, %s5152_s16 }
 0x14f   : > { %1757 = vrot.lane.b32.xlu1 %v5355_v6, %s5157_s9  ;;  %1755 = vrot.lane.b32.xlu0 %v5345_v4, %s5157_s9 }
 0x151   : > { %v1053_v37 = vpop.permute.xlu1 %1052  ;;  %v1051_v40 = vpop.permute.xlu0 %1050 }
 0x152   : > { %v1069_v43 = vsel %vm409_vm2, %v1051_v40, %v1053_v37 }
 0x153   : > { %1763 = vrot.lane.b32.xlu1 %v5377_v8, %s5157_s9  ;;  %1761 = vrot.lane.b32.xlu0 %v5370_v7, %s5157_s9 }
 0x154   : > { %1172 = vmatprep.subr.mxu0 %v1069_v43 }
 0x155   : > { %v5711_v35 = vpop.permute.xlu1 %1048  ;;  %v1009_v4 = vpop.permute.xlu0 %1008 }
 0x156   : > { %v1070_v22 = vsel %vm409_vm2, %v5711_v35, %v1051_v40 }
 0x157   : > { %895 = vrot.lane.b32.xlu1 %v5391_v9, %s5153_s17  ;;  %2009 = vrot.lane.b32.xlu0 %v5391_v9, %s5154_s13 }
 0x158   : > { %1173 = vmatpush1.msra.mxu0 %v1070_v22 }
 0x159   : > { %1174 = vmatprep.subr.mxu0 %v5475_v21  ;;  %v1011_v8 = vpop.permute.xlu1 %1010  ;;  %v5734_v21 = vsel %vm587_vm4, %v5540_v45, %v5538_v44 }
 0x15a   : > { %1175 = vmatpush1.msra.mxu0 %v5482_v24  ;;  %v1030_v43 = vsel %vm368_vm3, %v1009_v4, %v1011_v8 }
 0x15b   : > { %812 = vrot.lane.b32.xlu1 %v5687_v41, %s5153_s17  ;;  %810 = vrot.lane.b32.xlu0 %v5574_v53, %s5153_s17  ;;  %v945_v41 = vsel %vm409_vm2, %v5665_v28, %v926_v26 }
 0x15c   : > { %1176 = vmatprep.subr.mxu0 %v1030_v43  ;;  %v944_v43 = vsel %vm409_vm2, %v926_v26, %v5653_v25 }
 0x15d   : > { %v1055_v22 = vpop.permute.xlu1 %1054  ;;  %v5729_v40 = vpop.permute.xlu0 %1022 }
 0x15e   : > { %v1031_v24 = vsel %vm368_vm3, %v5729_v40, %v1009_v4  ;;  %v5756_v4 = vsel %vm587_vm4, %v5538_v44, %v5558_v49  ;;  %v905_v44 = vsel %vm368_vm3, %v5663_v27, %v5673_v32 }
 0x15f   : > { %857 = vrot.lane.b32.xlu0 %v5554_v47, %s5152_s16  ;;  %646 = vrot.lane.b32.xlu1 %v5734_v21, %s5152_s16 }
 0x160   : > { %1177 = vmatpush1.msra.mxu0 %v1031_v24 }
 0x161   : > { %1178 = vmatprep.subr.mxu0 %v944_v43  ;;  %v5746_v53 = vpop.permute.xlu1 %1014  ;;  %v5751_v7 = vpop.permute.xlu0 %1056  ;;  %v5764_v43 = vsel %vm587_vm4, %v5546_v46, %v5540_v45  ;;  %v1068_v45 = vsel %vm409_vm2, %v1053_v37, %v1055_v22 }
 0x162   : > { %1179 = vmatpush1.msra.mxu0 %v945_v41  ;;  %v1067_v24 = vsel %vm409_vm2, %v1055_v22, %v5751_v7 }
 0x163   : > { %1180 = vmatprep.subr.mxu0 %v5328_v0  ;;  %648 = vrot.lane.b32.xlu0 %v5756_v4, %s5152_s16  ;;  %v906_v0 = vsel %vm368_vm3, %v5671_v31, %v5663_v27 }
 0x164   : > { %644 = vrot.lane.b32.xlu1 %v5764_v43, %s5152_s16  ;;  %1181 = vmatpush1.msra.mxu0 %v5338_v3 }
 0x165   : > { %1243 = vmatprep.subr.mxu1 %v1067_v24  ;;  %1182 = vmatprep.subr.mxu0 %v905_v44  ;;  %v846_v46 = vpop.permute.xlu1 %845  ;;  %v1013_v26 = vpop.permute.xlu0 %1012 }
 0x166   : > { %1244 = vmatpush1.msra.mxu1 %v1068_v45  ;;  %1183 = vmatpush1.msra.mxu0 %v906_v0  ;;  %v1028_v3 = vsel %vm368_vm3, %v1013_v26, %v5746_v53  ;;  %v1029_v41 = vsel %vm368_vm3, %v1011_v8, %v1013_v26  ;;  %v5857_v45 = vsel %vm462_vm5, %v5597_v58, %v5611_v61 }
 0x167   : > { %1245 = vmatprep.subr.mxu1 %v5491_v29  ;;  %1884 = vrot.lane.b32.xlu0 %v5391_v9, %s5156_s10  ;;  %v942_v29 = vsel %vm409_vm2, %v5695_v48, %v5693_v42  ;;  %v5868_v0 = vsel %vm462_vm5, %v5605_v60, %v5599_v59 }
 0x168   : > { %1246 = vmatpush1.msra.mxu1 %v5472_v20  ;;  %814 = vrot.lane.b32.xlu1 %v5682_v36, %s5153_s17  ;;  %v943_v20 = vsel %vm409_vm2, %v5653_v25, %v5695_v48  ;;  %v5820_v48 = vsel %vm587_vm4, %v5591_v57, %v5582_v55  ;;  %v5827_v25 = vsel %vm587_vm4, %v5558_v49, %v5576_v54 }
 0x169   : > { %1247 = vmatprep.subr.mxu1 %v1028_v3  ;;  %v5793_v27 = vpop.permute.xlu1 %843  ;;  %v848_v37 = vpop.permute.xlu0 %847  ;;  %v5885_v3 = vld [vmem:[#allocation7 + $0x8] sm:$0xff] }
 0x16a   : > { %1248 = vmatpush1.msra.mxu1 %v1029_v41  ;;  %v864_v22 = vsel %vm409_vm2, %v846_v46, %v848_v37  ;;  %v865_v8 = vsel %vm409_vm2, %v5793_v27, %v846_v46 }
 0x16b   : > { %1249 = vmatprep.subr.mxu1 %v942_v29  ;;  %604 = vrot.lane.b32.xlu0 %v5764_v43, %s5153_s17 }
 0x16c   : > { %1250 = vmatpush1.msra.mxu1 %v943_v20  ;;  %606 = vrot.lane.b32.xlu1 %v5734_v21, %s5153_s17  ;;  %v8485_v20 = vmov 0.0  }
 0x16d   : > { %1184 = vmatprep.subr.mxu0 %v864_v22  ;;  %v5812_v24 = vpop.permute.xlu1 %2001  ;;  %v5814_v44 = vpop.permute.xlu0 %1999  ;;  %1251 = vmatprep.subr.mxu1 %v5348_v5 }
 0x16e   : > { %1185 = vmatpush1.msra.mxu0 %v865_v8  ;;  %1252 = vmatpush1.msra.mxu1 %v5335_v2  ;;  %v5841_v2 = vsel %vm587_vm4, %v5576_v54, %v5567_v51 }
 0x16f   : > { %1186 = vmatprep.subr.mxu0 %v5508_v34  ;;  %618 = vrot.lane.b32.xlu0 %v5820_v48, %s5153_s17  ;;  %v5848_v34 = vsel %vm462_vm5, %v5599_v59, %v5597_v58 }
 0x170   : > { %1187 = vmatpush1.msra.mxu0 %v5520_v39  ;;  %650 = vrot.lane.b32.xlu1 %v5827_v25, %s5152_s16 }
 0x171   : > { %v5834_v5 = vpop.permute.xlu1 %1997  ;;  %v5836_v55 = vpop.permute.xlu0 %2003 }
 0x173   : > { %652 = vrot.lane.b32.xlu0 %v5841_v2, %s5152_s16 }
 0x174   : > { %521 = vrot.lane.b32.xlu1 %v5848_v34, %s5152_s16 }
 0x175   : > { %v5852_v39 = vpop.permute.xlu1 %889  ;;  %v888_v49 = vpop.permute.xlu0 %887 }
 0x176   : > { %v903_v54 = vsel %vm368_vm3, %v888_v49, %v5852_v39  ;;  %v904_v46 = vsel %vm368_vm3, %v5673_v32, %v888_v49  ;;  %v5905_v49 = vsel %vm462_vm5, %v5631_v16, %v5625_v1  ;;  %v5920_v1 = vsel %vm462_vm5, %v5611_v61, %v5619_v63 }
 0x177   : > { %523 = vrot.lane.b32.xlu0 %v5857_v45, %s5152_s16  ;;  %1253 = vmatprep.subr.mxu1 %v903_v54 }
 0x178   : > { %519 = vrot.lane.b32.xlu1 %v5868_v0, %s5152_s16  ;;  %1254 = vmatpush1.msra.mxu1 %v904_v46 }
 0x179   : > { %v5874_v58 = vpop.permute.xlu1 %804  ;;  %v803_v26 = vpop.permute.xlu0 %802 }
 0x17a   : > { %v824_v32 = vsel %vm368_vm3, %v803_v26, %v5874_v58 }
 0x17b   : > { %1759 = vrot.lane.b32.xlu0 %v5391_v9, %s5157_s9  ;;  %1188 = vmatprep.subr.mxu0 %v824_v32 }
 0x17c   : > { %608 = vrot.lane.b32.xlu1 %v5756_v4, %s5153_s17 }
 0x17d   : > { %v850_v59 = vpop.permute.xlu1 %849  ;;  %v5883_v60 = vpop.permute.xlu0 %816 }
 0x17e   : > { %v825_v41 = vsel %vm368_vm3, %v5883_v60, %v803_v26  ;;  %v863_v54 = vsel %vm409_vm2, %v848_v37, %v850_v59  ;;  %v5929_v37 = vsel %vm462_vm5, %v5619_v63, %v5617_v62  ;;  %v5945_v63 = vsel %vm333_vm7, %v5463_v13, %v5457_v10 }
 0x17f   : > { %610 = vrot.lane.b32.xlu0 %v5827_v25, %s5153_s17  ;;  %1189 = vmatpush1.msra.mxu0 %v825_v41  ;;  %8486 = vst [vmem:[#allocation20_spill] sm:$0xff] %v5929_v37  ;;  %8487 = vst [vmem:[#allocation21_spill] sm:$0xff] %v5945_v63 }
 0x180   : > { %479 = vrot.lane.b32.xlu1 %v5868_v0, %s5153_s17  ;;  %4877 = vmatmul.mubr.msk.f32.vlgmr.msra.gmra.mxu0 %vm1154_vm6, %v5885_v3 }
 0x181   : > { %v1059_v29 = vpop.permute.xlu1 %1058  ;;  %v5896_v22 = vpop.permute.xlu0 %851  ;;  %1364 = vmatprep.mubr.f32.mxu0 %v8485_v20 }
 0x182   : > { %v862_v8 = vsel %vm409_vm2, %v850_v59, %v5896_v22 }
 0x183   : > { %481 = vrot.lane.b32.xlu0 %v5848_v34, %s5153_s17  ;;  %1255 = vmatprep.subr.mxu1 %v862_v8 }
 0x184   : > { %493 = vrot.lane.b32.xlu1 %v5905_v49, %s5153_s17  ;;  %1256 = vmatpush1.msra.mxu1 %v863_v54 }
 0x185   : > { %v5913_v46 = vpop.permute.xlu1 %2005  ;;  %1257 = vmatprep.subr.mxu1 %v5561_v50  ;;  %v1061_v26 = vpop.permute.xlu0 %1060 }
 0x186   : > { %1258 = vmatpush1.msra.mxu1 %v5517_v38  ;;  %v1065_v32 = vsel %vm409_vm2, %v1059_v29, %v1061_v26  ;;  %v1066_v38 = vsel %vm409_vm2, %v5751_v7, %v1059_v29  ;;  %v5950_v7 = vsel %vm333_vm7, %v5457_v10, %v5461_v12 }
 0x187   : > { %525 = vrot.lane.b32.xlu0 %v5920_v1, %s5152_s16  ;;  %1314 = vmatprep.subr.mxu0 %v1065_v32  ;;  %v5993_v32 = vsel %vm333_vm7, %v5461_v12, %v5467_v15 }
 0x188   : > { %527 = vrot.lane.b32.xlu1 %v5929_v37, %s5152_s16  ;;  %1315 = vmatpush1.msra.mxu0 %v1066_v38 }
 0x189   : > { %v5936_v50 = vpop.permute.xlu1 %2011  ;;  %1316 = vmatprep.subr.mxu0 %v5570_v52  ;;  %v5939_v61 = vpop.permute.xlu0 %2007 }
 0x18a   : > { %1317 = vmatpush1.msra.mxu0 %v5501_v33  ;;  %v5963_v33 = vsel %vm333_vm7, %v5459_v11, %v5463_v13  ;;  %v5982_v11 = vsel %vm333_vm7, %v5639_v19, %v5637_v18  ;;  %v6001_v18 = vsel %vm333_vm7, %v5467_v15, %v5465_v14  ;;  %v6015_v15 = vsel %vm587_vm4, %v5567_v51, %v5647_v23 }
 0x18b   : > { %395 = vrot.lane.b32.xlu0 %v5945_v63, %s5152_s16  ;;  %8488 = vst [vmem:[#allocation22_spill] sm:$0xff] %v5963_v33 }
 0x18c   : > { %397 = vrot.lane.b32.xlu1 %v5950_v7, %s5152_s16 }
 0x18d   : > { %v5956_v52 = vpop.permute.xlu1 %1874  ;;  %v5958_v59 = vpop.permute.xlu0 %2013 }
 0x18f   : > { %393 = vrot.lane.b32.xlu0 %v5963_v33, %s5152_s16 }
 0x190   : > { %483 = vrot.lane.b32.xlu1 %v5857_v45, %s5153_s17 }
 0x191   : > { %v5969_v10 = vpop.permute.xlu1 %1878  ;;  %v5971_v41 = vpop.permute.xlu0 %1876 }
 0x193   : > { %485 = vrot.lane.b32.xlu0 %v5920_v1, %s5153_s17 }
 0x194   : > { %350 = vrot.lane.b32.xlu1 %v5963_v33, %s5153_s17 }
 0x195   : > { %v807_v29 = vpop.permute.xlu1 %806  ;;  %v5977_v8 = vpop.permute.xlu0 %1872 }
 0x196   : > { %v823_v33 = vsel %vm368_vm3, %v5874_v58, %v807_v29 }
 0x197   : > { %352 = vrot.lane.b32.xlu0 %v5945_v63, %s5153_s17 }
 0x198   : > { %364 = vrot.lane.b32.xlu1 %v5982_v11, %s5153_s17 }
 0x199   : > { %v1017_v13 = vpop.permute.xlu1 %1016  ;;  %v5988_v54 = vpop.permute.xlu0 %808 }
 0x19a   : > { %v822_v38 = vsel %vm368_vm3, %v807_v29, %v5988_v54  ;;  %v6028_v29 = vsel %vm587_vm4, %v5647_v23, %v5591_v57  ;;  %v1027_v51 = vsel %vm368_vm3, %v5746_v53, %v1017_v13 }
 0x19b   : > { %399 = vrot.lane.b32.xlu0 %v5993_v32, %s5152_s16  ;;  %1259 = vmatprep.subr.mxu1 %v822_v38 }
 0x19c   : > { %401 = vrot.lane.b32.xlu1 %v6001_v18, %s5152_s16  ;;  %1260 = vmatpush1.msra.mxu1 %v823_v33 }
 0x19d   : > { %v1063_v12 = vpop.permute.xlu1 %1062  ;;  %v1019_v63 = vpop.permute.xlu0 %1018  ;;  %4878 = vmatmul.mubr.msk.f32.vlgmr.msra.gmra.mxu1 %vm1154_vm6, %v5885_v3 }
 0x19e   : > { %v1026_v38 = vsel %vm368_vm3, %v1017_v13, %v1019_v63  ;;  %v1071_v58 = vsel %vm409_vm2, %v1063_v12, %v5711_v35  ;;  %v1064_v33 = vsel %vm409_vm2, %v1061_v26, %v1063_v12  ;;  %1435 = vmatprep.mubr.f32.mxu1 %v8485_v20  ;;  %v8490_v12 = vld [vmem:[#allocation18_spill] sm:$0xff] }
 0x19f   : > { %654 = vrot.lane.b32.xlu0 %v6015_v15, %s5152_s16  ;;  %1318 = vmatprep.subr.mxu0 %v1026_v38  ;;  %v6065_v38 = vsel %vm462_vm5, %v5617_v62, %v8490_v12 }
 0x1a0   : > { %656 = vrot.lane.b32.xlu1 %v6028_v29, %s5152_s16  ;;  %1385 = vmatprep.subr.mxu1 %v1071_v58 }
 0x1a1   : > { %1319 = vmatpush1.msra.mxu0 %v1027_v51  ;;  %1386 = vmatpush1.msra.mxu1 %v1064_v33  ;;  %v936_v35 = vpop.permute.xlu1 %935  ;;  %v934_v26 = vpop.permute.xlu0 %933  ;;  %v6078_v33 = vsel %vm462_vm5, %v8490_v12, %v5631_v16 }
 0x1a2   : > { %1387 = vmatprep.subr.mxu1 %v5494_v30  ;;  %v940_v57 = vsel %vm409_vm2, %v934_v26, %v936_v35  ;;  %v941_v23 = vsel %vm409_vm2, %v5693_v42, %v934_v26  ;;  %v8489_v42 = vld [vmem:[#allocation14_spill] sm:$0xff] }
 0x1a3   : > { %1388 = vmatpush1.msra.mxu1 %v5585_v56  ;;  %354 = vrot.lane.b32.xlu0 %v5950_v7, %s5153_s17  ;;  %8491 = vst [vmem:[#allocation14_spill] sm:$0xff] %v6065_v38 }
 0x1a4   : > { %356 = vrot.lane.b32.xlu1 %v5993_v32, %s5153_s17  ;;  %1320 = vmatprep.subr.mxu0 %v940_v57 }
 0x1a5   : > { %1321 = vmatpush1.msra.mxu0 %v941_v23  ;;  %v6048_v53 = vpop.permute.xlu1 %1882  ;;  %v6050_v30 = vpop.permute.xlu0 %1880 }
 0x1a6   : > { %1322 = vmatprep.subr.mxu0 %v5355_v6 }
 0x1a7   : > { %612 = vrot.lane.b32.xlu0 %v5841_v2, %s5153_s17  ;;  %1323 = vmatpush1.msra.mxu0 %v8489_v42  ;;  %v8492_v42 = vld [vmem:[#allocation16_spill] sm:$0xff] }
 0x1a8   : > { %614 = vrot.lane.b32.xlu1 %v6015_v15, %s5153_s17  ;;  %v6100_v12 = vsel %vm333_vm7, %v5465_v14, %v8492_v42 }
 0x1a9   : > { %v6058_v56 = vpop.permute.xlu1 %1888  ;;  %v6060_v13 = vpop.permute.xlu0 %1886 }
 0x1ab   : > { %658 = vrot.lane.b32.xlu0 %v5820_v48, %s5152_s16 }
 0x1ac   : > { %529 = vrot.lane.b32.xlu1 %v6065_v38, %s5152_s16 }
 0x1ad   : > { %v6071_v6 = vpop.permute.xlu1 %1751  ;;  %v6073_v58 = vpop.permute.xlu0 %1749 }
 0x1af   : > { %531 = vrot.lane.b32.xlu0 %v6078_v33, %s5152_s16 }
 0x1b0   : > { %616 = vrot.lane.b32.xlu1 %v6028_v29, %s5153_s17 }
 0x1b1   : > { %v6084_v62 = vpop.permute.xlu1 %1747  ;;  %v6086_v51 = vpop.permute.xlu0 %1753 }
 0x1b3   : > { %487 = vrot.lane.b32.xlu0 %v5929_v37, %s5153_s17 }
 0x1b4   : > { %489 = vrot.lane.b32.xlu1 %v6065_v38, %s5153_s17 }
 0x1b5   : > { %v892_v26 = vpop.permute.xlu1 %891  ;;  %v1021_v57 = vpop.permute.xlu0 %1020 }
 0x1b6   : > { %v1024_v16 = vsel %vm368_vm3, %v1021_v57, %v5729_v40  ;;  %v1025_v23 = vsel %vm368_vm3, %v1019_v63, %v1021_v57  ;;  %v6109_v40 = vsel %vm333_vm7, %v8492_v42, %v5639_v19  ;;  %v902_v19 = vsel %vm368_vm3, %v5852_v39, %v892_v26 }
 0x1b7   : > { %533 = vrot.lane.b32.xlu0 %v5905_v49, %s5152_s16  ;;  %1389 = vmatprep.subr.mxu1 %v1024_v16 }
 0x1b8   : > { %403 = vrot.lane.b32.xlu1 %v6100_v12, %s5152_s16  ;;  %1390 = vmatpush1.msra.mxu1 %v1025_v23 }
 0x1b9   : > { %v938_v37 = vpop.permute.xlu1 %937  ;;  %v894_v38 = vpop.permute.xlu0 %893 }
 0x1ba   : > { %v901_v63 = vsel %vm368_vm3, %v892_v26, %v894_v38  ;;  %v946_v14 = vsel %vm409_vm2, %v938_v37, %v5665_v28  ;;  %v939_v57 = vsel %vm409_vm2, %v936_v35, %v938_v37  ;;  %v8493_v35 = vld [vmem:[#allocation15_spill] sm:$0xff] }
 0x1bb   : > { %405 = vrot.lane.b32.xlu0 %v6109_v40, %s5152_s16  ;;  %1324 = vmatprep.subr.mxu0 %v901_v63  ;;  %v8494_v26 = vld [vmem:[#allocation19_spill] sm:$0xff]  ;;  %v6145_v63 = vsel %vm2015_vm8, %v5814_v44, %v5812_v24 }
 0x1bc   : > { %491 = vrot.lane.b32.xlu1 %v6078_v33, %s5153_s17  ;;  %1391 = vmatprep.subr.mxu1 %v946_v14 }
 0x1bd   : > { %1325 = vmatpush1.msra.mxu0 %v902_v19  ;;  %1392 = vmatpush1.msra.mxu1 %v939_v57  ;;  %v856_v16 = vpop.permute.xlu1 %855  ;;  %v854_v23 = vpop.permute.xlu0 %853  ;;  %v6163_v19 = vsel %vm2015_vm8, %v5834_v5, %v5814_v44 }
 0x1be   : > { %v860_v28 = vsel %vm409_vm2, %v854_v23, %v856_v16  ;;  %v861_v37 = vsel %vm409_vm2, %v5896_v22, %v854_v23  ;;  %1393 = vmatprep.subr.mxu1 %v8493_v35  ;;  %v8495_v22 = vld [vmem:[#allocation17_spill] sm:$0xff] }
 0x1bf   : > { %358 = vrot.lane.b32.xlu0 %v6001_v18, %s5153_s17  ;;  %1326 = vmatprep.subr.mxu0 %v860_v28 }
 0x1c0   : > { %360 = vrot.lane.b32.xlu1 %v6100_v12, %s5153_s17  ;;  %1327 = vmatpush1.msra.mxu0 %v861_v37 }
 0x1c1   : > { %v6135_v39 = vpop.permute.xlu1 %1757  ;;  %1328 = vmatprep.subr.mxu0 %v8494_v26  ;;  %v6138_v42 = vpop.permute.xlu0 %1755  ;;  %1394 = vmatpush1.msra.mxu1 %v5391_v9  ;;  %v6158_v9 = vsel %vm2015_vm8, %v5812_v24, %v5836_v55 }
 0x1c2   : > { %1329 = vmatpush1.msra.mxu0 %v8495_v22 }
 0x1c3   : > { %407 = vrot.lane.b32.xlu0 %v5982_v11, %s5152_s16 }
 0x1c4   : > { %2074 = vrot.lane.b32.xlu1 %v6145_v63, %s5152_s16 }
 0x1c5   : > { %v6151_v14 = vpop.permute.xlu1 %1763  ;;  %v6153_v57 = vpop.permute.xlu0 %1761 }
 0x1c7   : > { %2076 = vrot.lane.b32.xlu0 %v6158_v9, %s5152_s16 }
 0x1c8   : > { %2072 = vrot.lane.b32.xlu1 %v6163_v19, %s5152_s16 }
 0x1c9   : > { %v896_v23 = vpop.permute.xlu1 %895  ;;  %v6169_v28 = vpop.permute.xlu0 %2009 }
 0x1ca   : > { %v899_v37 = vsel %vm368_vm3, %v896_v23, %v5671_v31  ;;  %v900_v24 = vsel %vm368_vm3, %v894_v38, %v896_v23  ;;  %v6188_v38 = vsel %vm2015_vm8, %v5936_v50, %v5958_v59 }
 0x1cb   : > { %362 = vrot.lane.b32.xlu0 %v6109_v40, %s5153_s17  ;;  %1395 = vmatprep.subr.mxu1 %v899_v37  ;;  %v6212_v37 = vsel %vm2015_vm8, %v5913_v46, %v5939_v61 }
 0x1cc   : > { %2032 = vrot.lane.b32.xlu1 %v6163_v19, %s5153_s17  ;;  %1396 = vmatpush1.msra.mxu1 %v900_v24  ;;  %v6230_v24 = vsel %vm1890_vm9, %v5971_v41, %v5969_v10 }
 0x1cd   : > { %v813_v44 = vpop.permute.xlu1 %812  ;;  %v811_v5 = vpop.permute.xlu0 %810 }
 0x1ce   : > { %v820_v35 = vsel %vm368_vm3, %v811_v5, %v813_v44  ;;  %v821_v31 = vsel %vm368_vm3, %v5988_v54, %v811_v5  ;;  %v6199_v54 = vsel %vm2015_vm8, %v5836_v55, %v5913_v46 }
 0x1cf   : > { %2034 = vrot.lane.b32.xlu0 %v6145_v63, %s5153_s17  ;;  %1330 = vmatprep.subr.mxu0 %v820_v35 }
 0x1d0   : > { %2046 = vrot.lane.b32.xlu1 %v6188_v38, %s5153_s17  ;;  %1331 = vmatpush1.msra.mxu0 %v821_v31 }
 0x1d1   : > { %v647_v26 = vpop.permute.xlu1 %646  ;;  %v858_v22 = vpop.permute.xlu0 %857  ;;  %4879 = vmatmul.mubr.msk.f32.vlgmr.msra.gmra.mxu0 %vm1154_vm6, %v5885_v3 }
 0x1d2   : > { %v866_v59 = vsel %vm409_vm2, %v858_v22, %v5793_v27  ;;  %v859_v23 = vsel %vm409_vm2, %v856_v16, %v858_v22  ;;  %1509 = vmatprep.mubr.f32.mxu0 %v8485_v20  ;;  %v6223_v16 = vsel %vm1890_vm9, %v5956_v52, %v5971_v41  ;;  %v6245_v41 = vsel %vm1890_vm9, %v5977_v8, %v5956_v52 }
 0x1d3   : > { %2078 = vrot.lane.b32.xlu0 %v6199_v54, %s5152_s16  ;;  %1397 = vmatprep.subr.mxu1 %v866_v59  ;;  %v6285_v59 = vsel %vm1890_vm9, %v5969_v10, %v6050_v30 }
 0x1d4   : > { %2080 = vrot.lane.b32.xlu1 %v6212_v37, %s5152_s16  ;;  %1398 = vmatpush1.msra.mxu1 %v859_v23 }
 0x1d5   : > { %1399 = vmatprep.subr.mxu1 %v5554_v47  ;;  %v649_v27 = vpop.permute.xlu0 %648 }
 0x1d6   : > { %v6217_v55 = vpop.permute.xlu1 %644  ;;  %1400 = vmatpush1.msra.mxu1 %v5682_v36  ;;  %v665_v46 = vsel %vm409_vm2, %v647_v26, %v649_v27 }
 0x1d7   : > { %1949 = vrot.lane.b32.xlu0 %v6223_v16, %s5152_s16  ;;  %1459 = vmatprep.subr.mxu0 %v665_v46  ;;  %v666_v47 = vsel %vm409_vm2, %v6217_v55, %v647_v26 }
 0x1d8   : > { %1951 = vrot.lane.b32.xlu1 %v6230_v24, %s5152_s16  ;;  %1460 = vmatpush1.msra.mxu0 %v666_v47 }
 0x1d9   : > { %1461 = vmatprep.subr.mxu0 %v5734_v21  ;;  %v6240_v36 = vpop.permute.xlu0 %1884 }
 0x1da   : > { %v815_v5 = vpop.permute.xlu1 %814  ;;  %1462 = vmatpush1.msra.mxu0 %v5764_v43 }
 0x1db   : > { %1947 = vrot.lane.b32.xlu0 %v6245_v41, %s5152_s16  ;;  %v818_v35 = vsel %vm368_vm3, %v815_v5, %v5883_v60  ;;  %v819_v21 = vsel %vm368_vm3, %v813_v44, %v815_v5 }
 0x1dc   : > { %2036 = vrot.lane.b32.xlu1 %v6158_v9, %s5153_s17  ;;  %1401 = vmatprep.subr.mxu1 %v818_v35  ;;  %v6330_v35 = vsel %vm1765_vm10, %v6084_v62, %v6073_v58 }
 0x1dd   : > { %1402 = vmatpush1.msra.mxu1 %v819_v21  ;;  %v605_v52 = vpop.permute.xlu0 %604 }
 0x1de   : > { %v607_v8 = vpop.permute.xlu1 %606  ;;  %4880 = vmatmul.mubr.msk.f32.vlgmr.msra.gmra.mxu1 %vm1154_vm6, %v5885_v3  ;;  %v6276_v3 = vsel %vm1890_vm9, %v6060_v13, %v6058_v56  ;;  %v6295_v56 = vsel %vm1890_vm9, %v6050_v30, %v6048_v53  ;;  %v6308_v30 = vsel %vm1765_vm10, %v6073_v58, %v6071_v6 }
 0x1df   : > { %2038 = vrot.lane.b32.xlu0 %v6199_v54, %s5153_s17  ;;  %v626_v43 = vsel %vm368_vm3, %v605_v52, %v607_v8  ;;  %1580 = vmatprep.mubr.f32.mxu1 %v8485_v20 }
 0x1e0   : > { %1907 = vrot.lane.b32.xlu1 %v6245_v41, %s5153_s17  ;;  %1463 = vmatprep.subr.mxu0 %v626_v43 }
 0x1e1   : > { %v6266_v60 = vpop.permute.xlu0 %618 }
 0x1e2   : > { %v651_v44 = vpop.permute.xlu1 %650  ;;  %v627_v31 = vsel %vm368_vm3, %v6266_v60, %v605_v52 }
 0x1e3   : > { %1909 = vrot.lane.b32.xlu0 %v6223_v16, %s5153_s17  ;;  %1464 = vmatpush1.msra.mxu0 %v627_v31  ;;  %v664_v46 = vsel %vm409_vm2, %v649_v27, %v651_v44 }
 0x1e4   : > { %1921 = vrot.lane.b32.xlu1 %v6276_v3, %s5153_s17 }
 0x1e5   : > { %v6280_v26 = vpop.permute.xlu0 %652 }
 0x1e6   : > { %v522_v22 = vpop.permute.xlu1 %521  ;;  %v663_v23 = vsel %vm409_vm2, %v651_v44, %v6280_v26  ;;  %v6357_v44 = vsel %vm1765_vm10, %v6153_v57, %v6151_v14 }
 0x1e7   : > { %1953 = vrot.lane.b32.xlu0 %v6285_v59, %s5152_s16  ;;  %1530 = vmatprep.subr.mxu1 %v663_v23  ;;  %v6369_v23 = vsel %vm1765_vm10, %v6086_v51, %v6138_v42 }
 0x1e8   : > { %1955 = vrot.lane.b32.xlu1 %v6295_v56, %s5152_s16  ;;  %1531 = vmatpush1.msra.mxu1 %v664_v46  ;;  %v6378_v46 = vsel %vm1765_vm10, %v6138_v42, %v6135_v39  ;;  %v6395_v42 = vsel %vm2015_vm8, %v6169_v28, %v5936_v50  ;;  %v8496_v50 = vld [vmem:[#allocation21_spill] sm:$0xff] }
 0x1e9   : > { %1532 = vmatprep.subr.mxu1 %v5827_v25  ;;  %v524_v10 = vpop.permute.xlu0 %523  ;;  %v6317_v25 = vsel %vm1765_vm10, %v6071_v6, %v6086_v51 }
 0x1ea   : > { %v6302_v47 = vpop.permute.xlu1 %519  ;;  %1533 = vmatpush1.msra.mxu1 %v5756_v4  ;;  %v540_v5 = vsel %vm409_vm2, %v522_v22, %v524_v10 }
 0x1eb   : > { %1824 = vrot.lane.b32.xlu0 %v6308_v30, %s5152_s16  ;;  %1465 = vmatprep.subr.mxu0 %v540_v5  ;;  %v541_v4 = vsel %vm409_vm2, %v6302_v47, %v522_v22 }
 0x1ec   : > { %1826 = vrot.lane.b32.xlu1 %v6317_v25, %s5152_s16  ;;  %1466 = vmatpush1.msra.mxu0 %v541_v4 }
 0x1ed   : > { %1467 = vmatprep.subr.mxu0 %v5848_v34  ;;  %v6325_v27 = vpop.permute.xlu0 %1759 }
 0x1ee   : > { %v609_v6 = vpop.permute.xlu1 %608  ;;  %1468 = vmatpush1.msra.mxu0 %v5868_v0 }
 0x1ef   : > { %1822 = vrot.lane.b32.xlu0 %v6330_v35, %s5152_s16  ;;  %v625_v0 = vsel %vm368_vm3, %v607_v8, %v609_v6 }
 0x1f0   : > { %1911 = vrot.lane.b32.xlu1 %v6230_v24, %s5153_s17 }
 0x1f1   : > { %v6337_v21 = vpop.permute.xlu0 %610 }
 0x1f2   : > { %v480_v52 = vpop.permute.xlu1 %479  ;;  %v624_v34 = vsel %vm368_vm3, %v609_v6, %v6337_v21 }
 0x1f3   : > { %1913 = vrot.lane.b32.xlu0 %v6285_v59, %s5153_s17  ;;  %1534 = vmatprep.subr.mxu1 %v624_v34 }
 0x1f4   : > { %1782 = vrot.lane.b32.xlu1 %v6330_v35, %s5153_s17  ;;  %1535 = vmatpush1.msra.mxu1 %v625_v0 }
 0x1f5   : > { %v482_v58 = vpop.permute.xlu0 %481 }
 0x1f6   : > { %v6348_v62 = vpop.permute.xlu1 %493  ;;  %v501_v43 = vsel %vm368_vm3, %v480_v52, %v482_v58 }
 0x1f7   : > { %1784 = vrot.lane.b32.xlu0 %v6308_v30, %s5153_s17  ;;  %1469 = vmatprep.subr.mxu0 %v501_v43  ;;  %v502_v8 = vsel %vm368_vm3, %v6348_v62, %v480_v52 }
 0x1f8   : > { %1796 = vrot.lane.b32.xlu1 %v6357_v44, %s5153_s17  ;;  %1470 = vmatpush1.msra.mxu0 %v502_v8 }
 0x1f9   : > { %v526_v31 = vpop.permute.xlu0 %525 }
 0x1fa   : > { %v6364_v22 = vpop.permute.xlu1 %527  ;;  %v539_v14 = vsel %vm409_vm2, %v524_v10, %v526_v31  ;;  %v6389_v10 = vsel %vm2015_vm8, %v5939_v61, %v6169_v28  ;;  %v8497_v28 = vld [vmem:[#allocation22_spill] sm:$0xff] }
 0x1fb   : > { %1828 = vrot.lane.b32.xlu0 %v6369_v23, %s5152_s16  ;;  %v538_v5 = vsel %vm409_vm2, %v526_v31, %v6364_v22 }
 0x1fc   : > { %1830 = vrot.lane.b32.xlu1 %v6378_v46, %s5152_s16  ;;  %1536 = vmatprep.subr.mxu1 %v538_v5  ;;  %v6429_v5 = vld [vmem:[#allocation7] sm:$0xff] }
 0x1fd   : > { %1537 = vmatpush1.msra.mxu1 %v539_v14  ;;  %v396_v51 = vpop.permute.xlu0 %395 }
 0x1fe   : > { %v398_v4 = vpop.permute.xlu1 %397  ;;  %1538 = vmatprep.subr.mxu1 %v5920_v1 }
 0x1ff   : > { %1539 = vmatpush1.msra.mxu1 %v5857_v45  ;;  %2082 = vrot.lane.b32.xlu0 %v6389_v10, %s5152_s16  ;;  %v415_v6 = vsel %vm409_vm2, %v396_v51, %v398_v4 }
 0x200   : > { %2084 = vrot.lane.b32.xlu1 %v6395_v42, %s5152_s16  ;;  %1471 = vmatprep.subr.mxu0 %v415_v6 }
 0x201   : > { %v6403_v1 = vpop.permute.xlu0 %393 }
 0x202   : > { %v484_v61 = vpop.permute.xlu1 %483  ;;  %v416_v45 = vsel %vm409_vm2, %v6403_v1, %v396_v51  ;;  %v6436_v51 = vsel %vm1890_vm9, %v6048_v53, %v6240_v36  ;;  %v6450_v53 = vsel %vm1890_vm9, %v6240_v36, %v6060_v13 }
 0x203   : > { %1786 = vrot.lane.b32.xlu0 %v6317_v25, %s5153_s17  ;;  %1472 = vmatpush1.msra.mxu0 %v416_v45  ;;  %v500_v43 = vsel %vm368_vm3, %v482_v58, %v484_v61 }
 0x204   : > { %1788 = vrot.lane.b32.xlu1 %v6369_v23, %s5153_s17  ;;  %1473 = vmatprep.subr.mxu0 %v8496_v50 }
 0x205   : > { %1474 = vmatpush1.msra.mxu0 %v8497_v28  ;;  %v6414_v52 = vpop.permute.xlu0 %485 }
 0x206   : > { %v351_v34 = vpop.permute.xlu1 %350  ;;  %v499_v0 = vsel %vm368_vm3, %v484_v61, %v6414_v52 }
 0x207   : > { %2040 = vrot.lane.b32.xlu0 %v6212_v37, %s5153_s17  ;;  %1540 = vmatprep.subr.mxu1 %v499_v0 }
 0x208   : > { %2042 = vrot.lane.b32.xlu1 %v6389_v10, %s5153_s17  ;;  %1541 = vmatpush1.msra.mxu1 %v500_v43 }
 0x209   : > { %v353_v8 = vpop.permute.xlu0 %352 }
 0x20a   : > { %v6425_v31 = vpop.permute.xlu1 %364  ;;  %v375_v14 = vsel %vm368_vm3, %v351_v34, %v353_v8 }
 0x20b   : > { %2086 = vrot.lane.b32.xlu0 %v6188_v38, %s5152_s16  ;;  %1475 = vmatprep.subr.mxu0 %v375_v14  ;;  %v376_v58 = vsel %vm368_vm3, %v6425_v31, %v351_v34 }
 0x20c   : > { %1957 = vrot.lane.b32.xlu1 %v6436_v51, %s5152_s16  ;;  %1476 = vmatpush1.msra.mxu0 %v376_v58  ;;  %v5158_v58 = vmov 0  }
 0x20d   : > { %v400_v6 = vpop.permute.xlu0 %399  ;;  %4881 = vmatmul.mubr.msk.f32.vlgmr.msra.gmra.mxu0 %vm1154_vm6, %v6429_v5  ;;  %4991 = vset.pattern.permute.xlu0 %v5158_v58 }
 0x20e   : > { %v6445_v61 = vpop.permute.xlu1 %401  ;;  %v414_v45 = vsel %vm409_vm2, %v398_v4, %v400_v6  ;;  %1651 = vmatprep.mubr.f32.mxu0 %v8485_v20 }
 0x20f   : > { %1959 = vrot.lane.b32.xlu0 %v6450_v53, %s5152_s16  ;;  %v413_v50 = vsel %vm409_vm2, %v400_v6, %v6445_v61 }
 0x210   : > { %2044 = vrot.lane.b32.xlu1 %v6395_v42, %s5153_s17  ;;  %1542 = vmatprep.subr.mxu1 %v413_v50 }
 0x211   : > { %1543 = vmatpush1.msra.mxu1 %v414_v45  ;;  %v655_v28 = vpop.permute.xlu0 %654 }
 0x212   : > { %v657_v13 = vpop.permute.xlu1 %656  ;;  %1544 = vmatprep.subr.mxu1 %v5993_v32  ;;  %v662_v36 = vsel %vm409_vm2, %v6280_v26, %v655_v28 }
 0x213   : > { %1545 = vmatpush1.msra.mxu1 %v5950_v7  ;;  %1915 = vrot.lane.b32.xlu0 %v6295_v56, %s5153_s17  ;;  %v661_v4 = vsel %vm409_vm2, %v655_v28, %v657_v13  ;;  %v6484_v7 = vsel %vm1765_vm10, %v6135_v39, %v6325_v27 }
 0x214   : > { %1917 = vrot.lane.b32.xlu1 %v6436_v51, %s5153_s17  ;;  %1601 = vmatprep.subr.mxu0 %v661_v4 }
 0x215   : > { %1602 = vmatpush1.msra.mxu0 %v662_v36  ;;  %v355_v34 = vpop.permute.xlu0 %354 }
 0x216   : > { %v6473_v0 = vpop.permute.xlu1 %356  ;;  %1603 = vmatprep.subr.mxu0 %v6015_v15  ;;  %v374_v32 = vsel %vm368_vm3, %v353_v8, %v355_v34 }
 0x217   : > { %1604 = vmatpush1.msra.mxu0 %v5841_v2  ;;  %1961 = vrot.lane.b32.xlu0 %v6276_v3, %s5152_s16  ;;  %v373_v26 = vsel %vm368_vm3, %v355_v34, %v6473_v0  ;;  %v6494_v2 = vsel %vm1765_vm10, %v6325_v27, %v6153_v57  ;;  %v8499_v34 = vld [vmem:[#allocation20_spill] sm:$0xff] }
 0x218   : > { %1832 = vrot.lane.b32.xlu1 %v6484_v7, %s5152_s16  ;;  %1546 = vmatprep.subr.mxu1 %v373_v26 }
 0x219   : > { %1547 = vmatpush1.msra.mxu1 %v374_v32  ;;  %v613_v15 = vpop.permute.xlu0 %612 }
 0x21a   : > { %v615_v43 = vpop.permute.xlu1 %614  ;;  %v623_v39 = vsel %vm368_vm3, %v6337_v21, %v613_v15  ;;  %4882 = vmatmul.mubr.msk.f32.vlgmr.msra.gmra.mxu1 %vm1154_vm6, %v6429_v5 }
 0x21b   : > { %1834 = vrot.lane.b32.xlu0 %v6494_v2, %s5152_s16  ;;  %v622_v8 = vsel %vm368_vm3, %v613_v15, %v615_v43  ;;  %1722 = vmatprep.mubr.f32.mxu1 %v8485_v20 }
 0x21c   : > { %1919 = vrot.lane.b32.xlu1 %v6450_v53, %s5153_s17  ;;  %1605 = vmatprep.subr.mxu0 %v622_v8 }
 0x21d   : > { %1606 = vmatpush1.msra.mxu0 %v623_v39  ;;  %v659_v57 = vpop.permute.xlu0 %658 }
 0x21e   : > { %v530_v27 = vpop.permute.xlu1 %529  ;;  %v667_v21 = vsel %vm409_vm2, %v659_v57, %v6217_v55  ;;  %v660_v14 = vsel %vm409_vm2, %v657_v13, %v659_v57 }
 0x21f   : > { %1790 = vrot.lane.b32.xlu0 %v6378_v46, %s5153_s17  ;;  %1672 = vmatprep.subr.mxu1 %v667_v21 }
 0x220   : > { %1792 = vrot.lane.b32.xlu1 %v6484_v7, %s5153_s17  ;;  %1673 = vmatpush1.msra.mxu1 %v660_v14 }
 0x221   : > { %1674 = vmatprep.subr.mxu1 %v5820_v48  ;;  %v532_v6 = vpop.permute.xlu0 %531  ;;  %v537_v48 = vsel %vm409_vm2, %v6364_v22, %v530_v27 }
 0x222   : > { %v617_v45 = vpop.permute.xlu1 %616  ;;  %1675 = vmatpush1.msra.mxu1 %v6028_v29  ;;  %v536_v55 = vsel %vm409_vm2, %v530_v27, %v532_v6  ;;  %v2473_v29 = vld [vmem:[%s8402_s3] sm:$0xff] }
 0x223   : > { %1836 = vrot.lane.b32.xlu0 %v6357_v44, %s5152_s16  ;;  %1607 = vmatprep.subr.mxu0 %v536_v55  ;;  %v620_v50 = vsel %vm368_vm3, %v617_v45, %v6266_v60  ;;  %v621_v28 = vsel %vm368_vm3, %v615_v43, %v617_v45  ;;  %v8498_v60 = vld [vmem:[#allocation14_spill] sm:$0xff] }
 0x224   : > { %1794 = vrot.lane.b32.xlu1 %v6494_v2, %s5153_s17  ;;  %1676 = vmatprep.subr.mxu1 %v620_v50 }
 0x225   : > { %1608 = vmatpush1.msra.mxu0 %v537_v48  ;;  %1677 = vmatpush1.msra.mxu1 %v621_v28  ;;  %v488_v13 = vpop.permute.xlu0 %487 }
 0x226   : > { %v490_v36 = vpop.permute.xlu1 %489  ;;  %1609 = vmatprep.subr.mxu0 %v8498_v60  ;;  %v498_v4 = vsel %vm368_vm3, %v6414_v52, %v488_v13 }
 0x227   : > { %1610 = vmatpush1.msra.mxu0 %v8499_v34  ;;  %v497_v32 = vsel %vm368_vm3, %v488_v13, %v490_v36  ;;  %2476 = vperm.xlu0 %4991, %v2473_v29  }
 0x228   : > { %1611 = vmatprep.subr.mxu0 %v497_v32  ;;  %2573 = vrot.lane.b32.xlu1 %v8485_v20, %s5147_s1 }
 0x229   : > { %1612 = vmatpush1.msra.mxu0 %v498_v4  ;;  %v534_v22 = vpop.permute.xlu0 %533 }
 0x22a   : > { %v404_v26 = vpop.permute.xlu1 %403  ;;  %v542_v15 = vsel %vm409_vm2, %v534_v22, %v6302_v47  ;;  %v535_v52 = vsel %vm409_vm2, %v532_v6, %v534_v22 }
 0x22b   : > { %1678 = vmatprep.subr.mxu1 %v542_v15  ;;  %3238 = vrot.lane.b32.xlu0 %v8485_v20, %s5148_s27  ;;  %v412_v57 = vsel %vm409_vm2, %v6445_v61, %v404_v26 }
 0x22c   : > { %1679 = vmatpush1.msra.mxu1 %v535_v52 }
 0x22d   : > { %1680 = vmatprep.subr.mxu1 %v5905_v49  ;;  %v406_v43 = vpop.permute.xlu0 %405 }
 0x22e   : > { %v492_v39 = vpop.permute.xlu1 %491  ;;  %1681 = vmatpush1.msra.mxu1 %v6078_v33  ;;  %v411_v8 = vsel %vm409_vm2, %v404_v26, %v406_v43 }
 0x22f   : > { %1613 = vmatprep.subr.mxu0 %v411_v8  ;;  %v495_v47 = vsel %vm368_vm3, %v492_v39, %v6348_v62  ;;  %v496_v27 = vsel %vm368_vm3, %v490_v36, %v492_v39  ;;  %3018 = vrot.lane.b32.xlu0 %v8485_v20, %s5149_s29 }
 0x230   : > { %1682 = vmatprep.subr.mxu1 %v495_v47  ;;  %1614 = vmatpush1.msra.mxu0 %v412_v57 }
 0x231   : > { %1683 = vmatpush1.msra.mxu1 %v496_v27  ;;  %1615 = vmatprep.subr.mxu0 %v6100_v12  ;;  %v359_v49 = vpop.permute.xlu0 %358 }
 0x232   : > { %v361_v33 = vpop.permute.xlu1 %360  ;;  %1616 = vmatpush1.msra.mxu0 %v6001_v18  ;;  %v372_v62 = vsel %vm368_vm3, %v6473_v0, %v359_v49 }
 0x233   : > { %v371_v61 = vsel %vm368_vm3, %v359_v49, %v361_v33  ;;  %2821 = vrot.lane.b32.xlu0 %v8485_v20, %s5150_s11 }
 0x234   : > { %1617 = vmatprep.subr.mxu0 %v371_v61 }
 0x235   : > { %1618 = vmatpush1.msra.mxu0 %v372_v62  ;;  %v408_v21 = vpop.permute.xlu0 %407 }
 0x236   : > { %v2075_v14 = vpop.permute.xlu1 %2074  ;;  %v417_v12 = vsel %vm409_vm2, %v408_v21, %v6403_v1  ;;  %v410_v18 = vsel %vm409_vm2, %v406_v43, %v408_v21  ;;  %4883 = vmatmul.mubr.msk.f32.vlgmr.msra.gmra.mxu0 %vm1154_vm6, %v6429_v5 }
 0x237   : > { %1684 = vmatprep.subr.mxu1 %v417_v12  ;;  %2245 = vmatprep.mubr.f32.mxu0 %v8485_v20 }
 0x238   : > { %1685 = vmatpush1.msra.mxu1 %v410_v18  ;;  %2697 = vrot.lane.b32.xlu0 %v8485_v20, %s5151_s14 }
 0x239   : > { %1686 = vmatprep.subr.mxu1 %v5982_v11  ;;  %v2077_v0 = vpop.permute.xlu0 %2076 }
 0x23a   : > { %v6586_v58 = vpop.permute.xlu1 %2072  ;;  %1687 = vmatpush1.msra.mxu1 %v6109_v40  ;;  %v2093_v1 = vsel %vm409_vm2, %v2075_v14, %v2077_v0 }
 0x23b   : > { %2195 = vmatprep.subr.mxu0 %v2093_v1  ;;  %v2094_v6 = vsel %vm409_vm2, %v6586_v58, %v2075_v14 }
 0x23c   : > { %2196 = vmatpush1.msra.mxu0 %v2094_v6 }
 0x23d   : > { %2197 = vmatprep.subr.mxu0 %v6145_v63  ;;  %v363_v45 = vpop.permute.xlu0 %362 }
 0x23e   : > { %v2033_v55 = vpop.permute.xlu1 %2032  ;;  %2198 = vmatpush1.msra.mxu0 %v6163_v19  ;;  %v369_v11 = vsel %vm368_vm3, %v363_v45, %v6425_v31  ;;  %v370_v40 = vsel %vm368_vm3, %v361_v33, %v363_v45 }
 0x23f   : > { %1688 = vmatprep.subr.mxu1 %v369_v11 }
 0x240   : > { %1689 = vmatpush1.msra.mxu1 %v370_v40 }
 0x241   : > { %v2035_v50 = vpop.permute.xlu0 %2034  ;;  %4884 = vmatmul.mubr.msk.f32.vlgmr.msra.gmra.mxu1 %vm1154_vm6, %v6429_v5 }
 0x242   : > { %v6603_v28 = vpop.permute.xlu1 %2046  ;;  %v2054_v63 = vsel %vm368_vm3, %v2033_v55, %v2035_v50  ;;  %2316 = vmatprep.mubr.f32.mxu1 %v8485_v20 }
 0x243   : > { %2199 = vmatprep.subr.mxu0 %v2054_v63  ;;  %v2055_v19 = vsel %vm368_vm3, %v6603_v28, %v2033_v55 }
 0x244   : > { %2200 = vmatpush1.msra.mxu0 %v2055_v19 }
 0x245   : > { %v2079_v31 = vpop.permute.xlu0 %2078 }
 0x246   : > { %v6611_v48 = vpop.permute.xlu1 %2080  ;;  %v2092_v29 = vsel %vm409_vm2, %v2077_v0, %v2079_v31  ;;  %v6672_v0 = vld [vmem:[#allocation7 + $0x10] sm:$0xff] }
 0x247   : > { %v2091_v5 = vsel %vm409_vm2, %v2079_v31, %v6611_v48 }
 0x248   : > { %2266 = vmatprep.subr.mxu1 %v2091_v5 }
 0x249   : > { %2267 = vmatpush1.msra.mxu1 %v2092_v29  ;;  %v1950_v13 = vpop.permute.xlu0 %1949 }
 0x24a   : > { %v1952_v36 = vpop.permute.xlu1 %1951  ;;  %2268 = vmatprep.subr.mxu1 %v6199_v54 }
 0x24b   : > { %2269 = vmatpush1.msra.mxu1 %v6158_v9  ;;  %v1968_v60 = vsel %vm409_vm2, %v1950_v13, %v1952_v36 }
 0x24c   : > { %2201 = vmatprep.subr.mxu0 %v1968_v60 }
 0x24d   : > { %v6622_v4 = vpop.permute.xlu0 %1947 }
 0x24e   : > { %v2037_v34 = vpop.permute.xlu1 %2036  ;;  %v1969_v32 = vsel %vm409_vm2, %v6622_v4, %v1950_v13 }
 0x24f   : > { %2202 = vmatpush1.msra.mxu0 %v1969_v32  ;;  %v2053_v26 = vsel %vm368_vm3, %v2035_v50, %v2037_v34 }
 0x250   : > { %2203 = vmatprep.subr.mxu0 %v6223_v16 }
 0x251   : > { %2204 = vmatpush1.msra.mxu0 %v6245_v41  ;;  %v6629_v22 = vpop.permute.xlu0 %2038 }
 0x252   : > { %v1908_v54 = vpop.permute.xlu1 %1907  ;;  %v2052_v9 = vsel %vm368_vm3, %v2037_v34, %v6629_v22 }
 0x253   : > { %2270 = vmatprep.subr.mxu1 %v2052_v9 }
 0x254   : > { %2271 = vmatpush1.msra.mxu1 %v2053_v26 }
 0x255   : > { %v1910_v15 = vpop.permute.xlu0 %1909 }
 0x256   : > { %v6636_v52 = vpop.permute.xlu1 %1921  ;;  %v1929_v16 = vsel %vm368_vm3, %v1908_v54, %v1910_v15 }
 0x257   : > { %2205 = vmatprep.subr.mxu0 %v1929_v16  ;;  %v1930_v41 = vsel %vm368_vm3, %v6636_v52, %v1908_v54 }
 0x258   : > { %2206 = vmatpush1.msra.mxu0 %v1930_v41 }
 0x259   : > { %v1954_v43 = vpop.permute.xlu0 %1953 }
 0x25a   : > { %v6643_v39 = vpop.permute.xlu1 %1955  ;;  %v1967_v8 = vsel %vm409_vm2, %v1952_v36, %v1954_v43 }
 0x25b   : > { %v1966_v47 = vsel %vm409_vm2, %v1954_v43, %v6643_v39 }
 0x25c   : > { %2272 = vmatprep.subr.mxu1 %v1966_v47 }
 0x25d   : > { %2273 = vmatpush1.msra.mxu1 %v1967_v8  ;;  %v1825_v57 = vpop.permute.xlu0 %1824 }
 0x25e   : > { %v1827_v27 = vpop.permute.xlu1 %1826  ;;  %2274 = vmatprep.subr.mxu1 %v6285_v59 }
 0x25f   : > { %2275 = vmatpush1.msra.mxu1 %v6230_v24  ;;  %v1843_v49 = vsel %vm409_vm2, %v1825_v57, %v1827_v27 }
 0x260   : > { %2207 = vmatprep.subr.mxu0 %v1843_v49 }
 0x261   : > { %v6654_v33 = vpop.permute.xlu0 %1822 }
 0x262   : > { %v1912_v62 = vpop.permute.xlu1 %1911  ;;  %v1844_v61 = vsel %vm409_vm2, %v6654_v33, %v1825_v57 }
 0x263   : > { %2208 = vmatpush1.msra.mxu0 %v1844_v61  ;;  %v1928_v14 = vsel %vm368_vm3, %v1910_v15, %v1912_v62  ;;  %v8500_v61 = vlaneseq }
 0x264   : > { %2209 = vmatprep.subr.mxu0 %v6308_v30 }
 0x265   : > { %2210 = vmatpush1.msra.mxu0 %v6330_v35  ;;  %v6661_v21 = vpop.permute.xlu0 %1913 }
 0x266   : > { %v1783_v59 = vpop.permute.xlu1 %1782  ;;  %v1927_v24 = vsel %vm368_vm3, %v1912_v62, %v6661_v21 }
 0x267   : > { %2276 = vmatprep.subr.mxu1 %v1927_v24 }
 0x268   : > { %2277 = vmatpush1.msra.mxu1 %v1928_v14 }
 0x269   : > { %v1785_v12 = vpop.permute.xlu0 %1784 }
 0x26a   : > { %v6668_v18 = vpop.permute.xlu1 %1796  ;;  %v1804_v30 = vsel %vm368_vm3, %v1783_v59, %v1785_v12 }
 0x26b   : > { %2211 = vmatprep.subr.mxu0 %v1804_v30  ;;  %v1805_v35 = vsel %vm368_vm3, %v6668_v18, %v1783_v59 }
 0x26c   : > { %2212 = vmatpush1.msra.mxu0 %v1805_v35 }
 0x26d   : > { %4885 = vmatmul.mubr.msk.f32.vlgmr.msra.gmra.mxu0 %vm1154_vm6, %v6672_v0  ;;  %v1829_v1 = vpop.permute.xlu0 %1828 }
 0x26e   : > { %v6679_v6 = vpop.permute.xlu1 %1830  ;;  %v1842_v45 = vsel %vm409_vm2, %v1827_v27, %v1829_v1  ;;  %2387 = vmatprep.mubr.f32.mxu0 %v8485_v20 }
 0x26f   : > { %v1841_v55 = vsel %vm409_vm2, %v1829_v1, %v6679_v6 }
 0x270   : > { %2278 = vmatprep.subr.mxu1 %v1841_v55 }
 0x271   : > { %2279 = vmatpush1.msra.mxu1 %v1842_v45  ;;  %v2083_v11 = vpop.permute.xlu0 %2082  ;;  %v1295_v45 = vpop.f32.mrf.mxu1 }
 0x272   : > { %v2085_v40 = vpop.permute.xlu1 %2084  ;;  %2280 = vmatprep.subr.mxu1 %v6369_v23  ;;  %v2090_v50 = vsel %vm409_vm2, %v6611_v48, %v2083_v11 }
 0x273   : > { %2281 = vmatpush1.msra.mxu1 %v6317_v25  ;;  %v2089_v63 = vsel %vm409_vm2, %v2083_v11, %v2085_v40  ;;  %v1297_v11 = vpop.f32.mrf.mxu1 }
 0x274   : > { %2337 = vmatprep.subr.mxu0 %v2089_v63 }
 0x275   : > { %2338 = vmatpush1.msra.mxu0 %v2090_v50  ;;  %v1787_v19 = vpop.permute.xlu0 %1786 }
 0x276   : > { %v6694_v31 = vpop.permute.xlu1 %1788  ;;  %2339 = vmatprep.subr.mxu0 %v6389_v10  ;;  %v1803_v29 = vsel %vm368_vm3, %v1785_v12, %v1787_v19  ;;  %v1224_v12 = vpop.f32.mrf.mxu0 }
 0x277   : > { %2340 = vmatpush1.msra.mxu0 %v6212_v37  ;;  %v1802_v23 = vsel %vm368_vm3, %v1787_v19, %v6694_v31 }
 0x278   : > { %2282 = vmatprep.subr.mxu1 %v1802_v23  ;;  %v1226_v30 = vpop.f32.mrf.mxu0 }
 0x279   : > { %2283 = vmatpush1.msra.mxu1 %v1803_v29  ;;  %v2041_v25 = vpop.permute.xlu0 %2040 }
 0x27a   : > { %v2043_v48 = vpop.permute.xlu1 %2042  ;;  %4886 = vmatmul.mubr.msk.f32.vlgmr.msra.gmra.mxu1 %vm1154_vm6, %v6672_v0  ;;  %v2051_v10 = vsel %vm368_vm3, %v6629_v22, %v2041_v25 }
 0x27b   : > { %v2050_v5 = vsel %vm368_vm3, %v2041_v25, %v2043_v48  ;;  %2458 = vmatprep.mubr.f32.mxu1 %v8485_v20 }
 0x27c   : > { %2341 = vmatprep.subr.mxu0 %v2050_v5 }
 0x27d   : > { %2342 = vmatpush1.msra.mxu0 %v2051_v10  ;;  %v2087_v37 = vpop.permute.xlu0 %2086 }
 0x27e   : > { %v1958_v13 = vpop.permute.xlu1 %1957  ;;  %v2095_v36 = vsel %vm409_vm2, %v2087_v37, %v6586_v58  ;;  %v2088_v60 = vsel %vm409_vm2, %v2085_v40, %v2087_v37 }
 0x27f   : > { %2408 = vmatprep.subr.mxu1 %v2095_v36  ;;  %v1965_v58 = vsel %vm409_vm2, %v6643_v39, %v1958_v13 }
 0x280   : > { %2409 = vmatpush1.msra.mxu1 %v2088_v60 }
 0x281   : > { %2410 = vmatprep.subr.mxu1 %v6188_v38  ;;  %v1960_v34 = vpop.permute.xlu0 %1959 }
 0x282   : > { %v2045_v32 = vpop.permute.xlu1 %2044  ;;  %2411 = vmatpush1.msra.mxu1 %v6395_v42  ;;  %v1964_v22 = vsel %vm409_vm2, %v1958_v13, %v1960_v34 }
 0x283   : > { %2343 = vmatprep.subr.mxu0 %v1964_v22  ;;  %v2048_v54 = vsel %vm368_vm3, %v2045_v32, %v6603_v28  ;;  %v2049_v9 = vsel %vm368_vm3, %v2043_v48, %v2045_v32 }
 0x284   : > { %2412 = vmatprep.subr.mxu1 %v2048_v54  ;;  %2344 = vmatpush1.msra.mxu0 %v1965_v58 }
 0x285   : > { %2413 = vmatpush1.msra.mxu1 %v2049_v9  ;;  %2345 = vmatprep.subr.mxu0 %v6436_v51  ;;  %v1916_v38 = vpop.permute.xlu0 %1915 }
 0x286   : > { %v1918_v42 = vpop.permute.xlu1 %1917  ;;  %2346 = vmatpush1.msra.mxu0 %v6295_v56  ;;  %v1926_v28 = vsel %vm368_vm3, %v6661_v21, %v1916_v38  ;;  %v6778_v21 = vshrl.u32 %v8500_v61, 7 }
 0x287   : > { %v1925_v26 = vsel %vm368_vm3, %v1916_v38, %v1918_v42 }
 0x288   : > { %2347 = vmatprep.subr.mxu0 %v1925_v26  ;;  %v2519_v24 = vsub.s32 5, %v6778_v21  ;;  %v2527_v35 = vsub.s32 7, %v6778_v21  ;;  %v2499_v36 = vsub.s32 0, %v6778_v21 }
 0x289   : > { %2348 = vmatpush1.msra.mxu0 %v1926_v28  ;;  %v1962_v15 = vpop.permute.xlu0 %1961 }
 0x28a   : > { %v1833_v16 = vpop.permute.xlu1 %1832  ;;  %v1970_v41 = vsel %vm409_vm2, %v1962_v15, %v6622_v4  ;;  %v1963_v51 = vsel %vm409_vm2, %v1960_v34, %v1962_v15 }
 0x28b   : > { %2414 = vmatprep.subr.mxu1 %v1970_v41  ;;  %v1840_v4 = vsel %vm409_vm2, %v6679_v6, %v1833_v16 }
 0x28c   : > { %2415 = vmatpush1.msra.mxu1 %v1963_v51 }
 0x28d   : > { %2416 = vmatprep.subr.mxu1 %v6276_v3  ;;  %v1835_v56 = vpop.permute.xlu0 %1834 }
 0x28e   : > { %v1920_v43 = vpop.permute.xlu1 %1919  ;;  %2417 = vmatpush1.msra.mxu1 %v6450_v53  ;;  %v1839_v39 = vsel %vm409_vm2, %v1833_v16, %v1835_v56 }
 0x28f   : > { %2349 = vmatprep.subr.mxu0 %v1839_v39  ;;  %v1923_v8 = vsel %vm368_vm3, %v1920_v43, %v6636_v52  ;;  %v1924_v47 = vsel %vm368_vm3, %v1918_v42, %v1920_v43  ;;  %v2507_v42 = vsub.s32 2, %v6778_v21 }
 0x290   : > { %2418 = vmatprep.subr.mxu1 %v1923_v8  ;;  %2350 = vmatpush1.msra.mxu0 %v1840_v4  ;;  %v2503_v8 = vsub.s32 1, %v6778_v21 }
 0x291   : > { %2419 = vmatpush1.msra.mxu1 %v1924_v47  ;;  %2351 = vmatprep.subr.mxu0 %v6484_v7  ;;  %v1791_v3 = vpop.permute.xlu0 %1790  ;;  %v1366_v6 = vpop.f32.mrf.mxu0 }
 0x292   : > { %v1793_v53 = vpop.permute.xlu1 %1792  ;;  %2352 = vmatpush1.msra.mxu0 %v6378_v46  ;;  %v1801_v52 = vsel %vm368_vm3, %v6694_v31, %v1791_v3 }
 0x293   : > { %v1800_v57 = vsel %vm368_vm3, %v1791_v3, %v1793_v53  ;;  %v1368_v55 = vpop.f32.mrf.mxu0 }
 0x294   : > { %2353 = vmatprep.subr.mxu0 %v1800_v57 }
 0x295   : > { %2354 = vmatpush1.msra.mxu0 %v1801_v52  ;;  %v1837_v27 = vpop.permute.xlu0 %1836 }
 0x296   : > { %4887 = vmatmul.mubr.msk.f32.vlgmr.msra.gmra.mxu0 %vm1154_vm6, %v6672_v0  ;;  %v1845_v7 = vsel %vm409_vm2, %v1837_v27, %v6654_v33  ;;  %v1838_v46 = vsel %vm409_vm2, %v1835_v56, %v1837_v27  ;;  %v1795_v49 = vpop.permute.xlu1 %1794 }
 0x297   : > { %2420 = vmatprep.subr.mxu1 %v1845_v7  ;;  %3469 = vmatprep.mubr.f32.mxu0 %v8485_v20  ;;  %v1798_v62 = vsel %vm368_vm3, %v1795_v49, %v6668_v18  ;;  %v1799_v33 = vsel %vm368_vm3, %v1793_v53, %v1795_v49  ;;  %v2523_v18 = vsub.s32 6, %v6778_v21 }
 0x298   : > { %2421 = vmatpush1.msra.mxu1 %v1838_v46  ;;  %v2511_v46 = vsub.s32 3, %v6778_v21 }
 0x299   : > { %2422 = vmatprep.subr.mxu1 %v6357_v44  ;;  %v2515_v44 = vsub.s32 4, %v6778_v21 }
 0x29a   : > { %2423 = vmatpush1.msra.mxu1 %v6494_v2  ;;  %v6784_v2 = vld [vmem:[%s8404_s5] sm:$0xff] }
 0x29b   : > { %2424 = vmatprep.subr.mxu1 %v1798_v62  ;;  %v6787_v59 = vrot.slane %v6784_v2, %v2515_v44  ;;  %v6791_v14 = vrot.slane %v6784_v2, %v2519_v24  ;;  %v6799_v1 = vrot.slane %v6784_v2, %v2527_v35  ;;  %v2500_v22 = vrot.slane %v6784_v2, %v2499_v36 }
 0x29c   : > { %2425 = vmatpush1.msra.mxu1 %v1799_v33  ;;  %v2508_v16 = vrot.slane %v6784_v2, %v2507_v42  ;;  %v2504_v53 = vrot.slane %v6784_v2, %v2503_v8  ;;  %v2512_v33 = vrot.slane %v6784_v2, %v2511_v46 }
 0x29d   : > { %4888 = vmatmul.mubr.msk.f32.vlgmr.msra.gmra.mxu1 %vm1154_vm6, %v6672_v0  ;;  %v6795_v0 = vrot.slane %v6784_v2, %v2523_v18 }
 0x29e   : > { %3540 = vmatprep.mubr.f32.mxu1 %v8485_v20  ;;  %v6801_v50 = vpop.f32.mrf.mxu1 }
 0x2a0   : > { %v1439_v31 = vpop.f32.mrf.mxu1 }
 0x2a2   : > { %v6808_v34 = vpop.permute.xlu0 %2476 }
 0x2cd   : > { %v1511_v40 = vpop.f32.mrf.mxu0 }
 0x2ce   : > { %v1512_v13 = vadd.f32 %v1511_v40, %v1224_v12 }
 0x2cf   : > { %v1513_v63 = vpop.f32.mrf.mxu0 }
 0x2d0   : > { %v1514_v43 = vadd.f32 %v1513_v63, %v1226_v30 }
 0x2da   : > { %v1582_v25 = vpop.f32.mrf.mxu1 }
 0x2db   : > { %v1583_v38 = vadd.f32 %v1582_v25, %v1295_v45  ;;  %v6954_v25 = vpop.permute.xlu1 %2573 }
 0x2dc   : > { %v1584_v48 = vpop.f32.mrf.mxu1 }
 0x2dd   : > { %v1585_v3 = vadd.f32 %v1584_v48, %v1297_v11 }
 0x2f6   : > { %v1653_v19 = vpop.f32.mrf.mxu0 }
 0x2f7   : > { %v1654_v49 = vadd.f32 %v1653_v19, %v1366_v6 }
 0x2f8   : > { %v1655_v29 = vpop.f32.mrf.mxu0 }
 0x2f9   : > { %v1656_v23 = vadd.f32 %v1655_v29, %v1368_v55 }
 0x301   : > { %v6803_v10 = vpop.f32.mrf.mxu1 }
 0x302   : > { %v1725_v19 = vadd.f32 %v6803_v10, %v6801_v50 }
 0x303   : > { %v1726_v5 = vpop.f32.mrf.mxu1 }
 0x304   : > { %v6805_v37 = vadd.f32 %v1726_v5, %v1439_v31 }
 0x32d   : > { %v2247_v60 = vpop.f32.mrf.mxu0 }
 0x32e   : > { %v2465_v32 = vadd.f32 %v2247_v60, %v1512_v13 }
 0x32f   : > { %v2249_v56 = vpop.f32.mrf.mxu0 }
 0x330   : > { %v2479_v54 = vadd.f32 %v6808_v34, %v2465_v32  ;;  %v2466_v39 = vadd.f32 %v2249_v56, %v1514_v43 }
 0x332   : > { %v2487_v58 = vmax.f32 %v2479_v54, 0.0  ;;  %v2480_v4 = vadd.f32 %v6808_v34, %v2466_v39 }
 0x334   : > { %v6812_v9 = vmul.f32 %v2500_v22, %v2487_v58  ;;  %v2488_v52 = vmax.f32 %v2480_v4, 0.0 }
 0x336   : > { %2575 = vrot.lane.b32.xlu1 %v6812_v9, %s5147_s1  ;;  %v6842_v27 = vmul.f32 %v2504_v53, %v2488_v52 }
 0x33a   : > { %v2318_v28 = vpop.f32.mrf.mxu1  ;;  %3020 = vrot.lane.b32.xlu1 %v6812_v9, %s5149_s29 }
 0x33b   : > { %v2467_v26 = vadd.f32 %v2318_v28, %v1583_v38 }
 0x33c   : > { %v2320_v47 = vpop.f32.mrf.mxu1 }
 0x33d   : > { %v2481_v15 = vadd.f32 %v6808_v34, %v2467_v26  ;;  %v2468_v57 = vadd.f32 %v2320_v47, %v1585_v3 }
 0x33f   : > { %v2489_v41 = vmax.f32 %v2481_v15, 0.0  ;;  %v2482_v7 = vadd.f32 %v6808_v34, %v2468_v57 }
 0x341   : > { %v6821_v51 = vmul.f32 %v2508_v16, %v2489_v41  ;;  %v2490_v62 = vmax.f32 %v2482_v7, 0.0 }
 0x343   : > { %3226 = vrot.lane.b32.xlu0 %v6821_v51, %s5148_s27  ;;  %3024 = vrot.lane.b32.xlu1 %v6821_v51, %s5149_s29  ;;  %v6855_v21 = vmul.f32 %v2512_v33, %v2490_v62 }
 0x347   : > { %3222 = vrot.lane.b32.xlu0 %v6812_v9, %s5148_s27  ;;  %2823 = vrot.lane.b32.xlu1 %v6812_v9, %s5150_s11 }
 0x34b   : > { %3132 = vrot.lane.b32.xlu0 %v6812_v9, %s5153_s17  ;;  %2827 = vrot.lane.b32.xlu1 %v6821_v51, %s5150_s11 }
 0x34f   : > { %3136 = vrot.lane.b32.xlu0 %v6821_v51, %s5153_s17  ;;  %2699 = vrot.lane.b32.xlu1 %v6812_v9, %s5151_s14 }
 0x353   : > { %2577 = vrot.lane.b32.xlu0 %v6842_v27, %s5147_s1  ;;  %2703 = vrot.lane.b32.xlu1 %v6821_v51, %s5151_s14 }
 0x356   : > { %v2389_v61 = vpop.f32.mrf.mxu0 }
 0x357   : > { %v2469_v44 = vadd.f32 %v2389_v61, %v1654_v49  ;;  %3022 = vrot.lane.b32.xlu0 %v6842_v27, %s5149_s29  ;;  %2579 = vrot.lane.b32.xlu1 %v6821_v51, %s5147_s1 }
 0x358   : > { %v2391_v24 = vpop.f32.mrf.mxu0 }
 0x359   : > { %v2483_v12 = vadd.f32 %v6808_v34, %v2469_v44  ;;  %v2470_v18 = vadd.f32 %v2391_v24, %v1656_v23 }
 0x35b   : > { %v2491_v30 = vmax.f32 %v2483_v12, 0.0  ;;  %v2484_v35 = vadd.f32 %v6808_v34, %v2470_v18  ;;  %3026 = vrot.lane.b32.xlu0 %v6855_v21, %s5149_s29  ;;  %3176 = vrot.lane.b32.xlu1 %v6821_v51, %s5152_s16 }
 0x35d   : > { %v6864_v2 = vmul.f32 %v6787_v59, %v2491_v30  ;;  %v2492_v6 = vmax.f32 %v2484_v35, 0.0  ;;  %v2460_v45 = vpop.f32.mrf.mxu1 }
 0x35e   : > { %v2471_v31 = vadd.f32 %v2460_v45, %v1725_v19 }
 0x35f   : > { %8501 = vst [vmem:[#allocation18_spill] sm:$0xff] %v6864_v2  ;;  %v6867_v55 = vmul.f32 %v6791_v14, %v2492_v6  ;;  %2825 = vrot.lane.b32.xlu0 %v6842_v27, %s5150_s11  ;;  %3172 = vrot.lane.b32.xlu1 %v6812_v9, %s5152_s16  ;;  %v2462_v11 = vpop.f32.mrf.mxu1 }
 0x360   : > { %v2472_v40 = vadd.f32 %v2462_v11, %v6805_v37 }
 0x361   : > { %8502 = vst [vmem:[#allocation16_spill] sm:$0xff] %v6867_v55 }
 0x362   : > { %v2486_v63 = vadd.f32 %v6808_v34, %v2472_v40 }
 0x363   : > { %2829 = vrot.lane.b32.xlu0 %v6855_v21, %s5150_s11  ;;  %4246 = vrot.lane.b32.xlu1 %v6821_v51, %s5154_s13 }
 0x364   : > { %v2494_v59 = vmax.f32 %v2486_v63, 0.0 }
 0x366   : > { %v6880_v14 = vmul.f32 %v6799_v1, %v2494_v59  ;;  %v2485_v1 = vadd.f32 %v6808_v34, %v2471_v31 }
 0x367   : > { %2701 = vrot.lane.b32.xlu0 %v6842_v27, %s5151_s14  ;;  %3224 = vrot.lane.b32.xlu1 %v6842_v27, %s5148_s27 }
 0x368   : > { %8503 = vst [vmem:[#allocation15_spill] sm:$0xff] %v6880_v14  ;;  %v2493_v50 = vmax.f32 %v2485_v1, 0.0 }
 0x36a   : > { %v6906_v29 = vmul.f32 %v6795_v0, %v2493_v50  ;;  %v6944_v0 = vpop.permute.xlu0 %3238 }
 0x36b   : > { %2705 = vrot.lane.b32.xlu0 %v6855_v21, %s5151_s14  ;;  %3228 = vrot.lane.b32.xlu1 %v6855_v21, %s5148_s27 }
 0x36e   : > { %v3019_v23 = vpop.permute.xlu0 %3018 }
 0x36f   : > { %2581 = vrot.lane.b32.xlu0 %v6855_v21, %s5147_s1  ;;  %3134 = vrot.lane.b32.xlu1 %v6842_v27, %s5153_s17 }
 0x372   : > { %v6960_v48 = vpop.permute.xlu0 %2821 }
 0x373   : > { %3174 = vrot.lane.b32.xlu0 %v6842_v27, %s5152_s16  ;;  %3138 = vrot.lane.b32.xlu1 %v6855_v21, %s5153_s17 }
 0x376   : > { %v6972_v5 = vpop.permute.xlu0 %2697 }
 0x377   : > { %3178 = vrot.lane.b32.xlu0 %v6855_v21, %s5152_s16  ;;  %3028 = vrot.lane.b32.xlu1 %v6864_v2, %s5149_s29 }
 0x37b   : > { %4244 = vrot.lane.b32.xlu0 %v6842_v27, %s5154_s13  ;;  %3032 = vrot.lane.b32.xlu1 %v6906_v29, %s5149_s29 }
 0x37f   : > { %3230 = vrot.lane.b32.xlu0 %v6864_v2, %s5148_s27  ;;  %3234 = vrot.lane.b32.xlu1 %v6906_v29, %s5148_s27 }
 0x383   : > { %2587 = vrot.lane.b32.xlu0 %v6906_v29, %s5147_s1  ;;  %2831 = vrot.lane.b32.xlu1 %v6864_v2, %s5150_s11 }
 0x387   : > { %3034 = vrot.lane.b32.xlu0 %v6880_v14, %s5149_s29  ;;  %2835 = vrot.lane.b32.xlu1 %v6906_v29, %s5150_s11 }
 0x38b   : > { %3030 = vrot.lane.b32.xlu0 %v6867_v55, %s5149_s29  ;;  %2707 = vrot.lane.b32.xlu1 %v6864_v2, %s5151_s14  ;;  %s4876_s29 = sshll.u32 %s5313_s18, 6 }
 0x38f   : > { %2837 = vrot.lane.b32.xlu0 %v6880_v14, %s5150_s11  ;;  %2711 = vrot.lane.b32.xlu1 %v6906_v29, %s5151_s14 }
 0x393   : > { %2713 = vrot.lane.b32.xlu0 %v6880_v14, %s5151_s14  ;;  %2583 = vrot.lane.b32.xlu1 %v6864_v2, %s5147_s1 }
 0x397   : > { %2833 = vrot.lane.b32.xlu0 %v6867_v55, %s5150_s11  ;;  %3180 = vrot.lane.b32.xlu1 %v6864_v2, %s5152_s16  ;;  %s8349_s11 = scalar_lea.vmem [#allocation10], %s4876_s29 }
 0x39b   : > { %2585 = vrot.lane.b32.xlu0 %v6867_v55, %s5147_s1  ;;  %3232 = vrot.lane.b32.xlu1 %v6867_v55, %s5148_s27 }
 0x39f   : > { %3146 = vrot.lane.b32.xlu0 %v6880_v14, %s5153_s17  ;;  %3236 = vrot.lane.b32.xlu1 %v6880_v14, %s5148_s27 }
 0x3a3   : > { %4248 = vrot.lane.b32.xlu0 %v6855_v21, %s5154_s13  ;;  %2589 = vrot.lane.b32.xlu1 %v6880_v14, %s5147_s1 }
 0x3a7   : > { %4252 = vrot.lane.b32.xlu0 %v6867_v55, %s5154_s13  ;;  %2709 = vrot.lane.b32.xlu1 %v6867_v55, %s5151_s14  ;;  %s4906_s14 = sshll.u32 %s5216_s25, 10  ;;  %s5076_s25 = sshll.u32 %s5159_s8, 4  ;;  %s5077_s25 = int_to_ptr.vmem [resolvable:$false] %s5076_s25 }
 0x3a8   : > { %v6962_v10 = vpop.permute.xlu1 %2575  ;;  %s5078_s15 = scalar_lea.vmem %s5077_s25, 2048 }
 0x3ab   : > { %4256 = vrot.lane.b32.xlu0 %v6880_v14, %s5154_s13  ;;  %4250 = vrot.lane.b32.xlu1 %v6864_v2, %s5154_s13 }
 0x3ac   : > { %v6974_v37 = vpop.permute.xlu1 %3020 }
 0x3ad   : > { %v7054_v53 = vsel %vm785_vm1, %v3019_v23, %v6974_v37 }
 0x3af   : > { %4120 = vrot.lane.b32.xlu0 %v6842_v27, %s5156_s10  ;;  %4242 = vrot.lane.b32.xlu1 %v6812_v9, %s5154_s13 }
 0x3b3   : > { %4124 = vrot.lane.b32.xlu0 %v6855_v21, %s5156_s10  ;;  %4258 = vrot.lane.b32.xlu1 %v8485_v20, %s5154_s13 }
 0x3b5   : > { %v6980_v13 = vpop.permute.xlu1 %3024  ;;  %v3227_v36 = vpop.permute.xlu0 %3226 }
 0x3b7   : > { %4128 = vrot.lane.b32.xlu0 %v6867_v55, %s5156_s10  ;;  %4122 = vrot.lane.b32.xlu1 %v6821_v51, %s5156_s10 }
 0x3b9   : > { %v6986_v60 = vpop.permute.xlu1 %2823  ;;  %v3223_v34 = vpop.permute.xlu0 %3222 }
 0x3bb   : > { %3184 = vrot.lane.b32.xlu0 %v6906_v29, %s5152_s16  ;;  %4126 = vrot.lane.b32.xlu1 %v6864_v2, %s5156_s10 }
 0x3bd   : > { %v6992_v32 = vpop.permute.xlu1 %2827  ;;  %v6994_v22 = vpop.permute.xlu0 %3132 }
 0x3bf   : > { %4132 = vrot.lane.b32.xlu0 %v6880_v14, %s5156_s10  ;;  %4118 = vrot.lane.b32.xlu1 %v6812_v9, %s5156_s10 }
 0x3c1   : > { %v7000_v54 = vpop.permute.xlu1 %2699  ;;  %v7002_v58 = vpop.permute.xlu0 %3136 }
 0x3c3   : > { %3996 = vrot.lane.b32.xlu0 %v6842_v27, %s5157_s9  ;;  %3182 = vrot.lane.b32.xlu1 %v6867_v55, %s5152_s16 }
 0x3c5   : > { %v7008_v38 = vpop.permute.xlu1 %2703  ;;  %v7010_v42 = vpop.permute.xlu0 %2577 }
 0x3c7   : > { %4000 = vrot.lane.b32.xlu0 %v6855_v21, %s5157_s9  ;;  %3186 = vrot.lane.b32.xlu1 %v6880_v14, %s5152_s16 }
 0x3c9   : > { %v7016_v28 = vpop.permute.xlu1 %2579  ;;  %v3023_v26 = vpop.permute.xlu0 %3022 }
 0x3ca   : > { %v7097_v18 = vsel %vm785_vm1, %v3023_v26, %v6980_v13  ;;  %v7105_v6 = vsel %vm785_vm1, %v6974_v37, %v3023_v26 }
 0x3cb   : > { %4004 = vrot.lane.b32.xlu0 %v6867_v55, %s5157_s9  ;;  %4134 = vrot.lane.b32.xlu1 %v8485_v20, %s5156_s10  ;;  %8504 = vst [vmem:[#allocation19_spill] sm:$0xff] %v7097_v18 }
 0x3cd   : > { %v7022_v15 = vpop.permute.xlu1 %3176  ;;  %v3027_v16 = vpop.permute.xlu0 %3026 }
 0x3ce   : > { %v7117_v40 = vsel %vm785_vm1, %v6980_v13, %v3027_v16 }
 0x3cf   : > { %3140 = vrot.lane.b32.xlu0 %v6864_v2, %s5153_s17  ;;  %3998 = vrot.lane.b32.xlu1 %v6821_v51, %s5157_s9  ;;  %8505 = vst [vmem:[#allocation17_spill] sm:$0xff] %v7117_v40 }
 0x3d1   : > { %v7028_v41 = vpop.permute.xlu1 %3172  ;;  %v7030_v56 = vpop.permute.xlu0 %2825 }
 0x3d3   : > { %3144 = vrot.lane.b32.xlu0 %v6906_v29, %s5153_s17  ;;  %4002 = vrot.lane.b32.xlu1 %v6864_v2, %s5157_s9 }
 0x3d5   : > { %v7036_v43 = vpop.permute.xlu1 %4246  ;;  %v7038_v39 = vpop.permute.xlu0 %2829 }
 0x3d7   : > { %4008 = vrot.lane.b32.xlu0 %v6880_v14, %s5157_s9  ;;  %3994 = vrot.lane.b32.xlu1 %v6812_v9, %s5157_s9 }
 0x3d9   : > { %v3225_v8 = vpop.permute.xlu1 %3224  ;;  %v7044_v4 = vpop.permute.xlu0 %2701 }
 0x3da   : > { %v7076_v62 = vsel %vm991_vm0, %v3225_v8, %v3227_v36  ;;  %v7079_v33 = vsel %vm991_vm0, %v3223_v34, %v3225_v8 }
 0x3db   : > { %4254 = vrot.lane.b32.xlu0 %v6906_v29, %s5154_s13  ;;  %3142 = vrot.lane.b32.xlu1 %v6867_v55, %s5153_s17 }
 0x3dd   : > { %v3229_v47 = vpop.permute.xlu1 %3228  ;;  %v7050_v3 = vpop.permute.xlu0 %2705 }
 0x3de   : > { %v7065_v7 = vsel %vm991_vm0, %v3227_v36, %v3229_v47 }
 0x3df   : > { %4010 = vrot.lane.b32.xlu1 %v8485_v20, %s5157_s9  ;;  %3052 = vrot.lane.b32.xlu0 %v7054_v53, %s5153_s17 }
 0x3e1   : > { %v7060_v52 = vpop.permute.xlu1 %3134  ;;  %v7062_v57 = vpop.permute.xlu0 %2581 }
 0x3e3   : > { %3092 = vrot.lane.b32.xlu1 %v7054_v53, %s5152_s16  ;;  %3300 = vrot.lane.b32.xlu0 %v7065_v7, %s5152_s16 }
 0x3e5   : > { %v7071_v46 = vpop.permute.xlu1 %3138  ;;  %v7073_v49 = vpop.permute.xlu0 %3174 }
 0x3e7   : > { %3298 = vrot.lane.b32.xlu1 %v7076_v62, %s5152_s16  ;;  %3296 = vrot.lane.b32.xlu0 %v7079_v33, %s5152_s16 }
 0x3e9   : > { %v7085_v61 = vpop.permute.xlu1 %3028  ;;  %v7087_v44 = vpop.permute.xlu0 %3178 }
 0x3ea   : > { %v7130_v31 = vsel %vm785_vm1, %v3027_v16, %v7085_v61 }
 0x3eb   : > { %3256 = vrot.lane.b32.xlu1 %v7079_v33, %s5153_s17  ;;  %3258 = vrot.lane.b32.xlu0 %v7076_v62, %s5153_s17  ;;  %8506 = vst [vmem:[#allocation21_spill] sm:$0xff] %v7130_v31 }
 0x3ed   : > { %v3033_v24 = vpop.permute.xlu1 %3032  ;;  %v7093_v12 = vpop.permute.xlu0 %4244 }
 0x3ef   : > { %3260 = vrot.lane.b32.xlu1 %v7065_v7, %s5153_s17  ;;  %3096 = vrot.lane.b32.xlu0 %v7097_v18, %s5152_s16 }
 0x3f1   : > { %v3235_v30 = vpop.permute.xlu1 %3234  ;;  %v3231_v35 = vpop.permute.xlu0 %3230 }
 0x3f2   : > { %v7120_v63 = vsel %vm991_vm0, %v3229_v47, %v3231_v35 }
 0x3f3   : > { %3056 = vrot.lane.b32.xlu0 %v7097_v18, %s5153_s17  ;;  %3094 = vrot.lane.b32.xlu1 %v7105_v6, %s5152_s16 }
 0x3f5   : > { %v7111_v45 = vpop.permute.xlu1 %2831  ;;  %v7113_v11 = vpop.permute.xlu0 %2587 }
 0x3f7   : > { %3098 = vrot.lane.b32.xlu1 %v7117_v40, %s5152_s16  ;;  %3262 = vrot.lane.b32.xlu0 %v7120_v63, %s5153_s17 }
 0x3f9   : > { %v7126_v59 = vpop.permute.xlu1 %2835  ;;  %v3035_v19 = vpop.permute.xlu0 %3034 }
 0x3fa   : > { %v7166_v2 = vsel %vm785_vm1, %v3033_v24, %v3035_v19 }
 0x3fb   : > { %3054 = vrot.lane.b32.xlu1 %v7105_v6, %s5153_s17  ;;  %3100 = vrot.lane.b32.xlu0 %v7130_v31, %s5152_s16  ;;  %8507 = vst [vmem:[#allocation22_spill] sm:$0xff] %v7166_v2 }
 0x3fd   : > { %v7136_v1 = vpop.permute.xlu1 %2707  ;;  %v3031_v50 = vpop.permute.xlu0 %3030 }
 0x3ff   : > { %3058 = vrot.lane.b32.xlu1 %v7117_v40, %s5153_s17 }
 0x401   : > { %v7140_v23 = vpop.permute.xlu1 %2711  ;;  %v7142_v37 = vpop.permute.xlu0 %2837 }
 0x403   : > { %3302 = vrot.lane.b32.xlu1 %v7120_v63, %s5152_s16 }
 0x405   : > { %v7146_v13 = vpop.permute.xlu1 %2583  ;;  %v7148_v36 = vpop.permute.xlu0 %2713 }
 0x407   : > { %3060 = vrot.lane.b32.xlu1 %v7130_v31, %s5153_s17 }
 0x409   : > { %v7152_v34 = vpop.permute.xlu1 %3180  ;;  %v7154_v26 = vpop.permute.xlu0 %2833 }
 0x40d   : > { %v3233_v16 = vpop.permute.xlu1 %3232  ;;  %v7156_v8 = vpop.permute.xlu0 %2585 }
 0x40e   : > { %v7159_v47 = vsel %vm991_vm0, %v3231_v35, %v3233_v16  ;;  %v7181_v18 = vsel %vm991_vm0, %v3233_v16, %v3235_v30 }
 0x40f   : > { %3304 = vrot.lane.b32.xlu0 %v7159_v47, %s5152_s16 }
 0x411   : > { %v3237_v20 = vpop.permute.xlu1 %3236  ;;  %v7163_v14 = vpop.permute.xlu0 %3146 }
 0x412   : > { %v7170_v31 = vsel %vm991_vm0, %v3237_v20, %v6944_v0  ;;  %v7184_v19 = vsel %vm991_vm0, %v3235_v30, %v3237_v20 }
 0x413   : > { %8508 = vst [vmem:[#allocation14_spill] sm:$0xff] %v7170_v31  ;;  %3270 = vrot.lane.b32.xlu1 %v7170_v31, %s5153_s17  ;;  %3066 = vrot.lane.b32.xlu0 %v7166_v2, %s5153_s17  ;;  %8510 = vst [vmem:[#allocation23_spill] sm:$0xff] %v7184_v19 }
 0x415   : > { %v7176_v35 = vpop.permute.xlu1 %2589  ;;  %v7178_v55 = vpop.permute.xlu0 %4248 }
 0x416   : > { %8509 = vst [vmem:[#allocation20_spill] sm:$0xff] %v7178_v55 }
 0x417   : > { %3306 = vrot.lane.b32.xlu1 %v7181_v18, %s5152_s16  ;;  %3308 = vrot.lane.b32.xlu0 %v7184_v19, %s5152_s16 }
 0x419   : > { %v7190_v0 = vpop.permute.xlu1 %2709  ;;  %v7192_v40 = vpop.permute.xlu0 %4252 }
 0x41a   : > { %8511 = vst [vmem:[#allocation24_spill] sm:$0xff] %v7192_v40  ;;  %v7211_v40 = vsel %vm785_vm1, %v3031_v50, %v3033_v24 }
 0x41b   : > { %3310 = vrot.lane.b32.xlu1 %v7170_v31, %s5152_s16  ;;  %3264 = vrot.lane.b32.xlu0 %v7159_v47, %s5153_s17  ;;  %8514 = vst [vmem:[#allocation27_spill] sm:$0xff] %v7211_v40  ;;  %v7215_v31 = vsel %vm785_vm1, %v7085_v61, %v3031_v50  ;;  %v7236_v50 = vsel %vm587_vm4, %v6986_v60, %v7030_v56 }
 0x41c   : > { %8515 = vst [vmem:[#allocation28_spill] sm:$0xff] %v7215_v31  ;;  %8520 = vst [vmem:[#allocation33_spill] sm:$0xff] %v7236_v50 }
 0x41d   : > { %v7198_v16 = vpop.permute.xlu1 %4250  ;;  %v7200_v20 = vpop.permute.xlu0 %4256 }
 0x41e   : > { %8512 = vst [vmem:[#allocation25_spill] sm:$0xff] %v7200_v20 }
 0x41f   : > { %3266 = vrot.lane.b32.xlu1 %v7181_v18, %s5153_s17  ;;  %3268 = vrot.lane.b32.xlu0 %v7184_v19, %s5153_s17 }
 0x421   : > { %v7206_v30 = vpop.permute.xlu1 %4242  ;;  %v7208_v55 = vpop.permute.xlu0 %4120 }
 0x422   : > { %8513 = vst [vmem:[#allocation26_spill] sm:$0xff] %v7208_v55 }
 0x423   : > { %3104 = vrot.lane.b32.xlu0 %v7211_v40, %s5152_s16  ;;  %3102 = vrot.lane.b32.xlu1 %v7215_v31, %s5152_s16 }
 0x425   : > { %v7221_v20 = vpop.permute.xlu1 %4258  ;;  %v7223_v19 = vpop.permute.xlu0 %4124 }
 0x426   : > { %8516 = vst [vmem:[#allocation29_spill] sm:$0xff] %v7221_v20  ;;  %8517 = vst [vmem:[#allocation30_spill] sm:$0xff] %v7223_v19 }
 0x427   : > { %3062 = vrot.lane.b32.xlu0 %v7215_v31, %s5153_s17  ;;  %3106 = vrot.lane.b32.xlu1 %v7166_v2, %s5152_s16  ;;  %v7249_v2 = vsel %vm587_vm4, %v6992_v32, %v7038_v39 }
 0x428   : > { %8522 = vst [vmem:[#allocation35_spill] sm:$0xff] %v7249_v2 }
 0x429   : > { %v7229_v24 = vpop.permute.xlu1 %4122  ;;  %v7231_v61 = vpop.permute.xlu0 %4128 }
 0x42a   : > { %8518 = vst [vmem:[#allocation31_spill] sm:$0xff] %v7229_v24  ;;  %8519 = vst [vmem:[#allocation32_spill] sm:$0xff] %v7231_v61  ;;  %v7254_v61 = vsel %vm587_vm4, %v7030_v56, %v6992_v32  ;;  %v7267_v24 = vsel %vm587_vm4, %v6960_v48, %v6986_v60  ;;  %v7272_v32 = vsel %vm587_vm4, %v7038_v39, %v7111_v45 }
 0x42b   : > { %2897 = vrot.lane.b32.xlu0 %v7236_v50, %s5152_s16  ;;  %3064 = vrot.lane.b32.xlu1 %v7211_v40, %s5153_s17  ;;  %8523 = vst [vmem:[#allocation36_spill] sm:$0xff] %v7254_v61  ;;  %8526 = vst [vmem:[#allocation39_spill] sm:$0xff] %v7267_v24 }
 0x42c   : > { %8527 = vst [vmem:[#allocation40_spill] sm:$0xff] %v7272_v32 }
 0x42d   : > { %v7242_v19 = vpop.permute.xlu1 %4126  ;;  %v7244_v55 = vpop.permute.xlu0 %3184 }
 0x42e   : > { %8521 = vst [vmem:[#allocation34_spill] sm:$0xff] %v7242_v19 }
 0x42f   : > { %2901 = vrot.lane.b32.xlu0 %v7249_v2, %s5152_s16  ;;  %2899 = vrot.lane.b32.xlu1 %v7254_v61, %s5152_s16 }
 0x431   : > { %v7260_v40 = vpop.permute.xlu1 %4118  ;;  %v7262_v19 = vpop.permute.xlu0 %4132 }
 0x432   : > { %8524 = vst [vmem:[#allocation37_spill] sm:$0xff] %v7260_v40  ;;  %8525 = vst [vmem:[#allocation38_spill] sm:$0xff] %v7262_v19 }
 0x433   : > { %2895 = vrot.lane.b32.xlu0 %v7267_v24, %s5152_s16  ;;  %2903 = vrot.lane.b32.xlu1 %v7272_v32, %s5152_s16 }
 0x435   : > { %v7278_v56 = vpop.permute.xlu1 %3182  ;;  %v7280_v40 = vpop.permute.xlu0 %3996 }
 0x436   : > { %8528 = vst [vmem:[#allocation41_spill] sm:$0xff] %v7280_v40  ;;  %v7301_v40 = vsel %vm587_vm4, %v7126_v59, %v7142_v37  ;;  %v7319_v37 = vsel %vm462_vm5, %v7044_v4, %v7008_v38 }
 0x437   : > { %2855 = vrot.lane.b32.xlu0 %v7267_v24, %s5153_s17  ;;  %4130 = vrot.lane.b32.xlu1 %v6906_v29, %s5156_s10  ;;  %8532 = vst [vmem:[#allocation45_spill] sm:$0xff] %v7301_v40  ;;  %8535 = vst [vmem:[#allocation48_spill] sm:$0xff] %v7319_v37  ;;  %s4776_s10 = scalar_lea.hbm %s8405_s6, %s4906_s14 }
 0x439   : > { %v7286_v48 = vpop.permute.xlu1 %3186  ;;  %v7288_v60 = vpop.permute.xlu0 %4000 }
 0x43a   : > { %8529 = vst [vmem:[#allocation42_spill] sm:$0xff] %v7288_v60 }
 0x43b   : > { %2859 = vrot.lane.b32.xlu0 %v7254_v61, %s5153_s17  ;;  %2857 = vrot.lane.b32.xlu1 %v7236_v50, %s5153_s17 }
 0x43d   : > { %v7294_v39 = vpop.permute.xlu1 %4134  ;;  %v7296_v19 = vpop.permute.xlu0 %4004 }
 0x43e   : > { %8530 = vst [vmem:[#allocation43_spill] sm:$0xff] %v7294_v39  ;;  %8531 = vst [vmem:[#allocation44_spill] sm:$0xff] %v7296_v19  ;;  %v7314_v39 = vsel %vm462_vm5, %v7000_v54, %v7044_v4  ;;  %v7337_v4 = vsel %vm462_vm5, %v7050_v3, %v7136_v1 }
 0x43f   : > { %2861 = vrot.lane.b32.xlu1 %v7249_v2, %s5153_s17  ;;  %2869 = vrot.lane.b32.xlu0 %v7301_v40, %s5153_s17  ;;  %8534 = vst [vmem:[#allocation47_spill] sm:$0xff] %v7314_v39  ;;  %v7332_v2 = vsel %vm462_vm5, %v7008_v38, %v7050_v3  ;;  %8539 = vst [vmem:[#allocation52_spill] sm:$0xff] %v7337_v4  ;;  %v7350_v38 = vsel %vm462_vm5, %v6972_v5, %v7000_v54 }
 0x440   : > { %8538 = vst [vmem:[#allocation51_spill] sm:$0xff] %v7332_v2  ;;  %8542 = vst [vmem:[#allocation55_spill] sm:$0xff] %v7350_v38 }
 0x441   : > { %v7307_v60 = vpop.permute.xlu1 %3998  ;;  %v7309_v61 = vpop.permute.xlu0 %3140 }
 0x442   : > { %8533 = vst [vmem:[#allocation46_spill] sm:$0xff] %v7307_v60 }
 0x443   : > { %2773 = vrot.lane.b32.xlu1 %v7314_v39, %s5152_s16  ;;  %2775 = vrot.lane.b32.xlu0 %v7319_v37, %s5152_s16 }
 0x445   : > { %v7325_v19 = vpop.permute.xlu1 %4002  ;;  %v7327_v60 = vpop.permute.xlu0 %3144 }
 0x446   : > { %8536 = vst [vmem:[#allocation49_spill] sm:$0xff] %v7325_v19  ;;  %8537 = vst [vmem:[#allocation50_spill] sm:$0xff] %v7327_v60 }
 0x447   : > { %2777 = vrot.lane.b32.xlu1 %v7332_v2, %s5152_s16  ;;  %2779 = vrot.lane.b32.xlu0 %v7337_v4, %s5152_s16 }
 0x449   : > { %v7343_v24 = vpop.permute.xlu1 %3994  ;;  %v7345_v19 = vpop.permute.xlu0 %4008 }
 0x44a   : > { %8540 = vst [vmem:[#allocation53_spill] sm:$0xff] %v7343_v24  ;;  %8541 = vst [vmem:[#allocation54_spill] sm:$0xff] %v7345_v19 }
 0x44b   : > { %2771 = vrot.lane.b32.xlu1 %v7350_v38, %s5152_s16  ;;  %4006 = vrot.lane.b32.xlu0 %v6906_v29, %s5157_s9  ;;  %s4764_s9 = scalar_lea.sflag [#allocation6], %s5313_s18 }
 0x44d   : > { %v7356_v3 = vpop.permute.xlu1 %3142  ;;  %v7358_v50 = vpop.permute.xlu0 %4254 }
 0x44e   : > { %8543 = vst [vmem:[#allocation56_spill] sm:$0xff] %v7358_v50  ;;  %v7379_v50 = vsel %vm462_vm5, %v7140_v23, %v7148_v36  ;;  %v7400_v36 = vsel %vm333_vm7, %v7010_v42, %v7016_v28 }
 0x44f   : > { %2731 = vrot.lane.b32.xlu1 %v7350_v38, %s5153_s17  ;;  %2733 = vrot.lane.b32.xlu0 %v7314_v39, %s5153_s17 }
 0x451   : > { %v7364_v19 = vpop.permute.xlu1 %4010  ;;  %v7366_v5 = vpop.permute.xlu0 %3052 }
 0x452   : > { %8544 = vst [vmem:[#allocation57_spill] sm:$0xff] %v7364_v19  ;;  %v7384_v19 = vsel %vm333_vm7, %v6962_v10, %v7010_v42  ;;  %v7416_v42 = vsel %vm333_vm7, %v6954_v25, %v6962_v10 }
 0x453   : > { %2735 = vrot.lane.b32.xlu1 %v7319_v37, %s5153_s17  ;;  %2737 = vrot.lane.b32.xlu0 %v7332_v2, %s5153_s17  ;;  %v7395_v37 = vsel %vm333_vm7, %v7016_v28, %v7062_v57 }
 0x455   : > { %v7372_v54 = vpop.permute.xlu1 %3092  ;;  %v7374_v24 = vpop.permute.xlu0 %3300 }
 0x457   : > { %2649 = vrot.lane.b32.xlu0 %v7384_v19, %s5152_s16  ;;  %2745 = vrot.lane.b32.xlu1 %v7379_v50, %s5153_s17 }
 0x459   : > { %v3299_v38 = vpop.permute.xlu1 %3298  ;;  %v7390_v39 = vpop.permute.xlu0 %3296 }
 0x45a   : > { %v3317_v2 = vsel %vm409_vm2, %v3299_v38, %v7374_v24  ;;  %v3318_v31 = vsel %vm409_vm2, %v7390_v39, %v3299_v38 }
 0x45b   : > { %2653 = vrot.lane.b32.xlu0 %v7395_v37, %s5152_s16  ;;  %2651 = vrot.lane.b32.xlu1 %v7400_v36, %s5152_s16 }
 0x45c   : > { %3419 = vmatprep.subr.mxu0 %v3317_v2  ;;  %v7426_v2 = vsel %vm333_vm7, %v7062_v57, %v7146_v13  ;;  %v7445_v57 = vsel %vm587_vm4, %v7111_v45, %v7154_v26  ;;  %v7463_v45 = vsel %vm587_vm4, %v7154_v26, %v7126_v59  ;;  %v7480_v59 = vsel %vm462_vm5, %v7136_v1, %v7190_v0 }
 0x45d   : > { %3420 = vmatpush1.msra.mxu0 %v3318_v31  ;;  %v3257_v20 = vpop.permute.xlu1 %3256  ;;  %v3259_v60 = vpop.permute.xlu0 %3258  ;;  %8545 = vst [vmem:[#allocation58_spill] sm:$0xff] %v7445_v57  ;;  %8546 = vst [vmem:[#allocation59_spill] sm:$0xff] %v7463_v45 }
 0x45e   : > { %3421 = vmatprep.subr.mxu0 %v7076_v62  ;;  %v3278_v28 = vsel %vm368_vm3, %v3257_v20, %v3259_v60  ;;  %8547 = vst [vmem:[#allocation60_spill] sm:$0xff] %v7480_v59 }
 0x45f   : > { %3422 = vmatpush1.msra.mxu0 %v7079_v33  ;;  %2647 = vrot.lane.b32.xlu0 %v7416_v42, %s5152_s16  ;;  %v7450_v33 = vsel %vm333_vm7, %v7113_v11, %v7176_v35 }
 0x460   : > { %2655 = vrot.lane.b32.xlu1 %v7426_v2, %s5152_s16  ;;  %3423 = vmatprep.subr.mxu0 %v3278_v28 }
 0x461   : > { %v3261_v62 = vpop.permute.xlu1 %3260  ;;  %v7452_v31 = vpop.permute.xlu0 %3096 }
 0x463   : > { %2609 = vrot.lane.b32.xlu0 %v7384_v19, %s5153_s17 }
 0x464   : > { %2607 = vrot.lane.b32.xlu1 %v7416_v42, %s5153_s17 }
 0x465   : > { %v7434_v25 = vpop.permute.xlu1 %3094  ;;  %v7469_v35 = vpop.permute.xlu0 %3056 }
 0x467   : > { %2613 = vrot.lane.b32.xlu0 %v7395_v37, %s5153_s17 }
 0x468   : > { %2611 = vrot.lane.b32.xlu1 %v7400_v36, %s5153_s17 }
 0x469   : > { %v7440_v10 = vpop.permute.xlu1 %3098  ;;  %v7482_v26 = vpop.permute.xlu0 %3262 }
 0x46b   : > { %2905 = vrot.lane.b32.xlu0 %v7445_v57, %s5152_s16 }
 0x46c   : > { %2621 = vrot.lane.b32.xlu1 %v7450_v33, %s5153_s17 }
 0x46d   : > { %v7458_v38 = vpop.permute.xlu1 %3054  ;;  %v7497_v1 = vpop.permute.xlu0 %3100 }
 0x46f   : > { %2909 = vrot.lane.b32.xlu0 %v7301_v40, %s5152_s16 }
 0x470   : > { %2907 = vrot.lane.b32.xlu1 %v7463_v45, %s5152_s16 }
 0x471   : > { %v7475_v28 = vpop.permute.xlu1 %3058 }
 0x473   : > { %2865 = vrot.lane.b32.xlu0 %v7445_v57, %s5153_s17 }
 0x474   : > { %2863 = vrot.lane.b32.xlu1 %v7272_v32, %s5153_s17  ;;  %v7491_v32 = vsel %vm462_vm5, %v7190_v0, %v7140_v23  ;;  %v7510_v23 = vsel %vm333_vm7, %v7146_v13, %v7156_v8 }
 0x475   : > { %v3303_v40 = vpop.permute.xlu1 %3302 }
 0x477   : > { %2781 = vrot.lane.b32.xlu0 %v7480_v59, %s5152_s16 }
 0x478   : > { %2867 = vrot.lane.b32.xlu1 %v7463_v45, %s5153_s17 }
 0x479   : > { %v7503_v45 = vpop.permute.xlu1 %3060 }
 0x47b   : > { %2785 = vrot.lane.b32.xlu0 %v7379_v50, %s5152_s16 }
 0x47c   : > { %2783 = vrot.lane.b32.xlu1 %v7491_v32, %s5152_s16 }
 0x47f   : > { %2741 = vrot.lane.b32.xlu0 %v7480_v59, %s5153_s17 }
 0x480   : > { %2739 = vrot.lane.b32.xlu1 %v7337_v4, %s5153_s17  ;;  %v3316_v4 = vsel %vm409_vm2, %v7374_v24, %v3303_v40  ;;  %v3191_v24 = vsel %vm409_vm2, %v7087_v44, %v7152_v34 }
 0x481   : > { %v7505_v57 = vpop.permute.xlu0 %3304 }
 0x482   : > { %v3315_v0 = vsel %vm409_vm2, %v3303_v40, %v7505_v57  ;;  %v7534_v40 = vsel %vm333_vm7, %v7156_v8, %v7113_v11  ;;  %v3277_v11 = vsel %vm368_vm3, %v3259_v60, %v3261_v62  ;;  %v3192_v60 = vsel %vm409_vm2, %v7022_v15, %v7087_v44 }
 0x483   : > { %2657 = vrot.lane.b32.xlu0 %v7510_v23, %s5152_s16  ;;  %3490 = vmatprep.subr.mxu1 %v3315_v0  ;;  %v3114_v44 = vsel %vm409_vm2, %v7372_v54, %v7434_v25 }
 0x484   : > { %2743 = vrot.lane.b32.xlu1 %v7491_v32, %s5153_s17  ;;  %3491 = vmatpush1.msra.mxu1 %v3316_v4 }
 0x485   : > { %v7522_v59 = vpop.permute.xlu1 %3270  ;;  %3492 = vmatprep.subr.mxu1 %v7120_v63  ;;  %v7525_v13 = vpop.permute.xlu0 %3066  ;;  %v3276_v63 = vsel %vm368_vm3, %v3261_v62, %v7482_v26 }
 0x486   : > { %3493 = vmatpush1.msra.mxu1 %v7065_v7  ;;  %v3279_v0 = vsel %vm368_vm3, %v7522_v59, %v3257_v20  ;;  %v3193_v7 = vsel %vm409_vm2, %v7073_v49, %v7022_v15  ;;  %v3194_v20 = vsel %vm409_vm2, %v7028_v41, %v7073_v49  ;;  %v3154_v49 = vsel %vm368_vm3, %v6994_v22, %v7060_v52 }
 0x487   : > { %2661 = vrot.lane.b32.xlu0 %v7450_v33, %s5152_s16  ;;  %3424 = vmatpush1.msra.mxu0 %v3279_v0 }
 0x488   : > { %2659 = vrot.lane.b32.xlu1 %v7534_v40, %s5152_s16  ;;  %3494 = vmatprep.subr.mxu1 %v3276_v63  ;;  %v3112_v63 = vsel %vm409_vm2, %v7452_v31, %v7440_v10 }
 0x489   : > { %3425 = vmatprep.subr.mxu0 %v3193_v7  ;;  %3495 = vmatpush1.msra.mxu1 %v3277_v11  ;;  %v3307_v8 = vpop.permute.xlu1 %3306  ;;  %v7557_v4 = vpop.permute.xlu0 %3308  ;;  %v3074_v7 = vsel %vm368_vm3, %v7366_v5, %v7458_v38  ;;  %v8549_v11 = vld [vmem:[#allocation19_spill] sm:$0xff] }
 0x48a   : > { %3426 = vmatpush1.msra.mxu0 %v3194_v20  ;;  %3496 = vmatprep.subr.mxu1 %v3191_v24  ;;  %v8550_v20 = vld [vmem:[#allocation20_spill] sm:$0xff] }
 0x48b   : > { %3427 = vmatprep.subr.mxu0 %v6842_v27  ;;  %3497 = vmatpush1.msra.mxu1 %v3192_v60  ;;  %v3155_v27 = vsel %vm368_vm3, %v7163_v14, %v6994_v22  ;;  %v7596_v22 = vsel %vm2015_vm8, %v7093_v12, %v7036_v43  ;;  %v7625_v24 = vsel %vm2015_vm8, %v7036_v43, %v8550_v20  ;;  %v7648_v60 = vld [vmem:[#allocation9 + $0x8] sm:$0xff] }
 0x48c   : > { %2615 = vrot.lane.b32.xlu1 %v7426_v2, %s5153_s17  ;;  %2617 = vrot.lane.b32.xlu0 %v7510_v23, %s5153_s17  ;;  %v3075_v43 = vsel %vm368_vm3, %v7525_v13, %v7366_v5 }
 0x48d   : > { %3428 = vmatpush1.msra.mxu0 %v6812_v9  ;;  %3498 = vmatprep.subr.mxu1 %v6855_v21  ;;  %v3311_v62 = vpop.permute.xlu1 %3310  ;;  %v7574_v15 = vpop.permute.xlu0 %3264  ;;  %v3152_v9 = vsel %vm368_vm3, %v7002_v58, %v7071_v46  ;;  %v3113_v21 = vsel %vm409_vm2, %v7434_v25, %v7452_v31  ;;  %v8548_v25 = vld [vmem:[#allocation17_spill] sm:$0xff]  ;;  %v3072_v31 = vsel %vm368_vm3, %v7469_v35, %v7475_v28 }
 0x48e   : > { %3429 = vmatprep.subr.mxu0 %v3154_v49  ;;  %3499 = vmatpush1.msra.mxu1 %v6821_v51  ;;  %v3153_v51 = vsel %vm368_vm3, %v7060_v52, %v7002_v58  ;;  %v3111_v58 = vsel %vm409_vm2, %v7440_v10, %v7497_v1  ;;  %v3073_v49 = vsel %vm368_vm3, %v7458_v38, %v7469_v35 }
 0x48f   : > { %3430 = vmatpush1.msra.mxu0 %v3155_v27  ;;  %3500 = vmatprep.subr.mxu1 %v3152_v9  ;;  %v3313_v27 = vsel %vm409_vm2, %v3307_v8, %v7557_v4  ;;  %v3319_v5 = vsel %vm409_vm2, %v3311_v62, %v7390_v39  ;;  %v3314_v9 = vsel %vm409_vm2, %v7505_v57, %v3307_v8  ;;  %v8551_v57 = vld [vmem:[#allocation24_spill] sm:$0xff] }
 0x490   : > { %3431 = vmatprep.subr.mxu0 %v3113_v21  ;;  %3501 = vmatpush1.msra.mxu1 %v3153_v51  ;;  %v3312_v35 = vsel %vm409_vm2, %v7557_v4, %v3311_v62  ;;  %v7675_v39 = vsel %vm2015_vm8, %v7206_v30, %v7093_v12  ;;  %v7681_v8 = vsel %vm2015_vm8, %v7198_v16, %v8551_v57  ;;  %v8552_v4 = vld [vmem:[#allocation14_spill] sm:$0xff] }
 0x491   : > { %2619 = vrot.lane.b32.xlu1 %v7534_v40, %s5153_s17  ;;  %4318 = vrot.lane.b32.xlu0 %v7596_v22, %s5152_s16  ;;  %v3267_v52 = vpop.permute.xlu1 %3266  ;;  %v3269_v0 = vpop.permute.xlu0 %3268  ;;  %v3275_v62 = vsel %vm368_vm3, %v7482_v26, %v7574_v15  ;;  %v3189_v51 = vsel %vm409_vm2, %v7278_v56, %v7244_v55  ;;  %v3195_v26 = vsel %vm409_vm2, %v7286_v48, %v7028_v41 }
 0x492   : > { %3432 = vmatpush1.msra.mxu0 %v3114_v44  ;;  %3502 = vmatprep.subr.mxu1 %v3111_v58  ;;  %v3274_v12 = vsel %vm368_vm3, %v7574_v15, %v3267_v52  ;;  %v3273_v44 = vsel %vm368_vm3, %v3267_v52, %v3269_v0  ;;  %v3188_v52 = vsel %vm409_vm2, %v7244_v55, %v7286_v48  ;;  %v8557_v48 = vld [vmem:[#allocation50_spill] sm:$0xff] }
 0x493   : > { %3433 = vmatprep.subr.mxu0 %v7105_v6  ;;  %3503 = vmatpush1.msra.mxu1 %v3112_v63  ;;  %v7630_v6 = vsel %vm2015_vm8, %v8550_v20, %v7198_v16  ;;  %v8553_v16 = vld [vmem:[#allocation23_spill] sm:$0xff]  ;;  %v3150_v41 = vsel %vm368_vm3, %v7309_v61, %v7356_v3  ;;  %v3151_v55 = vsel %vm368_vm3, %v7071_v46, %v7309_v61 }
 0x494   : > { %3434 = vmatpush1.msra.mxu0 %v7054_v53  ;;  %3504 = vmatprep.subr.mxu1 %v8548_v25 }
 0x495   : > { %3435 = vmatprep.subr.mxu0 %v3074_v7  ;;  %3505 = vmatpush1.msra.mxu1 %v8549_v11  ;;  %v7632_v53 = vpop.permute.xlu1 %3102  ;;  %v7634_v10 = vpop.permute.xlu0 %3104  ;;  %v3149_v11 = vsel %vm368_vm3, %v7356_v3, %v8557_v48 }
 0x496   : > { %4320 = vrot.lane.b32.xlu1 %v7625_v24, %s5152_s16  ;;  %4322 = vrot.lane.b32.xlu0 %v7630_v6, %s5152_s16  ;;  %v3109_v7 = vsel %vm409_vm2, %v7632_v53, %v7634_v10  ;;  %v3110_v46 = vsel %vm409_vm2, %v7497_v1, %v7632_v53  ;;  %v8561_v1 = vld [vmem:[#allocation31_spill] sm:$0xff]  ;;  %v8562_v53 = vld [vmem:[#allocation26_spill] sm:$0xff] }
 0x497   : > { %3436 = vmatpush1.msra.mxu0 %v3075_v43  ;;  %3506 = vmatprep.subr.mxu1 %v3072_v31  ;;  %v8558_v43 = vld [vmem:[#allocation29_spill] sm:$0xff] }
 0x498   : > { %3507 = vmatpush1.msra.mxu1 %v3073_v49  ;;  %3561 = vmatprep.subr.mxu0 %v3313_v27  ;;  %v8559_v31 = vld [vmem:[#allocation25_spill] sm:$0xff]  ;;  %v8560_v27 = vld [vmem:[#allocation28_spill] sm:$0xff] }
 0x499   : > { %4889 = vmatmul.mubr.msk.f32.vlgmr.msra.gmra.mxu0 %vm1154_vm6, %v7648_v60  ;;  %3632 = vmatprep.subr.mxu1 %v3319_v5  ;;  %v3107_v21 = vpop.permute.xlu1 %3106  ;;  %v7665_v38 = vpop.permute.xlu0 %3062  ;;  %v7777_v49 = vsel %vm2015_vm8, %v8559_v31, %v8558_v43  ;;  %v8564_v5 = vld [vmem:[#allocation22_spill] sm:$0xff] }
 0x49a   : > { %3562 = vmatpush1.msra.mxu0 %v3314_v9  ;;  %4890 = vmatmul.mubr.msk.f32.vlgmr.msra.gmra.mxu1 %vm1154_vm6, %v7648_v60  ;;  %v3108_v61 = vsel %vm409_vm2, %v7634_v10, %v3107_v21  ;;  %v8563_v10 = vld [vmem:[#allocation21_spill] sm:$0xff]  ;;  %v3070_v9 = vsel %vm368_vm3, %v7503_v45, %v7665_v38 }
 0x49b   : > { %3563 = vmatprep.subr.mxu0 %v7181_v18  ;;  %3633 = vmatpush1.msra.mxu1 %v3312_v35  ;;  %v3071_v35 = vsel %vm368_vm3, %v7475_v28, %v7503_v45  ;;  %v8566_v45 = vmov 0.0  }
 0x49c   : > { %4324 = vrot.lane.b32.xlu1 %v7681_v8, %s5152_s16  ;;  %4316 = vrot.lane.b32.xlu0 %v7675_v39, %s5152_s16 }
 0x49d   : > { %3564 = vmatpush1.msra.mxu0 %v7159_v47  ;;  %3634 = vmatprep.subr.mxu1 %v8552_v4  ;;  %v7692_v18 = vpop.permute.xlu1 %3064  ;;  %v7694_v30 = vpop.permute.xlu0 %2897  ;;  %v3272_v47 = vsel %vm368_vm3, %v3269_v0, %v7522_v59  ;;  %v3190_v59 = vsel %vm409_vm2, %v7152_v34, %v7278_v56  ;;  %v8554_v0 = vld [vmem:[#allocation16_spill] sm:$0xff]  ;;  %v8555_v34 = vld [vmem:[#allocation18_spill] sm:$0xff]  ;;  %v8556_v56 = vld [vmem:[#allocation15_spill] sm:$0xff] }
 0x49e   : > { %3565 = vmatprep.subr.mxu0 %v3274_v12  ;;  %3635 = vmatpush1.msra.mxu1 %v8553_v16  ;;  %v3068_v4 = vsel %vm368_vm3, %v7692_v18, %v7525_v13  ;;  %v8567_v13 = vld [vmem:[#allocation30_spill] sm:$0xff] }
 0x49f   : > { %3566 = vmatpush1.msra.mxu0 %v3275_v62  ;;  %3636 = vmatprep.subr.mxu1 %v3272_v47  ;;  %v3069_v62 = vsel %vm368_vm3, %v7665_v38, %v7692_v18  ;;  %v8568_v38 = vld [vmem:[#allocation34_spill] sm:$0xff] }
 0x4a0   : > { %3567 = vmatprep.subr.mxu0 %v3189_v51  ;;  %3637 = vmatpush1.msra.mxu1 %v3273_v44  ;;  %v7820_v51 = vsel %vm1890_vm9, %v8561_v1, %v8567_v13  ;;  %v7827_v18 = vsel %vm1890_vm9, %v8567_v13, %v8568_v38  ;;  %v8582_v13 = vld [vmem:[#allocation41_spill] sm:$0xff] }
 0x4a1   : > { %4276 = vrot.lane.b32.xlu1 %v7675_v39, %s5153_s17  ;;  %4278 = vrot.lane.b32.xlu0 %v7596_v22, %s5153_s17  ;;  %v7722_v15 = vpop.permute.xlu1 %2899  ;;  %v7724_v58 = vpop.permute.xlu0 %2901 }
 0x4a2   : > { %3568 = vmatpush1.msra.mxu0 %v3190_v59  ;;  %3638 = vmatprep.subr.mxu1 %v3195_v26  ;;  %v2916_v28 = vsel %vm409_vm2, %v7694_v30, %v7722_v15  ;;  %v2915_v26 = vsel %vm409_vm2, %v7722_v15, %v7724_v58 }
 0x4a3   : > { %3569 = vmatprep.subr.mxu0 %v8554_v0  ;;  %3639 = vmatpush1.msra.mxu1 %v3188_v52  ;;  %v8569_v52 = vld [vmem:[#allocation33_spill] sm:$0xff] }
 0x4a4   : > { %3570 = vmatpush1.msra.mxu0 %v8555_v34  ;;  %3640 = vmatprep.subr.mxu1 %v8556_v56  ;;  %v8570_v34 = vld [vmem:[#allocation39_spill] sm:$0xff] }
 0x4a5   : > { %3571 = vmatprep.subr.mxu0 %v3150_v41  ;;  %3641 = vmatpush1.msra.mxu1 %v6906_v29  ;;  %v7738_v63 = vpop.permute.xlu1 %2903  ;;  %v7740_v25 = vpop.permute.xlu0 %2895  ;;  %v3148_v29 = vsel %vm368_vm3, %v8557_v48, %v7163_v14  ;;  %v3115_v14 = vsel %vm409_vm2, %v3107_v21, %v7372_v54  ;;  %v7783_v54 = vsel %vm1890_vm9, %v8562_v53, %v8561_v1  ;;  %v8565_v21 = vld [vmem:[#allocation27_spill] sm:$0xff]  ;;  %v8572_v41 = vld [vmem:[#allocation32_spill] sm:$0xff] }
 0x4a6   : > { %4280 = vrot.lane.b32.xlu1 %v7625_v24, %s5153_s17  ;;  %4282 = vrot.lane.b32.xlu0 %v7630_v6, %s5153_s17  ;;  %v2917_v47 = vsel %vm409_vm2, %v7740_v25, %v7694_v30  ;;  %v2914_v44 = vsel %vm409_vm2, %v7724_v58, %v7738_v63  ;;  %v8571_v56 = vld [vmem:[#allocation35_spill] sm:$0xff] }
 0x4a7   : > { %3572 = vmatpush1.msra.mxu0 %v3151_v55  ;;  %3642 = vmatprep.subr.mxu1 %v3148_v29  ;;  %v7856_v55 = vsel %vm1890_vm9, %v8568_v38, %v8572_v41  ;;  %v8573_v29 = vld [vmem:[#allocation37_spill] sm:$0xff] }
 0x4a8   : > { %3573 = vmatprep.subr.mxu0 %v3109_v7  ;;  %3643 = vmatpush1.msra.mxu1 %v3149_v11  ;;  %v7867_v7 = vsel %vm1890_vm9, %v8573_v29, %v8562_v53  ;;  %v8574_v11 = vld [vmem:[#allocation36_spill] sm:$0xff]  ;;  %v8575_v53 = vld [vmem:[#allocation51_spill] sm:$0xff] }
 0x4a9   : > { %3574 = vmatpush1.msra.mxu0 %v3110_v46  ;;  %3644 = vmatprep.subr.mxu1 %v3115_v14  ;;  %v7772_v20 = vpop.permute.xlu1 %4130  ;;  %v2856_v3 = vpop.permute.xlu0 %2855 }
 0x4aa   : > { %3575 = vmatprep.subr.mxu0 %v8560_v27  ;;  %3645 = vmatpush1.msra.mxu1 %v3108_v61 }
 0x4ab   : > { %4290 = vrot.lane.b32.xlu1 %v7777_v49, %s5153_s17  ;;  %4194 = vrot.lane.b32.xlu0 %v7783_v54, %s5152_s16 }
 0x4ac   : > { %3576 = vmatpush1.msra.mxu0 %v8563_v10  ;;  %3646 = vmatprep.subr.mxu1 %v8564_v5 }
 0x4ad   : > { %3577 = vmatprep.subr.mxu0 %v3070_v9  ;;  %3647 = vmatpush1.msra.mxu1 %v8565_v21  ;;  %v2858_v12 = vpop.permute.xlu1 %2857  ;;  %v2860_v16 = vpop.permute.xlu0 %2859  ;;  %v8576_v9 = vld [vmem:[#allocation48_spill] sm:$0xff]  ;;  %v8577_v21 = vld [vmem:[#allocation47_spill] sm:$0xff] }
 0x4ae   : > { %3578 = vmatpush1.msra.mxu0 %v3071_v35  ;;  %3648 = vmatprep.subr.mxu1 %v3068_v4  ;;  %v2877_v0 = vsel %vm368_vm3, %v2856_v3, %v2858_v12  ;;  %v2876_v14 = vsel %vm368_vm3, %v2858_v12, %v2860_v16  ;;  %v8578_v35 = vld [vmem:[#allocation43_spill] sm:$0xff]  ;;  %v8579_v4 = vld [vmem:[#allocation38_spill] sm:$0xff] }
 0x4af   : > { %3611 = vmatprep.mubr.f32.mxu0 %v8566_v45  ;;  %3649 = vmatpush1.msra.mxu1 %v3069_v62  ;;  %v7908_v12 = vsel %vm1890_vm9, %v8579_v4, %v8578_v35  ;;  %v8580_v62 = vld [vmem:[#allocation55_spill] sm:$0xff] }
 0x4b0   : > { %3706 = vmatprep.subr.mxu0 %v2916_v28  ;;  %4196 = vrot.lane.b32.xlu1 %v7820_v51, %s5152_s16  ;;  %v8581_v28 = vld [vmem:[#allocation46_spill] sm:$0xff] }
 0x4b1   : > { %4198 = vrot.lane.b32.xlu0 %v7827_v18, %s5152_s16  ;;  %4891 = vmatmul.mubr.msk.f32.vlgmr.msra.gmra.mxu0 %vm1154_vm6, %v7648_v60  ;;  %v7837_v30 = vpop.permute.xlu1 %2861  ;;  %v7839_v59 = vpop.permute.xlu0 %2869  ;;  %v7916_v38 = vsel %vm1765_vm10, %v8582_v13, %v8581_v28 }
 0x4b2   : > { %3682 = vmatprep.mubr.f32.mxu1 %v8566_v45  ;;  %3707 = vmatpush1.msra.mxu0 %v2917_v47  ;;  %v2878_v15 = vsel %vm368_vm3, %v7839_v59, %v2856_v3 }
 0x4b3   : > { %3777 = vmatprep.subr.mxu1 %v2914_v44  ;;  %4892 = vmatmul.mubr.msk.f32.vlgmr.msra.gmra.mxu1 %vm1154_vm6, %v7648_v60  ;;  %v2875_v60 = vsel %vm368_vm3, %v2860_v16, %v7837_v30 }
 0x4b4   : > { %3708 = vmatprep.subr.mxu0 %v8569_v52  ;;  %3778 = vmatpush1.msra.mxu1 %v2915_v26  ;;  %v8583_v26 = vld [vmem:[#allocation42_spill] sm:$0xff] }
 0x4b5   : > { %3709 = vmatpush1.msra.mxu0 %v8570_v34  ;;  %3779 = vmatprep.subr.mxu1 %v8571_v56  ;;  %v2774_v58 = vpop.permute.xlu1 %2773  ;;  %v2776_v48 = vpop.permute.xlu0 %2775  ;;  %v7925_v52 = vsel %vm1765_vm10, %v8581_v28, %v8583_v26  ;;  %v8584_v56 = vld [vmem:[#allocation49_spill] sm:$0xff]  ;;  %v8588_v28 = vld [vmem:[#allocation54_spill] sm:$0xff] }
 0x4b6   : > { %3780 = vmatpush1.msra.mxu1 %v8574_v11  ;;  %4200 = vrot.lane.b32.xlu1 %v7856_v55, %s5152_s16  ;;  %v2792_v46 = vsel %vm409_vm2, %v2774_v58, %v2776_v48 }
 0x4b7   : > { %4192 = vrot.lane.b32.xlu0 %v7867_v7, %s5152_s16  ;;  %3710 = vmatprep.subr.mxu0 %v2877_v0 }
 0x4b8   : > { %3711 = vmatpush1.msra.mxu0 %v2878_v15  ;;  %3781 = vmatprep.subr.mxu1 %v2875_v60  ;;  %v7934_v15 = vsel %vm1765_vm10, %v8583_v26, %v8584_v56  ;;  %v8589_v26 = vld [vmem:[#allocation56_spill] sm:$0xff] }
 0x4b9   : > { %3782 = vmatpush1.msra.mxu1 %v2876_v14  ;;  %3712 = vmatprep.subr.mxu0 %v2792_v46  ;;  %v2778_v61 = vpop.permute.xlu1 %2777  ;;  %v7878_v3 = vpop.permute.xlu0 %2779  ;;  %v8586_v14 = vld [vmem:[#allocation53_spill] sm:$0xff] }
 0x4ba   : > { %4152 = vrot.lane.b32.xlu1 %v7867_v7, %s5153_s17  ;;  %v2791_v43 = vsel %vm409_vm2, %v2776_v48, %v2778_v61  ;;  %v2790_v27 = vsel %vm409_vm2, %v2778_v61, %v7878_v3  ;;  %3756 = vmatprep.mubr.f32.mxu0 %v8566_v45  ;;  %v8585_v48 = vld [vmem:[#allocation44_spill] sm:$0xff]  ;;  %v7953_v61 = vsel %vm1765_vm10, %v8586_v14, %v8582_v13 }
 0x4bb   : > { %4154 = vrot.lane.b32.xlu0 %v7783_v54, %s5153_s17  ;;  %3783 = vmatprep.subr.mxu1 %v2790_v27  ;;  %v7946_v29 = vsel %vm1765_vm10, %v8584_v56, %v8585_v48 }
 0x4bc   : > { %3784 = vmatpush1.msra.mxu1 %v2791_v43  ;;  %3827 = vmatprep.mubr.f32.mxu1 %v8566_v45 }
 0x4bd   : > { %v7891_v1 = vpop.permute.xlu1 %2771  ;;  %3785 = vmatprep.subr.mxu1 %v8575_v53  ;;  %v7894_v10 = vpop.permute.xlu0 %4006 }
 0x4be   : > { %4156 = vrot.lane.b32.xlu1 %v7820_v51, %s5153_s17  ;;  %v2793_v5 = vsel %vm409_vm2, %v7891_v1, %v2774_v58  ;;  %3786 = vmatpush1.msra.mxu1 %v8576_v9 }
 0x4bf   : > { %4158 = vrot.lane.b32.xlu0 %v7827_v18, %s5153_s17  ;;  %3713 = vmatpush1.msra.mxu0 %v2793_v5 }
 0x4c0   : > { %3714 = vmatprep.subr.mxu0 %v8577_v21 }
 0x4c1   : > { %v2732_v16 = vpop.permute.xlu1 %2731  ;;  %3715 = vmatpush1.msra.mxu0 %v8580_v62  ;;  %v2734_v47 = vpop.permute.xlu0 %2733 }
 0x4c2   : > { %4166 = vrot.lane.b32.xlu1 %v7908_v12, %s5153_s17  ;;  %v2753_v44 = vsel %vm368_vm3, %v2732_v16, %v2734_v47 }
 0x4c3   : > { %4070 = vrot.lane.b32.xlu0 %v7916_v38, %s5152_s16  ;;  %3716 = vmatprep.subr.mxu0 %v2753_v44 }
 0x4c5   : > { %v2736_v0 = vpop.permute.xlu1 %2735  ;;  %v7927_v34 = vpop.permute.xlu0 %2737 }
 0x4c6   : > { %4072 = vrot.lane.b32.xlu1 %v7925_v52, %s5152_s16  ;;  %v2752_v60 = vsel %vm368_vm3, %v2734_v47, %v2736_v0  ;;  %v2751_v58 = vsel %vm368_vm3, %v2736_v0, %v7927_v34  ;;  %v8587_v47 = vld [vmem:[#allocation57_spill] sm:$0xff]  ;;  %v7996_v0 = vsel %vm2015_vm8, %v8551_v57, %v8589_v26 }
 0x4c7   : > { %4074 = vrot.lane.b32.xlu0 %v7934_v15, %s5152_s16  ;;  %3787 = vmatprep.subr.mxu1 %v2751_v58  ;;  %v7988_v13 = vsel %vm1765_vm10, %v8588_v28, %v8587_v47  ;;  %v8020_v58 = vld [vmem:[#allocation9] sm:$0xff] }
 0x4c8   : > { %3788 = vmatpush1.msra.mxu1 %v2752_v60 }
 0x4c9   : > { %v7948_v11 = vpop.permute.xlu1 %2745  ;;  %v2650_v46 = vpop.permute.xlu0 %2649 }
 0x4ca   : > { %4076 = vrot.lane.b32.xlu1 %v7946_v29, %s5152_s16  ;;  %v2754_v43 = vsel %vm368_vm3, %v7948_v11, %v2732_v16 }
 0x4cb   : > { %4068 = vrot.lane.b32.xlu0 %v7953_v61, %s5152_s16  ;;  %3717 = vmatpush1.msra.mxu0 %v2754_v43 }
 0x4cd   : > { %v2652_v27 = vpop.permute.xlu1 %2651  ;;  %v2654_v53 = vpop.permute.xlu0 %2653 }
 0x4ce   : > { %4028 = vrot.lane.b32.xlu1 %v7953_v61, %s5153_s17  ;;  %v2668_v5 = vsel %vm409_vm2, %v2650_v46, %v2652_v27  ;;  %v2667_v62 = vsel %vm409_vm2, %v2652_v27, %v2654_v53  ;;  %v8039_v27 = vsel %vm1890_vm9, %v8572_v41, %v7772_v20 }
 0x4cf   : > { %4030 = vrot.lane.b32.xlu0 %v7916_v38, %s5153_s17  ;;  %3718 = vmatprep.subr.mxu0 %v2668_v5 }
 0x4d1   : > { %v7968_v9 = vpop.permute.xlu0 %2647 }
 0x4d2   : > { %4032 = vrot.lane.b32.xlu1 %v7925_v52, %s5153_s17  ;;  %v7972_v21 = vpop.permute.xlu1 %2655  ;;  %v2669_v35 = vsel %vm409_vm2, %v7968_v9, %v2650_v46 }
 0x4d3   : > { %4034 = vrot.lane.b32.xlu0 %v7934_v15, %s5153_s17  ;;  %3719 = vmatpush1.msra.mxu0 %v2669_v35  ;;  %v2666_v16 = vsel %vm409_vm2, %v2654_v53, %v7972_v21 }
 0x4d4   : > { %3789 = vmatprep.subr.mxu1 %v2666_v16  ;;  %3720 = vmatprep.subr.mxu0 %v7384_v19 }
 0x4d5   : > { %3790 = vmatpush1.msra.mxu1 %v2667_v62  ;;  %3721 = vmatpush1.msra.mxu0 %v7416_v42  ;;  %v2610_v44 = vpop.permute.xlu0 %2609  ;;  %v8007_v42 = vsel %vm2015_vm8, %v8589_v26, %v8559_v31  ;;  %v8590_v62 = vld [vmem:[#allocation45_spill] sm:$0xff]  ;;  %v8591_v26 = vld [vmem:[#allocation58_spill] sm:$0xff] }
 0x4d6   : > { %4042 = vrot.lane.b32.xlu1 %v7988_v13, %s5153_s17  ;;  %v2608_v56 = vpop.permute.xlu1 %2607  ;;  %3791 = vmatprep.subr.mxu1 %v7395_v37 }
 0x4d7   : > { %4326 = vrot.lane.b32.xlu0 %v7996_v0, %s5152_s16  ;;  %3792 = vmatpush1.msra.mxu1 %v7400_v36  ;;  %v2629_v19 = vsel %vm368_vm3, %v2608_v56, %v2610_v44 }
 0x4d8   : > { %3722 = vmatprep.subr.mxu0 %v2629_v19 }
 0x4d9   : > { %v8009_v60 = vpop.permute.xlu0 %2613 }
 0x4da   : > { %4328 = vrot.lane.b32.xlu1 %v8007_v42, %s5152_s16  ;;  %v2612_v37 = vpop.permute.xlu1 %2611 }
 0x4db   : > { %4330 = vrot.lane.b32.xlu0 %v7777_v49, %s5152_s16  ;;  %v2628_v36 = vsel %vm368_vm3, %v2610_v44, %v2612_v37  ;;  %v2627_v57 = vsel %vm368_vm3, %v2612_v37, %v8009_v60 }
 0x4dc   : > { %3793 = vmatprep.subr.mxu1 %v2627_v57 }
 0x4dd   : > { %3794 = vmatpush1.msra.mxu1 %v2628_v36  ;;  %v2906_v31 = vpop.permute.xlu0 %2905 }
 0x4de   : > { %4284 = vrot.lane.b32.xlu1 %v7681_v8, %s5153_s17  ;;  %v8024_v46 = vpop.permute.xlu1 %2621  ;;  %4894 = vmatmul.mubr.msk.f32.vlgmr.msra.gmra.mxu1 %vm1154_vm6, %v8020_v58  ;;  %v2913_v16 = vsel %vm409_vm2, %v7738_v63, %v2906_v31 }
 0x4df   : > { %4286 = vrot.lane.b32.xlu0 %v7996_v0, %s5153_s17  ;;  %v2630_v14 = vsel %vm368_vm3, %v8024_v46, %v2608_v56  ;;  %3969 = vmatprep.mubr.f32.mxu1 %v8566_v45  ;;  %v8592_v56 = vld [vmem:[#allocation40_spill] sm:$0xff] }
 0x4e0   : > { %3723 = vmatpush1.msra.mxu0 %v2630_v14 }
 0x4e1   : > { %v2910_v43 = vpop.permute.xlu0 %2909  ;;  %4893 = vmatmul.mubr.msk.f32.vlgmr.msra.gmra.mxu0 %vm1154_vm6, %v8020_v58 }
 0x4e2   : > { %4288 = vrot.lane.b32.xlu1 %v8007_v42, %s5153_s17  ;;  %v2908_v53 = vpop.permute.xlu1 %2907  ;;  %v2918_v5 = vsel %vm409_vm2, %v2910_v43, %v7740_v25  ;;  %3898 = vmatprep.mubr.f32.mxu0 %v8566_v45  ;;  %v8059_v25 = vsel %vm1890_vm9, %v7772_v20, %v8579_v4  ;;  %v8593_v4 = vld [vmem:[#allocation59_spill] sm:$0xff] }
 0x4e3   : > { %4202 = vrot.lane.b32.xlu0 %v8039_v27, %s5152_s16  ;;  %v2911_v35 = vsel %vm409_vm2, %v2908_v53, %v2910_v43  ;;  %v2912_v41 = vsel %vm409_vm2, %v2906_v31, %v2908_v53  ;;  %3919 = vmatprep.subr.mxu1 %v2918_v5  ;;  %v8086_v31 = vsel %vm1765_vm10, %v8585_v48, %v7894_v10 }
 0x4e4   : > { %3848 = vmatprep.subr.mxu0 %v2912_v41  ;;  %3920 = vmatpush1.msra.mxu1 %v2911_v35  ;;  %v8594_v41 = vld [vmem:[#allocation60_spill] sm:$0xff] }
 0x4e5   : > { %3849 = vmatpush1.msra.mxu0 %v2913_v16  ;;  %3921 = vmatprep.subr.mxu1 %v8590_v62  ;;  %v2866_v47 = vpop.permute.xlu0 %2865  ;;  %v8595_v16 = vld [vmem:[#allocation52_spill] sm:$0xff] }
 0x4e6   : > { %4204 = vrot.lane.b32.xlu1 %v8059_v25, %s5152_s16  ;;  %v2864_v44 = vpop.permute.xlu1 %2863  ;;  %3850 = vmatprep.subr.mxu0 %v8591_v26 }
 0x4e7   : > { %4206 = vrot.lane.b32.xlu0 %v7908_v12, %s5152_s16  ;;  %v2874_v63 = vsel %vm368_vm3, %v7837_v30, %v2864_v44  ;;  %3851 = vmatpush1.msra.mxu0 %v8592_v56  ;;  %v2873_v20 = vsel %vm368_vm3, %v2864_v44, %v2866_v47 }
 0x4e8   : > { %3922 = vmatpush1.msra.mxu1 %v8593_v4  ;;  %3852 = vmatprep.subr.mxu0 %v2873_v20 }
 0x4e9   : > { %3853 = vmatpush1.msra.mxu0 %v2874_v63  ;;  %v2782_v19 = vpop.permute.xlu0 %2781 }
 0x4ea   : > { %4160 = vrot.lane.b32.xlu1 %v7856_v55, %s5153_s17  ;;  %v2868_v37 = vpop.permute.xlu1 %2867  ;;  %v2789_v48 = vsel %vm409_vm2, %v7878_v3, %v2782_v19 }
 0x4eb   : > { %4162 = vrot.lane.b32.xlu0 %v8039_v27, %s5153_s17  ;;  %v2872_v30 = vsel %vm368_vm3, %v2866_v47, %v2868_v37  ;;  %v2871_v36 = vsel %vm368_vm3, %v2868_v37, %v7839_v59 }
 0x4ec   : > { %3923 = vmatprep.subr.mxu1 %v2871_v36 }
 0x4ed   : > { %3924 = vmatpush1.msra.mxu1 %v2872_v30  ;;  %v2786_v57 = vpop.permute.xlu0 %2785 }
 0x4ee   : > { %4164 = vrot.lane.b32.xlu1 %v8059_v25, %s5153_s17  ;;  %v2784_v14 = vpop.permute.xlu1 %2783  ;;  %v2794_v43 = vsel %vm409_vm2, %v2786_v57, %v7891_v1  ;;  %v8105_v1 = vsel %vm1765_vm10, %v7894_v10, %v8588_v28 }
 0x4ef   : > { %4078 = vrot.lane.b32.xlu0 %v8086_v31, %s5152_s16  ;;  %v2787_v59 = vsel %vm409_vm2, %v2784_v14, %v2786_v57  ;;  %v2788_v53 = vsel %vm409_vm2, %v2782_v19, %v2784_v14  ;;  %3925 = vmatprep.subr.mxu1 %v2794_v43 }
 0x4f0   : > { %3854 = vmatprep.subr.mxu0 %v2788_v53  ;;  %3926 = vmatpush1.msra.mxu1 %v2787_v59 }
 0x4f1   : > { %3855 = vmatpush1.msra.mxu0 %v2789_v48  ;;  %3927 = vmatprep.subr.mxu1 %v7379_v50  ;;  %v2742_v5 = vpop.permute.xlu0 %2741 }
 0x4f2   : > { %4080 = vrot.lane.b32.xlu1 %v8105_v1, %s5152_s16  ;;  %v2740_v35 = vpop.permute.xlu1 %2739  ;;  %3856 = vmatprep.subr.mxu0 %v8594_v41 }
 0x4f3   : > { %4082 = vrot.lane.b32.xlu0 %v7988_v13, %s5152_s16  ;;  %v2750_v3 = vsel %vm368_vm3, %v7927_v34, %v2740_v35  ;;  %3857 = vmatpush1.msra.mxu0 %v8595_v16  ;;  %v2749_v10 = vsel %vm368_vm3, %v2740_v35, %v2742_v5  ;;  %s4778_s16 = sshll.u32 %s8349_s11, 4  ;;  %s4779_s16 = int_to_ptr.vmem [resolvable:$true] %s4778_s16 }
 0x4f4   : > { %3928 = vmatpush1.msra.mxu1 %v7491_v32  ;;  %3858 = vmatprep.subr.mxu0 %v2749_v10  ;;  %v4717_v32 = vld [vmem:[%s8403_s4] sm:$0xff]  ;;  %p5079_p6 = scmp.lt.s32.totalorder %s4779_s16, %s5077_s25 }
 0x4f5   : > { %3859 = vmatpush1.msra.mxu0 %v2750_v3  ;;  %v2658_v50 = vpop.permute.xlu0 %2657 }
 0x4f6   : > { %4036 = vrot.lane.b32.xlu1 %v7946_v29, %s5153_s17  ;;  %v2744_v28 = vpop.permute.xlu1 %2743  ;;  %v2665_v56 = vsel %vm409_vm2, %v7972_v21, %v2658_v50 }
 0x4f7   : > { %4038 = vrot.lane.b32.xlu0 %v8086_v31, %s5153_s17  ;;  %v2748_v34 = vsel %vm368_vm3, %v2742_v5, %v2744_v28  ;;  %v2747_v62 = vsel %vm368_vm3, %v2744_v28, %v7948_v11 }
 0x4f8   : > { %3929 = vmatprep.subr.mxu1 %v2747_v62 }
 0x4f9   : > { %3930 = vmatpush1.msra.mxu1 %v2748_v34  ;;  %v2662_v47 = vpop.permute.xlu0 %2661 }
 0x4fa   : > { %4040 = vrot.lane.b32.xlu1 %v8105_v1, %s5153_s17  ;;  %v2660_v44 = vpop.permute.xlu1 %2659  ;;  %v2670_v26 = vsel %vm409_vm2, %v2662_v47, %v7968_v9 }
 0x4fb   : > { %4720 = vperm.xlu0 %4991, %v4717_v32   ;;  %v2663_v63 = vsel %vm409_vm2, %v2660_v44, %v2662_v47  ;;  %v2664_v11 = vsel %vm409_vm2, %v2658_v50, %v2660_v44  ;;  %3931 = vmatprep.subr.mxu1 %v2670_v26 }
 0x4fc   : > { %3860 = vmatprep.subr.mxu0 %v2664_v11  ;;  %3932 = vmatpush1.msra.mxu1 %v2663_v63 }
 0x4fd   : > { %3861 = vmatpush1.msra.mxu0 %v2665_v56  ;;  %3933 = vmatprep.subr.mxu1 %v7450_v33 }
 0x4fe   : > { %v2616_v20 = vpop.permute.xlu1 %2615  ;;  %3862 = vmatprep.subr.mxu0 %v7510_v23  ;;  %v2618_v9 = vpop.permute.xlu0 %2617  ;;  %3934 = vmatpush1.msra.mxu1 %v7534_v40 }
 0x4ff   : > { %v2626_v4 = vsel %vm368_vm3, %v8009_v60, %v2616_v20  ;;  %3863 = vmatpush1.msra.mxu0 %v7426_v2  ;;  %v2625_v21 = vsel %vm368_vm3, %v2616_v20, %v2618_v9 }
 0x500   : > { %3864 = vmatprep.subr.mxu0 %v2625_v21 }
 0x501   : > { %3865 = vmatpush1.msra.mxu0 %v2626_v4 }
 0x502   : > { %4895 = vmatmul.mubr.msk.f32.vlgmr.msra.gmra.mxu0 %vm1154_vm6, %v8020_v58 }
 0x503   : > { %v2620_v33 = vpop.permute.xlu1 %2619  ;;  %v4319_v19 = vpop.permute.xlu0 %4318  ;;  %4489 = vmatprep.mubr.f32.mxu0 %v8566_v45 }
 0x504   : > { %v2624_v23 = vsel %vm368_vm3, %v2618_v9, %v2620_v33  ;;  %v2623_v40 = vsel %vm368_vm3, %v2620_v33, %v8024_v46 }
 0x505   : > { %3935 = vmatprep.subr.mxu1 %v2623_v40 }
 0x506   : > { %3936 = vmatpush1.msra.mxu1 %v2624_v23 }
 0x507   : > { %4896 = vmatmul.mubr.msk.f32.vlgmr.msra.gmra.mxu1 %vm1154_vm6, %v8020_v58 }
 0x508   : > { %v4321_v2 = vpop.permute.xlu1 %4320  ;;  %v4323_v60 = vpop.permute.xlu0 %4322  ;;  %4560 = vmatprep.mubr.f32.mxu1 %v8566_v45 }
 0x509   : > { %v4337_v37 = vsel %vm409_vm2, %v4319_v19, %v4321_v2  ;;  %v4336_v57 = vsel %vm409_vm2, %v4321_v2, %v4323_v60 }
 0x50a   : > { %4439 = vmatprep.subr.mxu0 %v4337_v37 }
 0x50e   : > { %v8166_v30 = vpop.permute.xlu1 %4324  ;;  %v8168_v36 = vpop.permute.xlu0 %4316 }
 0x50f   : > { %v4338_v46 = vsel %vm409_vm2, %v8168_v36, %v4319_v19  ;;  %v4335_v58 = vsel %vm409_vm2, %v4323_v60, %v8166_v30 }
 0x510   : > { %4440 = vmatpush1.msra.mxu0 %v4338_v46  ;;  %4510 = vmatprep.subr.mxu1 %v4335_v58 }
 0x511   : > { %4441 = vmatprep.subr.mxu0 %v7596_v22  ;;  %4511 = vmatpush1.msra.mxu1 %v4336_v57 }
 0x512   : > { %4442 = vmatpush1.msra.mxu0 %v7675_v39  ;;  %4512 = vmatprep.subr.mxu1 %v7630_v6 }
 0x513   : > { %v4277_v14 = vpop.permute.xlu1 %4276  ;;  %v4279_v43 = vpop.permute.xlu0 %4278  ;;  %4513 = vmatpush1.msra.mxu1 %v7625_v24 }
 0x514   : > { %v4298_v59 = vsel %vm368_vm3, %v4277_v14, %v4279_v43 }
 0x515   : > { %4443 = vmatprep.subr.mxu0 %v4298_v59 }
 0x518   : > { %v4281_v53 = vpop.permute.xlu1 %4280  ;;  %v8184_v48 = vpop.permute.xlu0 %4282 }
 0x519   : > { %v4297_v5 = vsel %vm368_vm3, %v4279_v43, %v4281_v53  ;;  %v4296_v22 = vsel %vm368_vm3, %v4281_v53, %v8184_v48 }
 0x51a   : > { %4514 = vmatprep.subr.mxu1 %v4296_v22 }
 0x51b   : > { %4515 = vmatpush1.msra.mxu1 %v4297_v5 }
 0x51d   : > { %v8191_v6 = vpop.permute.xlu1 %4290  ;;  %v4195_v39 = vpop.permute.xlu0 %4194 }
 0x51e   : > { %v4299_v24 = vsel %vm368_vm3, %v8191_v6, %v4277_v14 }
 0x51f   : > { %4444 = vmatpush1.msra.mxu0 %v4299_v24 }
 0x522   : > { %v4197_v35 = vpop.permute.xlu1 %4196 }
 0x523   : > { %v4199_v41 = vpop.permute.xlu0 %4198  ;;  %v4213_v3 = vsel %vm409_vm2, %v4195_v39, %v4197_v35 }
 0x524   : > { %4445 = vmatprep.subr.mxu0 %v4213_v3  ;;  %v4212_v28 = vsel %vm409_vm2, %v4197_v35, %v4199_v41 }
 0x528   : > { %v8198_v16 = vpop.permute.xlu1 %4200 }
 0x529   : > { %v8200_v10 = vpop.permute.xlu0 %4192  ;;  %v4211_v50 = vsel %vm409_vm2, %v4199_v41, %v8198_v16 }
 0x52a   : > { %v4214_v34 = vsel %vm409_vm2, %v8200_v10, %v4195_v39  ;;  %4516 = vmatprep.subr.mxu1 %v4211_v50 }
 0x52b   : > { %4446 = vmatpush1.msra.mxu0 %v4214_v34  ;;  %4517 = vmatpush1.msra.mxu1 %v4212_v28 }
 0x52c   : > { %4447 = vmatprep.subr.mxu0 %v7783_v54  ;;  %v4153_v62 = vpop.permute.xlu1 %4152  ;;  %4518 = vmatprep.subr.mxu1 %v7827_v18 }
 0x52d   : > { %4448 = vmatpush1.msra.mxu0 %v7867_v7  ;;  %v4155_v32 = vpop.permute.xlu0 %4154  ;;  %4519 = vmatpush1.msra.mxu1 %v7820_v51 }
 0x52e   : > { %v4174_v47 = vsel %vm368_vm3, %v4153_v62, %v4155_v32 }
 0x52f   : > { %4449 = vmatprep.subr.mxu0 %v4174_v47 }
 0x530   : > { %v4157_v44 = vpop.permute.xlu1 %4156 }
 0x531   : > { %v4173_v26 = vsel %vm368_vm3, %v4155_v32, %v4157_v44  ;;  %v8218_v63 = vpop.permute.xlu0 %4158 }
 0x532   : > { %v4172_v54 = vsel %vm368_vm3, %v4157_v44, %v8218_v63 }
 0x533   : > { %4520 = vmatprep.subr.mxu1 %v4172_v54 }
 0x534   : > { %4521 = vmatpush1.msra.mxu1 %v4173_v26  ;;  %v8223_v18 = vpop.permute.xlu1 %4166 }
 0x535   : > { %v4175_v51 = vsel %vm368_vm3, %v8223_v18, %v4153_v62  ;;  %v4071_v7 = vpop.permute.xlu0 %4070 }
 0x536   : > { %4450 = vmatpush1.msra.mxu0 %v4175_v51 }
 0x538   : > { %v4073_v11 = vpop.permute.xlu1 %4072 }
 0x539   : > { %v4075_v56 = vpop.permute.xlu0 %4074  ;;  %v4089_v20 = vsel %vm409_vm2, %v4071_v7, %v4073_v11 }
 0x53a   : > { %4451 = vmatprep.subr.mxu0 %v4089_v20  ;;  %v4088_v33 = vsel %vm409_vm2, %v4073_v11, %v4075_v56 }
 0x53c   : > { %v8230_v9 = vpop.permute.xlu1 %4076 }
 0x53d   : > { %v8232_v4 = vpop.permute.xlu0 %4068  ;;  %v4087_v21 = vsel %vm409_vm2, %v4075_v56, %v8230_v9 }
 0x53e   : > { %v4090_v19 = vsel %vm409_vm2, %v8232_v4, %v4071_v7  ;;  %4522 = vmatprep.subr.mxu1 %v4087_v21 }
 0x53f   : > { %4452 = vmatpush1.msra.mxu0 %v4090_v19  ;;  %4523 = vmatpush1.msra.mxu1 %v4088_v33 }
 0x540   : > { %4453 = vmatprep.subr.mxu0 %v7916_v38  ;;  %v4029_v23 = vpop.permute.xlu1 %4028  ;;  %4524 = vmatprep.subr.mxu1 %v7934_v15  ;;  %v8255_v15 = vld [vmem:[#allocation9 + $0x10] sm:$0xff] }
 0x541   : > { %4454 = vmatpush1.msra.mxu0 %v7953_v61  ;;  %v4031_v40 = vpop.permute.xlu0 %4030  ;;  %4525 = vmatpush1.msra.mxu1 %v7925_v52 }
 0x542   : > { %v4050_v2 = vsel %vm368_vm3, %v4029_v23, %v4031_v40 }
 0x543   : > { %4455 = vmatprep.subr.mxu0 %v4050_v2 }
 0x544   : > { %v4033_v60 = vpop.permute.xlu1 %4032 }
 0x545   : > { %v4049_v37 = vsel %vm368_vm3, %v4031_v40, %v4033_v60  ;;  %v8250_v46 = vpop.permute.xlu0 %4034 }
 0x546   : > { %v4048_v38 = vsel %vm368_vm3, %v4033_v60, %v8250_v46 }
 0x547   : > { %4526 = vmatprep.subr.mxu1 %v4048_v38 }
 0x548   : > { %4527 = vmatpush1.msra.mxu1 %v4049_v37  ;;  %v8257_v61 = vpop.permute.xlu1 %4042 }
 0x549   : > { %v4051_v52 = vsel %vm368_vm3, %v8257_v61, %v4029_v23  ;;  %4898 = vmatmul.mubr.msk.f32.vlgmr.msra.gmra.mxu1 %vm1154_vm6, %v8255_v15  ;;  %v4327_v58 = vpop.permute.xlu0 %4326 }
 0x54a   : > { %4456 = vmatpush1.msra.mxu0 %v4051_v52  ;;  %4702 = vmatprep.mubr.f32.mxu1 %v8566_v45  ;;  %v4334_v59 = vsel %vm409_vm2, %v8166_v30, %v4327_v58 }
 0x54b   : > { %4897 = vmatmul.mubr.msk.f32.vlgmr.msra.gmra.mxu0 %vm1154_vm6, %v8255_v15 }
 0x54c   : > { %v4329_v57 = vpop.permute.xlu1 %4328  ;;  %4631 = vmatprep.mubr.f32.mxu0 %v8566_v45 }
 0x54d   : > { %v4331_v14 = vpop.permute.xlu0 %4330  ;;  %v4333_v43 = vsel %vm409_vm2, %v4327_v58, %v4329_v57  ;;  %v4733_v58 = vld [vmem:[%s5317_s12 + $0x18] sm:$0xff] }
 0x54e   : > { %v4332_v53 = vsel %vm409_vm2, %v4329_v57, %v4331_v14  ;;  %4581 = vmatprep.subr.mxu0 %v4333_v43  ;;  %v4339_v5 = vsel %vm409_vm2, %v4331_v14, %v8168_v36 }
 0x54f   : > { %4652 = vmatprep.subr.mxu1 %v4339_v5  ;;  %4582 = vmatpush1.msra.mxu0 %v4334_v59 }
 0x550   : > { %4653 = vmatpush1.msra.mxu1 %v4332_v53  ;;  %v4285_v45 = vpop.permute.xlu1 %4284  ;;  %4583 = vmatprep.subr.mxu0 %v7996_v0 }
 0x551   : > { %v4295_v22 = vsel %vm368_vm3, %v8184_v48, %v4285_v45  ;;  %4654 = vmatprep.subr.mxu1 %v7777_v49  ;;  %v4287_v30 = vpop.permute.xlu0 %4286  ;;  %4584 = vmatpush1.msra.mxu0 %v7681_v8 }
 0x552   : > { %4655 = vmatpush1.msra.mxu1 %v8007_v42  ;;  %v4294_v36 = vsel %vm368_vm3, %v4285_v45, %v4287_v30  ;;  %v4734_v45 = vld [vmem:[%s5317_s12 + $0x20] sm:$0xff] }
 0x553   : > { %4585 = vmatprep.subr.mxu0 %v4294_v36 }
 0x554   : > { %4586 = vmatpush1.msra.mxu0 %v4295_v22  ;;  %v4289_v39 = vpop.permute.xlu1 %4288  ;;  %v4731_v22 = vld [vmem:[%s5317_s12 + $0x8] sm:$0xff] }
 0x555   : > { %v4293_v0 = vsel %vm368_vm3, %v4287_v30, %v4289_v39  ;;  %v4203_v24 = vpop.permute.xlu0 %4202  ;;  %v4292_v48 = vsel %vm368_vm3, %v4289_v39, %v8191_v6 }
 0x556   : > { %4656 = vmatprep.subr.mxu1 %v4292_v48  ;;  %v4210_v35 = vsel %vm409_vm2, %v8198_v16, %v4203_v24  ;;  %v4732_v48 = vld [vmem:[%s5317_s12 + $0x10] sm:$0xff] }
 0x557   : > { %4657 = vmatpush1.msra.mxu1 %v4293_v0 }
 0x558   : > { %v4205_v49 = vpop.permute.xlu1 %4204 }
 0x559   : > { %v4207_v8 = vpop.permute.xlu0 %4206  ;;  %v4209_v42 = vsel %vm409_vm2, %v4203_v24, %v4205_v49 }
 0x55a   : > { %v4208_v41 = vsel %vm409_vm2, %v4205_v49, %v4207_v8  ;;  %4587 = vmatprep.subr.mxu0 %v4209_v42  ;;  %v4215_v3 = vsel %vm409_vm2, %v4207_v8, %v8200_v10 }
 0x55b   : > { %4658 = vmatprep.subr.mxu1 %v4215_v3  ;;  %4588 = vmatpush1.msra.mxu0 %v4210_v35 }
 0x55c   : > { %4659 = vmatpush1.msra.mxu1 %v4208_v41  ;;  %v4161_v6 = vpop.permute.xlu1 %4160  ;;  %4589 = vmatprep.subr.mxu0 %v8039_v27 }
 0x55d   : > { %v4171_v50 = vsel %vm368_vm3, %v8218_v63, %v4161_v6  ;;  %4660 = vmatprep.subr.mxu1 %v7908_v12  ;;  %v4163_v16 = vpop.permute.xlu0 %4162  ;;  %4590 = vmatpush1.msra.mxu0 %v7856_v55 }
 0x55e   : > { %4661 = vmatpush1.msra.mxu1 %v8059_v25  ;;  %v4170_v10 = vsel %vm368_vm3, %v4161_v6, %v4163_v16 }
 0x55f   : > { %4591 = vmatprep.subr.mxu0 %v4170_v10 }
 0x560   : > { %4592 = vmatpush1.msra.mxu0 %v4171_v50  ;;  %v4165_v28 = vpop.permute.xlu1 %4164 }
 0x561   : > { %v4169_v27 = vsel %vm368_vm3, %v4163_v16, %v4165_v28  ;;  %v4079_v34 = vpop.permute.xlu0 %4078  ;;  %v4168_v62 = vsel %vm368_vm3, %v4165_v28, %v8223_v18 }
 0x562   : > { %4662 = vmatprep.subr.mxu1 %v4168_v62  ;;  %v4086_v32 = vsel %vm409_vm2, %v8230_v9, %v4079_v34  ;;  %v4735_v62 = vld [vmem:[%s5317_s12 + $0x28] sm:$0xff] }
 0x563   : > { %4663 = vmatpush1.msra.mxu1 %v4169_v27 }
 0x564   : > { %v4081_v12 = vpop.permute.xlu1 %4080 }
 0x565   : > { %v4083_v55 = vpop.permute.xlu0 %4082  ;;  %v4085_v25 = vsel %vm409_vm2, %v4079_v34, %v4081_v12 }
 0x566   : > { %v4084_v47 = vsel %vm409_vm2, %v4081_v12, %v4083_v55  ;;  %4593 = vmatprep.subr.mxu0 %v4085_v25  ;;  %v4091_v44 = vsel %vm409_vm2, %v4083_v55, %v8232_v4 }
 0x567   : > { %4664 = vmatprep.subr.mxu1 %v4091_v44  ;;  %4594 = vmatpush1.msra.mxu0 %v4086_v32  ;;  %v4736_v44 = vld [vmem:[%s5317_s12 + $0x30] sm:$0xff] }
 0x568   : > { %4665 = vmatpush1.msra.mxu1 %v4084_v47  ;;  %v4037_v26 = vpop.permute.xlu1 %4036  ;;  %4595 = vmatprep.subr.mxu0 %v8086_v31 }
 0x569   : > { %v4047_v63 = vsel %vm368_vm3, %v8250_v46, %v4037_v26  ;;  %4666 = vmatprep.subr.mxu1 %v7988_v13  ;;  %v4039_v54 = vpop.permute.xlu0 %4038  ;;  %4596 = vmatpush1.msra.mxu0 %v7946_v29  ;;  %v3542_v29 = vpop.f32.mrf.mxu1 }
 0x56a   : > { %4667 = vmatpush1.msra.mxu1 %v8105_v1  ;;  %v4046_v18 = vsel %vm368_vm3, %v4037_v26, %v4039_v54  ;;  %v3471_v1 = vpop.f32.mrf.mxu0 }
 0x56b   : > { %4597 = vmatprep.subr.mxu0 %v4046_v18  ;;  %v3544_v7 = vpop.f32.mrf.mxu1  ;;  %v4737_v18 = vld [vmem:[%s5317_s12 + $0x38] sm:$0xff] }
 0x56c   : > { %4598 = vmatpush1.msra.mxu0 %v4047_v63  ;;  %v4041_v51 = vpop.permute.xlu1 %4040  ;;  %v3473_v11 = vpop.f32.mrf.mxu0 }
 0x56d   : > { %v4045_v31 = vsel %vm368_vm3, %v4039_v54, %v4041_v51  ;;  %4899 = vmatmul.mubr.msk.f32.vlgmr.msra.gmra.mxu0 %vm1154_vm6, %v8255_v15  ;;  %v4044_v13 = vsel %vm368_vm3, %v4041_v51, %v8257_v61 }
 0x56e   : > { %4668 = vmatprep.subr.mxu1 %v4044_v13 }
 0x56f   : > { %4669 = vmatpush1.msra.mxu1 %v4045_v31 }
 0x570   : > { %4900 = vmatmul.mubr.msk.f32.vlgmr.msra.gmra.mxu1 %vm1154_vm6, %v8255_v15 }
 0x571   : > { %v3613_v20 = vpop.f32.mrf.mxu0 }
 0x573   : > { %v3684_v56 = vpop.f32.mrf.mxu1  ;;  %v3615_v4 = vpop.f32.mrf.mxu0 }
 0x575   : > { %v3686_v9 = vpop.f32.mrf.mxu1 }
 0x576   : > { %v4721_v38 = vpop.permute.xlu0 %4720 }
 0x59e   : > { %v3829_v21 = vpop.f32.mrf.mxu1 }
 0x59f   : > { %v3830_v60 = vadd.f32 %v3829_v21, %v3542_v29 }
 0x5a0   : > { %v3831_v19 = vpop.f32.mrf.mxu1 }
 0x5a1   : > { %v3758_v33 = vpop.f32.mrf.mxu0  ;;  %v3832_v61 = vadd.f32 %v3831_v19, %v3544_v7  ;;  %v4738_v7 = vld [vmem:[%s5317_s12 + $0x40] sm:$0xff]  ;;  %s5072_s12 = scalar_lea.vmem %s4779_s16, 1024 }
 0x5a2   : > { %v3759_v15 = vadd.f32 %v3758_v33, %v3471_v1  ;;  %p5073_p3 = scmp.ne.s32.totalorder %s4779_s16, %s5072_s12  ;;  %p5080_p12 = scmp.lt.s32.totalorder %s5078_s15, %s5072_s12 }
 0x5a3   : > { %v3760_v17 = vpop.f32.mrf.mxu0 }
 0x5a4   : > { %v3761_v43 = vadd.f32 %v3760_v17, %v3473_v11  ;;  %p5074_p1 = pnand %p5073_p3, %p8596_p11  ;;  %p5081_p7 = por %p5080_p12, %p5079_p6 }
 0x5a6   : > { %p5075_p2 = pneg %p5074_p1 }
 0x5a8   : > { %p5082_p9 = pnand %p5081_p7, %p5075_p2 }
 0x5c2   : > { %v3900_v40 = vpop.f32.mrf.mxu0 }
 0x5c3   : > { %v3901_v16 = vadd.f32 %v3900_v40, %v3613_v20 }
 0x5c4   : > { %v3902_v37 = vpop.f32.mrf.mxu0 }
 0x5c5   : > { %v3903_v28 = vadd.f32 %v3902_v37, %v3615_v4 }
 0x5c7   : > { %v3971_v23 = vpop.f32.mrf.mxu1 }
 0x5c8   : > { %v3972_v34 = vadd.f32 %v3971_v23, %v3684_v56 }
 0x5c9   : > { %v3973_v2 = vpop.f32.mrf.mxu1 }
 0x5ca   : > { %v3974_v47 = vadd.f32 %v3973_v2, %v3686_v9 }
 0x609   : > { %v4562_v46 = vpop.f32.mrf.mxu1 }
 0x60a   : > { %v4711_v52 = vadd.f32 %v4562_v46, %v3830_v60 }
 0x60b   : > { %v4564_v57 = vpop.f32.mrf.mxu1  ;;  %v4491_v14 = vpop.f32.mrf.mxu0 }
 0x60c   : > { %v4725_v59 = vadd.f32 %v4721_v38, %v4711_v52  ;;  %v4712_v53 = vadd.f32 %v4564_v57, %v3832_v61  ;;  %v4709_v5 = vadd.f32 %v4491_v14, %v3759_v15 }
 0x60d   : > { %v4493_v30 = vpop.f32.mrf.mxu0 }
 0x60e   : > { %v4741_v36 = vadd.f32 %v4733_v58, %v4725_v59  ;;  %v4726_v39 = vadd.f32 %v4721_v38, %v4712_v53  ;;  %v4723_v0 = vadd.f32 %v4721_v38, %v4709_v5  ;;  %v4710_v24 = vadd.f32 %v4493_v30, %v3761_v43 }
 0x610   : > { %v4749_v49 = vmax.f32 %v4741_v36, 0.0  ;;  %v4742_v8 = vadd.f32 %v4734_v45, %v4726_v39  ;;  %v4739_v42 = vadd.f32 %v4731_v22, %v4723_v0  ;;  %v4724_v35 = vadd.f32 %v4721_v38, %v4710_v24 }
 0x612   : > { %4757 = vst [vmem:[%s8349_s11 + $0x10] sm:$0xff] %v4749_v49  ;;  %v4750_v41 = vmax.f32 %v4742_v8, 0.0  ;;  %v4747_v3 = vmax.f32 %v4739_v42, 0.0  ;;  %v4740_v6 = vadd.f32 %v4732_v48, %v4724_v35 }
 0x614   : > { %4758 = vst [vmem:[%s8349_s11 + $0x18] sm:$0xff] %v4750_v41  ;;  %4755 = vst [vmem:[%s8349_s11] sm:$0xff] %v4747_v3  ;;  %v4748_v50 = vmax.f32 %v4740_v6, 0.0 }
 0x616   : > { %4756 = vst [vmem:[%s8349_s11 + $0x8] sm:$0xff] %v4748_v50 }
 0x62d   : > { %v4633_v10 = vpop.f32.mrf.mxu0 }
 0x62e   : > { %v4713_v27 = vadd.f32 %v4633_v10, %v3901_v16 }
 0x62f   : > { %v4635_v12 = vpop.f32.mrf.mxu0 }
 0x630   : > { %v4727_v55 = vadd.f32 %v4721_v38, %v4713_v27  ;;  %v4714_v25 = vadd.f32 %v4635_v12, %v3903_v28  ;;  %v4704_v32 = vpop.f32.mrf.mxu1 }
 0x631   : > { %v4715_v26 = vadd.f32 %v4704_v32, %v3972_v34 }
 0x632   : > { %v4743_v63 = vadd.f32 %v4735_v62, %v4727_v55  ;;  %v4728_v54 = vadd.f32 %v4721_v38, %v4714_v25  ;;  %v4706_v51 = vpop.f32.mrf.mxu1 }
 0x633   : > { %v4729_v31 = vadd.f32 %v4721_v38, %v4715_v26  ;;  %v4716_v13 = vadd.f32 %v4706_v51, %v3974_v47 }
 0x634   : > { %v4751_v29 = vmax.f32 %v4743_v63, 0.0  ;;  %v4744_v1 = vadd.f32 %v4736_v44, %v4728_v54 }
 0x635   : > { %v4745_v11 = vadd.f32 %v4737_v18, %v4729_v31  ;;  %v4730_v56 = vadd.f32 %v4721_v38, %v4716_v13 }
 0x636   : > { %4759 = vst [vmem:[%s8349_s11 + $0x20] sm:$0xff] %v4751_v29  ;;  %v4752_v20 = vmax.f32 %v4744_v1, 0.0 }
 0x637   : > { %v4753_v9 = vmax.f32 %v4745_v11, 0.0  ;;  %v4746_v4 = vadd.f32 %v4738_v7, %v4730_v56 }
 0x638   : > { %4760 = vst [vmem:[%s8349_s11 + $0x28] sm:$0xff] %v4752_v20 }
 0x639   : > { %4761 = vst [vmem:[%s8349_s11 + $0x30] sm:$0xff] %v4753_v9  ;;  %v4754_v21 = vmax.f32 %v4746_v4, 0.0 }
 0x63b   : > { %4762 = vst [vmem:[%s8349_s11 + $0x38] sm:$0xff] %v4754_v21 }
 0x63c   : > { %5085 = shalt.err (!%p5082_p9)
}
 0x63d   : > { %s5086_s20 = scalar_lea.hbm %s4776_s10, 1024  ;;  %s5090_s1 = scalar_lea.hbm %s8405_s6, 2048 }
 0x63e   : > { %p5087_p13 = scmp.ne.s32.totalorder %s4776_s10, %s5086_s20  ;;  %p5091_p0 = scmp.lt.s32.totalorder %s4776_s10, %s8405_s6 }
 0x63f   : > { %p5092_p4 = scmp.lt.s32.totalorder %s5090_s1, %s5086_s20 }
 0x640   : > { %p5088_p5 = pnand %p5087_p13, %p8596_p11 }
 0x641   : > { %p5093_p8 = por %p5092_p4, %p5091_p0 }
 0x642   : > { %p5089_p10 = pneg %p5088_p5 }
 0x644   : > { %p5094_p3 = pnand %p5093_p8, %p5089_p10 }
 0x646   : > { %5097 = shalt.err (!%p5094_p3)
}
 0x647   : > { %4920 = dma.vmem_to_hbm [thread:$0]  (%p8596_p11), %s4779_s16, 1024, %s4776_s10, %s4764_s9  }
 0x648 PF: > { %s4790_s11 = sand.u32 1, %s5128_s21   ;;  %p8597_p1 = scmp.ne.s32.totalorder %s8468_s28, 0 }
 0x649   : > { %p8598_p2 = scmp.ge.s32.totalorder %s5140_s24, 2  ;;  %s4791_s14 = scalar_lea.sflag [#allocation6], %s4790_s11 }
 0x64b   : > { %p4934_p6 = pnand %p8598_p2, %p8597_p1 }
 0x64d   : > { %p4935_p12 = pneg %p4934_p6 }
 0x64f   : > { %5123 = dma.done.wait (%p4935_p12), %s4791_s14, 1024  }
 0x650   : > { %5125 = vsyncadd (%p4935_p12), %s4791_s14, 4294966272  ;;  %p20_p7 = scmp.ge.s32.totalorder %s5267_s19, 4   ;;  %s8599_s21 = smov %s5132_s22 }
 0x651   : > { %s8600_s22 = smov %s5136_s23  ;;  %s8601_s23 = smov %s5283_s7 }
 0x652   : > { %s8602_s24 = smov %s5267_s19  ;;  %22 = sbr.rel (!%p20_p7) target bundleno = 8 (0x8), region = 102 }
 0x657   :  { %4796 = vsyncpa [#allocation5], 1 }
 0x658   :  { %4798 = vsyncpa [#allocation5 + $0x1], 1 }
 0x659   :  { %4799 = vsyncpa [#allocation8], 1 }
 0x65a   :  { %4800 = vsyncpa [#allocation6], 1 }
 0x65b   :  { %4802 = vsyncpa [#allocation6 + $0x1], 1 }

</bundles_post_ra>
